<compile_context>
chip_gen: v7x
topology: tpu7x:2x2x1
jax: 0.10.0
libtpu: 0.0.40
codegen_flags: <defaults>
</compile_context>

<pallas_src>
import functools

import jax
import jax.numpy as jnp
import numpy as np
from jax.experimental import pallas as pl
from jax.experimental.pallas import tpu as pltpu


def _critic_kernel(
    x_ref,        # (T*B, I)   time-flattened inputs
    we_ref,       # (I, E)     input embed
    be_ref,       # (1, E)
    wenc_ref,     # (E, H)     DeepResLSTM encoder
    benc_ref,     # (1, H)
    wcat_ref,     # (L, 2H, 4H)  fused [w_ih; w_hh], gate order [i, f, g, o]
    blstm_ref,    # (L, 1, 4H)   (= b_ih + b_hh)
    wlin_ref,     # (L, H, H)    residual linear
    blin_ref,     # (L, 1, H)
    wv_ref,       # (H, 1)       value head
    bv_ref,       # (1, 1)
    h0_ref,       # (L, B, H)
    c0_ref,       # (L, B, H)
    val_ref,      # (T*B, 1)   out
    h_out_ref,    # (L, B, H)  out (doubles as the recurrent h carry)
    c_out_ref,    # (L, B, H)  out (doubles as the recurrent c carry)
    stream_ref,   # VMEM scratch (T*B, H): residual stream for all steps
    xh_ref,       # VMEM scratch (B, 2H): [cur | h_prev] for fused gate matmul
    *,
    seq_len: int,
    batch: int,
    num_layers: int,
    hidden: int,
):
    T, B, L, H = seq_len, batch, num_layers, hidden
    f32 = jnp.float32

    # Recurrent carry lives directly in the output refs (single invocation,
    # no grid steps), initialized once from the provided state.
    h_out_ref[...] = h0_ref[...]
    c_out_ref[...] = c0_ref[...]

    # ---- Prologue: time-independent embed + encoder, batched over all T*B rows.
    emb = jnp.dot(x_ref[...], we_ref[...], preferred_element_type=f32) + be_ref[...]
    stream_ref[...] = (
        jnp.dot(emb, wenc_ref[...], preferred_element_type=f32) + benc_ref[...]
    )

    # ---- Hoisted loop invariants.
    lane = jax.lax.broadcasted_iota(jnp.int32, (B, 4 * H), 1)
    g_mask = (lane >= 2 * H) & (lane < 3 * H)          # tanh lanes (g gate)
    b_gate = [jnp.broadcast_to(blstm_ref[l], (B, 4 * H)) for l in range(L)]
    b_lin = [jnp.broadcast_to(blin_ref[l], (B, H)) for l in range(L)]

    # ---- Recurrent hot loop over time (static unroll; T is small here).
    # TODO(synk): for long sequences / big batches, switch to a time-blocked
    #             grid (or lax.fori_loop) and a batch-parallel axis for v7x.
    for t in range(T):
        rows = pl.ds(t * B, B)                          # static slice
        cur = stream_ref[rows, :]                       # (B, H)
        for l in range(L):
            h_prev = h_out_ref[l]                       # (B, H)
            c_prev = c_out_ref[l]                       # (B, H)

            # Fused gate matmul: [cur | h_prev] @ [w_ih; w_hh]  (K = 2H).
            xh_ref[:, 0:H] = cur
            xh_ref[:, H:2 * H] = h_prev
            gates = (
                jnp.dot(xh_ref[...], wcat_ref[l], preferred_element_type=f32)
                + b_gate[l]
            )                                           # (B, 4H)

            # One full-block masked activation pass instead of 4 sliced ones.
            act = jnp.where(g_mask, jnp.tanh(gates), jax.nn.sigmoid(gates))
            i_g = act[:, 0 * H:1 * H]
            f_g = act[:, 1 * H:2 * H]
            g_g = act[:, 2 * H:3 * H]
            o_g = act[:, 3 * H:4 * H]

            c_new = f_g * c_prev + i_g * g_g
            h_new = o_g * jnp.tanh(c_new)
            h_out_ref[l] = h_new
            c_out_ref[l] = c_new

            lin = jnp.dot(h_new, wlin_ref[l], preferred_element_type=f32) + b_lin[l]
            cur = jax.nn.relu(cur + lin)
        stream_ref[rows, :] = cur

    # ---- Epilogue: value head batched over all T*B rows, single store.
    val_ref[...] = (
        jnp.dot(stream_ref[...], wv_ref[...], preferred_element_type=f32)
        + bv_ref[...]
    )


def deep_res_lstm_critic(x, params, h0, c0):
    """DeepResLSTMCritic forward in one Pallas kernel.

    Args:
      x:  (T, B, input_size) float32
      params: dict of weight arrays (see init_params)
      h0, c0: (L, B, H) initial states
    Returns:
      values: (T, B, 1), h_final: (L, B, H), c_final: (L, B, H)
    """
    T, B, I = x.shape
    L, _, H = h0.shape
    E = params["w_embed"].shape[1]

    # Fuse the two gate matmuls once, outside the kernel: (L, 2H, 4H).
    # TODO(synk): on v6e/v7x this (and the other weights) could be bf16 with
    #             f32 accumulation; kept f32 so v5e's VPU/EUP stay on fast path.
    w_cat = jnp.concatenate([params["w_ih"], params["w_hh"]], axis=1)
    # Time-flatten inputs so the in-kernel embed/encoder/value-head matmuls are
    # batched over all T*B rows (free reshape in XLA).
    x2 = x.reshape(T * B, I)

    kernel = functools.partial(
        _critic_kernel, seq_len=T, batch=B, num_layers=L, hidden=H)

    grid_spec = pltpu.PrefetchScalarGridSpec(
        num_scalar_prefetch=0,
        grid=(1,),   # whole forward in one grid step; time loops in-kernel
        in_specs=[
            pl.BlockSpec((T * B, I), lambda i: (0, 0)),           # x (flat)
            pl.BlockSpec((I, E), lambda i: (0, 0)),               # w_embed
            pl.BlockSpec((1, E), lambda i: (0, 0)),               # b_embed
            pl.BlockSpec((E, H), lambda i: (0, 0)),               # w_enc
            pl.BlockSpec((1, H), lambda i: (0, 0)),               # b_enc
            pl.BlockSpec((L, 2 * H, 4 * H), lambda i: (0, 0, 0)), # w_cat
            pl.BlockSpec((L, 1, 4 * H), lambda i: (0, 0, 0)),     # b_lstm
            pl.BlockSpec((L, H, H), lambda i: (0, 0, 0)),         # w_lin
            pl.BlockSpec((L, 1, H), lambda i: (0, 0, 0)),         # b_lin
            pl.BlockSpec((H, 1), lambda i: (0, 0)),               # w_val
            pl.BlockSpec((1, 1), lambda i: (0, 0)),               # b_val
            pl.BlockSpec((L, B, H), lambda i: (0, 0, 0)),         # h0
            pl.BlockSpec((L, B, H), lambda i: (0, 0, 0)),         # c0
        ],
        out_specs=[
            pl.BlockSpec((T * B, 1), lambda i: (0, 0)),           # values (flat)
            pl.BlockSpec((L, B, H), lambda i: (0, 0, 0)),         # h_final
            pl.BlockSpec((L, B, H), lambda i: (0, 0, 0)),         # c_final
        ],
        scratch_shapes=[
            pltpu.VMEM((T * B, H), jnp.float32),                  # residual stream
            pltpu.VMEM((B, 2 * H), jnp.float32),                  # [cur | h_prev]
        ],
    )

    out_shape = (
        jax.ShapeDtypeStruct((T * B, 1), jnp.float32),
        jax.ShapeDtypeStruct((L, B, H), jnp.float32),
        jax.ShapeDtypeStruct((L, B, H), jnp.float32),
    )

    vals_flat, h_f, c_f = pl.pallas_call(
        kernel,
        grid_spec=grid_spec,
        out_shape=out_shape,
        compiler_params=pltpu.CompilerParams(
            dimension_semantics=("arbitrary",),
        ),
    )(
        x2,
        params["w_embed"], params["b_embed"],
        params["w_enc"], params["b_enc"],
        w_cat, params["b_lstm"],
        params["w_lin"], params["b_lin"],
        params["w_val"], params["b_val"],
        h0, c0,
    )
    return vals_flat.reshape(T, B, 1), h_f, c_f


def init_params(key, input_size, embed_size, hidden, num_layers):
    """Deterministic synthetic parameters (stored as (in, out) matrices)."""
    ks = jax.random.split(key, 12)
    s = 0.1
    return {
        "w_embed": s * jax.random.normal(ks[0], (input_size, embed_size), jnp.float32),
        "b_embed": s * jax.random.normal(ks[1], (1, embed_size), jnp.float32),
        "w_enc":   s * jax.random.normal(ks[2], (embed_size, hidden), jnp.float32),
        "b_enc":   s * jax.random.normal(ks[3], (1, hidden), jnp.float32),
        # gate order matches PyTorch LSTM: [i, f, g, o] along the 4H axis
        "w_ih":    s * jax.random.normal(ks[4], (num_layers, hidden, 4 * hidden), jnp.float32),
        "w_hh":    s * jax.random.normal(ks[5], (num_layers, hidden, 4 * hidden), jnp.float32),
        "b_lstm":  s * jax.random.normal(ks[6], (num_layers, 1, 4 * hidden), jnp.float32),
        "w_lin":   s * jax.random.normal(ks[7], (num_layers, hidden, hidden), jnp.float32),
        "b_lin":   s * jax.random.normal(ks[8], (num_layers, 1, hidden), jnp.float32),
        "w_val":   s * jax.random.normal(ks[9], (hidden, 1), jnp.float32),
        "b_val":   s * jax.random.normal(ks[10], (1, 1), jnp.float32),
    }


def reference_forward(x, params, h0, c0):
    """Pure-JAX reference matching PyTorch DeepResLSTMCritic semantics."""
    T, B, _ = x.shape
    L, _, H = h0.shape
    emb = x @ params["w_embed"] + params["b_embed"]
    cur = emb @ params["w_enc"] + params["b_enc"]            # (T, B, H)
    h_fin, c_fin = [], []
    for l in range(L):
        h, c = h0[l], c0[l]
        outs = []
        for t in range(T):
            g = cur[t] @ params["w_ih"][l] + h @ params["w_hh"][l] + params["b_lstm"][l]
            i_g = jax.nn.sigmoid(g[:, 0 * H:1 * H])
            f_g = jax.nn.sigmoid(g[:, 1 * H:2 * H])
            g_g = jnp.tanh(g[:, 2 * H:3 * H])
            o_g = jax.nn.sigmoid(g[:, 3 * H:4 * H])
            c = f_g * c + i_g * g_g
            h = o_g * jnp.tanh(c)
            outs.append(h)
        lstm_out = jnp.stack(outs)                           # (T, B, H)
        cur = jax.nn.relu(cur + lstm_out @ params["w_lin"][l] + params["b_lin"][l])
        h_fin.append(h)
        c_fin.append(c)
    values = cur @ params["w_val"] + params["b_val"]         # (T, B, 1)
    return values, jnp.stack(h_fin), jnp.stack(c_fin)


if __name__ == "__main__":
    T, B = 8, 4                 # seq_len, batch
    INPUT_SIZE = 16
    EMBED = 32                  # _input_embed_size in the module
    HIDDEN = 32
    NUM_LAYERS = 2

    key = jax.random.PRNGKey(0)
    k_x, k_p = jax.random.split(key)

    x = jax.random.normal(k_x, (T, B, INPUT_SIZE), jnp.float32)
    params = init_params(k_p, INPUT_SIZE, EMBED, HIDDEN, NUM_LAYERS)
    # initial_state(): zeros, shaped (num_layers, batch, hidden)
    h0 = jnp.zeros((NUM_LAYERS, B, HIDDEN), jnp.float32)
    c0 = jnp.zeros((NUM_LAYERS, B, HIDDEN), jnp.float32)

    values, h_f, c_f = deep_res_lstm_critic(x, params, h0, c0)
    jax.block_until_ready((values, h_f, c_f))

    ref_v, ref_h, ref_c = reference_forward(x, params, h0, c0)
    np.testing.assert_allclose(np.asarray(values), np.asarray(ref_v), rtol=1e-4, atol=1e-4)
    np.testing.assert_allclose(np.asarray(h_f), np.asarray(ref_h), rtol=1e-4, atol=1e-4)
    np.testing.assert_allclose(np.asarray(c_f), np.asarray(ref_c), rtol=1e-4, atol=1e-4)

    print("KERNEL_OK")
</pallas_src>

<mosaic_0001>
module attributes {stable_mosaic.version = 11 : i64} {
  func.func @_critic_kernel(%arg0: i32, %arg1: memref<32x16xf32, #tpu.memory_space<vmem>>, %arg2: memref<16x32xf32, #tpu.memory_space<vmem>>, %arg3: memref<1x32xf32, #tpu.memory_space<vmem>>, %arg4: memref<32x32xf32, #tpu.memory_space<vmem>>, %arg5: memref<1x32xf32, #tpu.memory_space<vmem>>, %arg6: memref<2x64x128xf32, #tpu.memory_space<vmem>>, %arg7: memref<2x1x128xf32, #tpu.memory_space<vmem>>, %arg8: memref<2x32x32xf32, #tpu.memory_space<vmem>>, %arg9: memref<2x1x32xf32, #tpu.memory_space<vmem>>, %arg10: memref<32x1xf32, #tpu.memory_space<vmem>>, %arg11: memref<1x1xf32, #tpu.memory_space<vmem>>, %arg12: memref<2x4x32xf32, #tpu.memory_space<vmem>>, %arg13: memref<2x4x32xf32, #tpu.memory_space<vmem>>, %arg14: memref<32x1xf32, #tpu.memory_space<vmem>>, %arg15: memref<2x4x32xf32, #tpu.memory_space<vmem>>, %arg16: memref<2x4x32xf32, #tpu.memory_space<vmem>>, %arg17: memref<32x32xf32, #tpu.memory_space<vmem>>, %arg18: memref<4x64xf32, #tpu.memory_space<vmem>>) attributes {dimension_semantics = [#tpu.dimension_semantics<arbitrary>], iteration_bounds = array<i64: 1>, scalar_prefetch = 0 : i64, scratch_operands = 2 : i64, tpu.core_type = #tpu.core_type<tc>, window_params = [{pipeline_mode = #tpu.pipeline_mode<synchronous>, transform_indices = @transform_0, window_bounds = array<i64: 32, 16>}, {pipeline_mode = #tpu.pipeline_mode<synchronous>, transform_indices = @transform_1, window_bounds = array<i64: 16, 32>}, {pipeline_mode = #tpu.pipeline_mode<synchronous>, transform_indices = @transform_2, window_bounds = array<i64: 1, 32>}, {pipeline_mode = #tpu.pipeline_mode<synchronous>, transform_indices = @transform_3, window_bounds = array<i64: 32, 32>}, {pipeline_mode = #tpu.pipeline_mode<synchronous>, transform_indices = @transform_4, window_bounds = array<i64: 1, 32>}, {pipeline_mode = #tpu.pipeline_mode<synchronous>, transform_indices = @transform_5, window_bounds = array<i64: 2, 64, 128>}, {pipeline_mode = #tpu.pipeline_mode<synchronous>, transform_indices = @transform_6, window_bounds = array<i64: 2, 1, 128>}, {pipeline_mode = #tpu.pipeline_mode<synchronous>, transform_indices = @transform_7, window_bounds = array<i64: 2, 32, 32>}, {pipeline_mode = #tpu.pipeline_mode<synchronous>, transform_indices = @transform_8, window_bounds = array<i64: 2, 1, 32>}, {pipeline_mode = #tpu.pipeline_mode<synchronous>, transform_indices = @transform_9, window_bounds = array<i64: 32, 1>}, {pipeline_mode = #tpu.pipeline_mode<synchronous>, transform_indices = @transform_10, window_bounds = array<i64: 1, 1>}, {pipeline_mode = #tpu.pipeline_mode<synchronous>, transform_indices = @transform_11, window_bounds = array<i64: 2, 4, 32>}, {pipeline_mode = #tpu.pipeline_mode<synchronous>, transform_indices = @transform_12, window_bounds = array<i64: 2, 4, 32>}, {pipeline_mode = #tpu.pipeline_mode<synchronous>, transform_indices = @transform_13, window_bounds = array<i64: 32, 1>}, {pipeline_mode = #tpu.pipeline_mode<synchronous>, transform_indices = @transform_14, window_bounds = array<i64: 2, 4, 32>}, {pipeline_mode = #tpu.pipeline_mode<synchronous>, transform_indices = @transform_15, window_bounds = array<i64: 2, 4, 32>}]} {
    %c0 = arith.constant 0 : index
    %c0_0 = arith.constant 0 : index
    %c0_1 = arith.constant 0 : index
    %0 = vector.load %arg12[%c0, %c0_0, %c0_1] : memref<2x4x32xf32, #tpu.memory_space<vmem>>, vector<2x4x32xf32>
    %c0_2 = arith.constant 0 : index
    %c0_3 = arith.constant 0 : index
    %c0_4 = arith.constant 0 : index
    %1 = vector.load %arg15[%c0_2, %c0_3, %c0_4] : memref<2x4x32xf32, #tpu.memory_space<vmem>>, vector<2x4x32xf32>
    tpu.vector_store %arg15[%c0_2, %c0_3, %c0_4], %0 {strides = array<i32>} : memref<2x4x32xf32, #tpu.memory_space<vmem>>, vector<2x4x32xf32>,
    %c0_5 = arith.constant 0 : index
    %c0_6 = arith.constant 0 : index
    %c0_7 = arith.constant 0 : index
    %2 = vector.load %arg13[%c0_5, %c0_6, %c0_7] : memref<2x4x32xf32, #tpu.memory_space<vmem>>, vector<2x4x32xf32>
    %c0_8 = arith.constant 0 : index
    %c0_9 = arith.constant 0 : index
    %c0_10 = arith.constant 0 : index
    %3 = vector.load %arg16[%c0_8, %c0_9, %c0_10] : memref<2x4x32xf32, #tpu.memory_space<vmem>>, vector<2x4x32xf32>
    tpu.vector_store %arg16[%c0_8, %c0_9, %c0_10], %2 {strides = array<i32>} : memref<2x4x32xf32, #tpu.memory_space<vmem>>, vector<2x4x32xf32>,
    %c0_11 = arith.constant 0 : index
    %c0_12 = arith.constant 0 : index
    %4 = vector.load %arg1[%c0_11, %c0_12] : memref<32x16xf32, #tpu.memory_space<vmem>>, vector<32x16xf32>
    %c0_13 = arith.constant 0 : index
    %c0_14 = arith.constant 0 : index
    %5 = vector.load %arg2[%c0_13, %c0_14] : memref<16x32xf32, #tpu.memory_space<vmem>>, vector<16x32xf32>
    %cst = arith.constant dense<0.000000e+00> : vector<32x32xf32>
    %6 = tpu.matmul %4, %5, %cst {dimension_numbers = #tpu.dot_dimension_numbers<[1], [0], [0], [1], [0, 0, 1, 1], [], []>} : vector<32x16xf32>, vector<16x32xf32>, vector<32x32xf32> -> vector<32x32xf32>
    %c0_15 = arith.constant 0 : index
    %c0_16 = arith.constant 0 : index
    %7 = vector.load %arg3[%c0_15, %c0_16] : memref<1x32xf32, #tpu.memory_space<vmem>>, vector<1x32xf32>
    %8 = vector.broadcast %7 : vector<1x32xf32> to vector<32x32xf32>
    %9 = arith.addf %6, %8 : vector<32x32xf32>
    %c0_17 = arith.constant 0 : index
    %c0_18 = arith.constant 0 : index
    %10 = vector.load %arg4[%c0_17, %c0_18] : memref<32x32xf32, #tpu.memory_space<vmem>>, vector<32x32xf32>
    %cst_19 = arith.constant dense<0.000000e+00> : vector<32x32xf32>
    %11 = tpu.matmul %9, %10, %cst_19 {dimension_numbers = #tpu.dot_dimension_numbers<[1], [0], [0], [1], [0, 0, 1, 1], [], []>} : vector<32x32xf32>, vector<32x32xf32>, vector<32x32xf32> -> vector<32x32xf32>
    %c0_20 = arith.constant 0 : index
    %c0_21 = arith.constant 0 : index
    %12 = vector.load %arg5[%c0_20, %c0_21] : memref<1x32xf32, #tpu.memory_space<vmem>>, vector<1x32xf32>
    %13 = vector.broadcast %12 : vector<1x32xf32> to vector<32x32xf32>
    %14 = arith.addf %11, %13 : vector<32x32xf32>
    %c0_22 = arith.constant 0 : index
    %c0_23 = arith.constant 0 : index
    %15 = vector.load %arg17[%c0_22, %c0_23] : memref<32x32xf32, #tpu.memory_space<vmem>>, vector<32x32xf32>
    tpu.vector_store %arg17[%c0_22, %c0_23], %14 {strides = array<i32>} : memref<32x32xf32, #tpu.memory_space<vmem>>, vector<32x32xf32>,
    %16 = tpu.iota {dimensions = array<i32: 1>} : vector<4x128xi32>
    %c64_i32 = arith.constant 64 : i32
    %17 = vector.broadcast %c64_i32 : i32 to vector<4x128xi32>
    %18 = arith.cmpi sge, %16, %17 : vector<4x128xi32>
    %c96_i32 = arith.constant 96 : i32
    %19 = vector.broadcast %c96_i32 : i32 to vector<4x128xi32>
    %20 = arith.cmpi slt, %16, %19 : vector<4x128xi32>
    %21 = arith.andi %18, %20 : vector<4x128xi1>
    %c0_24 = arith.constant 0 : index
    %c0_25 = arith.constant 0 : index
    %c0_26 = arith.constant 0 : index
    %22 = vector.load %arg7[%c0_24, %c0_25, %c0_26] : memref<2x1x128xf32, #tpu.memory_space<vmem>>, vector<1x1x128xf32>
    %23 = vector.shape_cast %22 : vector<1x1x128xf32> to vector<1x128xf32>
    %24 = vector.shape_cast %23 : vector<1x128xf32> to vector<1x128xf32>
    %25 = vector.broadcast %24 : vector<1x128xf32> to vector<4x128xf32>
    %c1 = arith.constant 1 : index
    %c0_27 = arith.constant 0 : index
    %c0_28 = arith.constant 0 : index
    %26 = vector.load %arg7[%c1, %c0_27, %c0_28] : memref<2x1x128xf32, #tpu.memory_space<vmem>>, vector<1x1x128xf32>
    %27 = vector.shape_cast %26 : vector<1x1x128xf32> to vector<1x128xf32>
    %28 = vector.shape_cast %27 : vector<1x128xf32> to vector<1x128xf32>
    %29 = vector.broadcast %28 : vector<1x128xf32> to vector<4x128xf32>
    %c0_29 = arith.constant 0 : index
    %c0_30 = arith.constant 0 : index
    %c0_31 = arith.constant 0 : index
    %30 = vector.load %arg9[%c0_29, %c0_30, %c0_31] : memref<2x1x32xf32, #tpu.memory_space<vmem>>, vector<1x1x32xf32>
    %31 = vector.shape_cast %30 : vector<1x1x32xf32> to vector<1x32xf32>
    %32 = vector.shape_cast %31 : vector<1x32xf32> to vector<1x32xf32>
    %33 = vector.broadcast %32 : vector<1x32xf32> to vector<4x32xf32>
    %c1_32 = arith.constant 1 : index
    %c0_33 = arith.constant 0 : index
    %c0_34 = arith.constant 0 : index
    %34 = vector.load %arg9[%c1_32, %c0_33, %c0_34] : memref<2x1x32xf32, #tpu.memory_space<vmem>>, vector<1x1x32xf32>
    %35 = vector.shape_cast %34 : vector<1x1x32xf32> to vector<1x32xf32>
    %36 = vector.shape_cast %35 : vector<1x32xf32> to vector<1x32xf32>
    %37 = vector.broadcast %36 : vector<1x32xf32> to vector<4x32xf32>
    %c0_35 = arith.constant 0 : index
    %c0_36 = arith.constant 0 : index
    %38 = vector.load %arg17[%c0_35, %c0_36] : memref<32x32xf32, #tpu.memory_space<vmem>>, vector<4x32xf32>
    %c0_37 = arith.constant 0 : index
    %c0_38 = arith.constant 0 : index
    %c0_39 = arith.constant 0 : index
    %39 = vector.load %arg15[%c0_37, %c0_38, %c0_39] : memref<2x4x32xf32, #tpu.memory_space<vmem>>, vector<1x4x32xf32>
    %40 = vector.shape_cast %39 : vector<1x4x32xf32> to vector<4x32xf32>
    %c0_40 = arith.constant 0 : index
    %c0_41 = arith.constant 0 : index
    %c0_42 = arith.constant 0 : index
    %41 = vector.load %arg16[%c0_40, %c0_41, %c0_42] : memref<2x4x32xf32, #tpu.memory_space<vmem>>, vector<1x4x32xf32>
    %42 = vector.shape_cast %41 : vector<1x4x32xf32> to vector<4x32xf32>
    %c0_43 = arith.constant 0 : index
    %c0_44 = arith.constant 0 : index
    %43 = vector.load %arg18[%c0_43, %c0_44] : memref<4x64xf32, #tpu.memory_space<vmem>>, vector<4x32xf32>
    tpu.vector_store %arg18[%c0_43, %c0_44], %38 {strides = array<i32>} : memref<4x64xf32, #tpu.memory_space<vmem>>, vector<4x32xf32>,
    %c0_45 = arith.constant 0 : index
    %c32 = arith.constant 32 : index
    %44 = vector.load %arg18[%c0_45, %c32] : memref<4x64xf32, #tpu.memory_space<vmem>>, vector<4x32xf32>
    tpu.vector_store %arg18[%c0_45, %c32], %40 {strides = array<i32>} : memref<4x64xf32, #tpu.memory_space<vmem>>, vector<4x32xf32>,
    %c0_46 = arith.constant 0 : index
    %c0_47 = arith.constant 0 : index
    %45 = vector.load %arg18[%c0_46, %c0_47] : memref<4x64xf32, #tpu.memory_space<vmem>>, vector<4x64xf32>
    %c0_48 = arith.constant 0 : index
    %c0_49 = arith.constant 0 : index
    %c0_50 = arith.constant 0 : index
    %46 = vector.load %arg6[%c0_48, %c0_49, %c0_50] : memref<2x64x128xf32, #tpu.memory_space<vmem>>, vector<1x64x128xf32>
    %47 = vector.shape_cast %46 : vector<1x64x128xf32> to vector<64x128xf32>
    %cst_51 = arith.constant dense<0.000000e+00> : vector<4x128xf32>
    %48 = tpu.matmul %45, %47, %cst_51 {dimension_numbers = #tpu.dot_dimension_numbers<[1], [0], [0], [1], [0, 0, 1, 1], [], []>} : vector<4x64xf32>, vector<64x128xf32>, vector<4x128xf32> -> vector<4x128xf32>
    %49 = arith.addf %48, %25 : vector<4x128xf32>
    %50 = math.tanh %49 : vector<4x128xf32>
    %51 = arith.negf %49 : vector<4x128xf32>
    %52 = math.exp %51 : vector<4x128xf32>
    %cst_52 = arith.constant 1.000000e+00 : f32
    %53 = vector.broadcast %cst_52 : f32 to vector<4x128xf32>
    %54 = arith.addf %53, %52 : vector<4x128xf32>
    %55 = arith.divf %53, %54 : vector<4x128xf32>
    %56 = arith.select %21, %50, %55 : vector<4x128xi1>, vector<4x128xf32>
    %57 = vector.extract_strided_slice %56 {offsets = [0, 0], sizes = [4, 32], strides = [1, 1]} : vector<4x128xf32> to vector<4x32xf32>
    %58 = vector.extract_strided_slice %56 {offsets = [0, 32], sizes = [4, 32], strides = [1, 1]} : vector<4x128xf32> to vector<4x32xf32>
    %59 = vector.extract_strided_slice %56 {offsets = [0, 64], sizes = [4, 32], strides = [1, 1]} : vector<4x128xf32> to vector<4x32xf32>
    %60 = vector.extract_strided_slice %56 {offsets = [0, 96], sizes = [4, 32], strides = [1, 1]} : vector<4x128xf32> to vector<4x32xf32>
    %61 = arith.mulf %58, %42 : vector<4x32xf32>
    %62 = arith.mulf %57, %59 : vector<4x32xf32>
    %63 = arith.addf %61, %62 : vector<4x32xf32>
    %64 = math.tanh %63 : vector<4x32xf32>
    %65 = arith.mulf %60, %64 : vector<4x32xf32>
    %c0_53 = arith.constant 0 : index
    %c0_54 = arith.constant 0 : index
    %c0_55 = arith.constant 0 : index
    %66 = vector.load %arg15[%c0_53, %c0_54, %c0_55] : memref<2x4x32xf32, #tpu.memory_space<vmem>>, vector<1x4x32xf32>
    %67 = vector.shape_cast %66 : vector<1x4x32xf32> to vector<4x32xf32>
    %68 = vector.shape_cast %65 : vector<4x32xf32> to vector<1x4x32xf32>
    tpu.vector_store %arg15[%c0_53, %c0_54, %c0_55], %68 {strides = array<i32>} : memref<2x4x32xf32, #tpu.memory_space<vmem>>, vector<1x4x32xf32>,
    %c0_56 = arith.constant 0 : index
    %c0_57 = arith.constant 0 : index
    %c0_58 = arith.constant 0 : index
    %69 = vector.load %arg16[%c0_56, %c0_57, %c0_58] : memref<2x4x32xf32, #tpu.memory_space<vmem>>, vector<1x4x32xf32>
    %70 = vector.shape_cast %69 : vector<1x4x32xf32> to vector<4x32xf32>
    %71 = vector.shape_cast %63 : vector<4x32xf32> to vector<1x4x32xf32>
    tpu.vector_store %arg16[%c0_56, %c0_57, %c0_58], %71 {strides = array<i32>} : memref<2x4x32xf32, #tpu.memory_space<vmem>>, vector<1x4x32xf32>,
    %c0_59 = arith.constant 0 : index
    %c0_60 = arith.constant 0 : index
    %c0_61 = arith.constant 0 : index
    %72 = vector.load %arg8[%c0_59, %c0_60, %c0_61] : memref<2x32x32xf32, #tpu.memory_space<vmem>>, vector<1x32x32xf32>
    %73 = vector.shape_cast %72 : vector<1x32x32xf32> to vector<32x32xf32>
    %cst_62 = arith.constant dense<0.000000e+00> : vector<4x32xf32>
    %74 = tpu.matmul %65, %73, %cst_62 {dimension_numbers = #tpu.dot_dimension_numbers<[1], [0], [0], [1], [0, 0, 1, 1], [], []>} : vector<4x32xf32>, vector<32x32xf32>, vector<4x32xf32> -> vector<4x32xf32>
    %75 = arith.addf %74, %33 : vector<4x32xf32>
    %76 = arith.addf %38, %75 : vector<4x32xf32>
    %cst_63 = arith.constant 0.000000e+00 : f32
    %77 = vector.broadcast %cst_63 : f32 to vector<4x32xf32>
    %78 = arith.maximumf %76, %77 : vector<4x32xf32>
    %c1_64 = arith.constant 1 : index
    %c0_65 = arith.constant 0 : index
    %c0_66 = arith.constant 0 : index
    %79 = vector.load %arg15[%c1_64, %c0_65, %c0_66] : memref<2x4x32xf32, #tpu.memory_space<vmem>>, vector<1x4x32xf32>
    %80 = vector.shape_cast %79 : vector<1x4x32xf32> to vector<4x32xf32>
    %c1_67 = arith.constant 1 : index
    %c0_68 = arith.constant 0 : index
    %c0_69 = arith.constant 0 : index
    %81 = vector.load %arg16[%c1_67, %c0_68, %c0_69] : memref<2x4x32xf32, #tpu.memory_space<vmem>>, vector<1x4x32xf32>
    %82 = vector.shape_cast %81 : vector<1x4x32xf32> to vector<4x32xf32>
    %c0_70 = arith.constant 0 : index
    %c0_71 = arith.constant 0 : index
    %83 = vector.load %arg18[%c0_70, %c0_71] : memref<4x64xf32, #tpu.memory_space<vmem>>, vector<4x32xf32>
    tpu.vector_store %arg18[%c0_70, %c0_71], %78 {strides = array<i32>} : memref<4x64xf32, #tpu.memory_space<vmem>>, vector<4x32xf32>,
    %c0_72 = arith.constant 0 : index
    %c32_73 = arith.constant 32 : index
    %84 = vector.load %arg18[%c0_72, %c32_73] : memref<4x64xf32, #tpu.memory_space<vmem>>, vector<4x32xf32>
    tpu.vector_store %arg18[%c0_72, %c32_73], %80 {strides = array<i32>} : memref<4x64xf32, #tpu.memory_space<vmem>>, vector<4x32xf32>,
    %c0_74 = arith.constant 0 : index
    %c0_75 = arith.constant 0 : index
    %85 = vector.load %arg18[%c0_74, %c0_75] : memref<4x64xf32, #tpu.memory_space<vmem>>, vector<4x64xf32>
    %c1_76 = arith.constant 1 : index
    %c0_77 = arith.constant 0 : index
    %c0_78 = arith.constant 0 : index
    %86 = vector.load %arg6[%c1_76, %c0_77, %c0_78] : memref<2x64x128xf32, #tpu.memory_space<vmem>>, vector<1x64x128xf32>
    %87 = vector.shape_cast %86 : vector<1x64x128xf32> to vector<64x128xf32>
    %cst_79 = arith.constant dense<0.000000e+00> : vector<4x128xf32>
    %88 = tpu.matmul %85, %87, %cst_79 {dimension_numbers = #tpu.dot_dimension_numbers<[1], [0], [0], [1], [0, 0, 1, 1], [], []>} : vector<4x64xf32>, vector<64x128xf32>, vector<4x128xf32> -> vector<4x128xf32>
    %89 = arith.addf %88, %29 : vector<4x128xf32>
    %90 = math.tanh %89 : vector<4x128xf32>
    %91 = arith.negf %89 : vector<4x128xf32>
    %92 = math.exp %91 : vector<4x128xf32>
    %cst_80 = arith.constant 1.000000e+00 : f32
    %93 = vector.broadcast %cst_80 : f32 to vector<4x128xf32>
    %94 = arith.addf %93, %92 : vector<4x128xf32>
    %95 = arith.divf %93, %94 : vector<4x128xf32>
    %96 = arith.select %21, %90, %95 : vector<4x128xi1>, vector<4x128xf32>
    %97 = vector.extract_strided_slice %96 {offsets = [0, 0], sizes = [4, 32], strides = [1, 1]} : vector<4x128xf32> to vector<4x32xf32>
    %98 = vector.extract_strided_slice %96 {offsets = [0, 32], sizes = [4, 32], strides = [1, 1]} : vector<4x128xf32> to vector<4x32xf32>
    %99 = vector.extract_strided_slice %96 {offsets = [0, 64], sizes = [4, 32], strides = [1, 1]} : vector<4x128xf32> to vector<4x32xf32>
    %100 = vector.extract_strided_slice %96 {offsets = [0, 96], sizes = [4, 32], strides = [1, 1]} : vector<4x128xf32> to vector<4x32xf32>
    %101 = arith.mulf %98, %82 : vector<4x32xf32>
    %102 = arith.mulf %97, %99 : vector<4x32xf32>
    %103 = arith.addf %101, %102 : vector<4x32xf32>
    %104 = math.tanh %103 : vector<4x32xf32>
    %105 = arith.mulf %100, %104 : vector<4x32xf32>
    %c1_81 = arith.constant 1 : index
    %c0_82 = arith.constant 0 : index
    %c0_83 = arith.constant 0 : index
    %106 = vector.load %arg15[%c1_81, %c0_82, %c0_83] : memref<2x4x32xf32, #tpu.memory_space<vmem>>, vector<1x4x32xf32>
    %107 = vector.shape_cast %106 : vector<1x4x32xf32> to vector<4x32xf32>
    %108 = vector.shape_cast %105 : vector<4x32xf32> to vector<1x4x32xf32>
    tpu.vector_store %arg15[%c1_81, %c0_82, %c0_83], %108 {strides = array<i32>} : memref<2x4x32xf32, #tpu.memory_space<vmem>>, vector<1x4x32xf32>,
    %c1_84 = arith.constant 1 : index
    %c0_85 = arith.constant 0 : index
    %c0_86 = arith.constant 0 : index
    %109 = vector.load %arg16[%c1_84, %c0_85, %c0_86] : memref<2x4x32xf32, #tpu.memory_space<vmem>>, vector<1x4x32xf32>
    %110 = vector.shape_cast %109 : vector<1x4x32xf32> to vector<4x32xf32>
    %111 = vector.shape_cast %103 : vector<4x32xf32> to vector<1x4x32xf32>
    tpu.vector_store %arg16[%c1_84, %c0_85, %c0_86], %111 {strides = array<i32>} : memref<2x4x32xf32, #tpu.memory_space<vmem>>, vector<1x4x32xf32>,
    %c1_87 = arith.constant 1 : index
    %c0_88 = arith.constant 0 : index
    %c0_89 = arith.constant 0 : index
    %112 = vector.load %arg8[%c1_87, %c0_88, %c0_89] : memref<2x32x32xf32, #tpu.memory_space<vmem>>, vector<1x32x32xf32>
    %113 = vector.shape_cast %112 : vector<1x32x32xf32> to vector<32x32xf32>
    %cst_90 = arith.constant dense<0.000000e+00> : vector<4x32xf32>
    %114 = tpu.matmul %105, %113, %cst_90 {dimension_numbers = #tpu.dot_dimension_numbers<[1], [0], [0], [1], [0, 0, 1, 1], [], []>} : vector<4x32xf32>, vector<32x32xf32>, vector<4x32xf32> -> vector<4x32xf32>
    %115 = arith.addf %114, %37 : vector<4x32xf32>
    %116 = arith.addf %78, %115 : vector<4x32xf32>
    %cst_91 = arith.constant 0.000000e+00 : f32
    %117 = vector.broadcast %cst_91 : f32 to vector<4x32xf32>
    %118 = arith.maximumf %116, %117 : vector<4x32xf32>
    %c0_92 = arith.constant 0 : index
    %c0_93 = arith.constant 0 : index
    %119 = vector.load %arg17[%c0_92, %c0_93] : memref<32x32xf32, #tpu.memory_space<vmem>>, vector<4x32xf32>
    tpu.vector_store %arg17[%c0_92, %c0_93], %118 {strides = array<i32>} : memref<32x32xf32, #tpu.memory_space<vmem>>, vector<4x32xf32>,
    %c4 = arith.constant 4 : index
    %c0_94 = arith.constant 0 : index
    %120 = vector.load %arg17[%c4, %c0_94] : memref<32x32xf32, #tpu.memory_space<vmem>>, vector<4x32xf32>
    %c0_95 = arith.constant 0 : index
    %c0_96 = arith.constant 0 : index
    %c0_97 = arith.constant 0 : index
    %121 = vector.load %arg15[%c0_95, %c0_96, %c0_97] : memref<2x4x32xf32, #tpu.memory_space<vmem>>, vector<1x4x32xf32>
    %122 = vector.shape_cast %121 : vector<1x4x32xf32> to vector<4x32xf32>
    %c0_98 = arith.constant 0 : index
    %c0_99 = arith.constant 0 : index
    %c0_100 = arith.constant 0 : index
    %123 = vector.load %arg16[%c0_98, %c0_99, %c0_100] : memref<2x4x32xf32, #tpu.memory_space<vmem>>, vector<1x4x32xf32>
    %124 = vector.shape_cast %123 : vector<1x4x32xf32> to vector<4x32xf32>
    %c0_101 = arith.constant 0 : index
    %c0_102 = arith.constant 0 : index
    %125 = vector.load %arg18[%c0_101, %c0_102] : memref<4x64xf32, #tpu.memory_space<vmem>>, vector<4x32xf32>
    tpu.vector_store %arg18[%c0_101, %c0_102], %120 {strides = array<i32>} : memref<4x64xf32, #tpu.memory_space<vmem>>, vector<4x32xf32>,
    %c0_103 = arith.constant 0 : index
    %c32_104 = arith.constant 32 : index
    %126 = vector.load %arg18[%c0_103, %c32_104] : memref<4x64xf32, #tpu.memory_space<vmem>>, vector<4x32xf32>
    tpu.vector_store %arg18[%c0_103, %c32_104], %122 {strides = array<i32>} : memref<4x64xf32, #tpu.memory_space<vmem>>, vector<4x32xf32>,
    %c0_105 = arith.constant 0 : index
    %c0_106 = arith.constant 0 : index
    %127 = vector.load %arg18[%c0_105, %c0_106] : memref<4x64xf32, #tpu.memory_space<vmem>>, vector<4x64xf32>
    %c0_107 = arith.constant 0 : index
    %c0_108 = arith.constant 0 : index
    %c0_109 = arith.constant 0 : index
    %128 = vector.load %arg6[%c0_107, %c0_108, %c0_109] : memref<2x64x128xf32, #tpu.memory_space<vmem>>, vector<1x64x128xf32>
    %129 = vector.shape_cast %128 : vector<1x64x128xf32> to vector<64x128xf32>
    %cst_110 = arith.constant dense<0.000000e+00> : vector<4x128xf32>
    %130 = tpu.matmul %127, %129, %cst_110 {dimension_numbers = #tpu.dot_dimension_numbers<[1], [0], [0], [1], [0, 0, 1, 1], [], []>} : vector<4x64xf32>, vector<64x128xf32>, vector<4x128xf32> -> vector<4x128xf32>
    %131 = arith.addf %130, %25 : vector<4x128xf32>
    %132 = math.tanh %131 : vector<4x128xf32>
    %133 = arith.negf %131 : vector<4x128xf32>
    %134 = math.exp %133 : vector<4x128xf32>
    %cst_111 = arith.constant 1.000000e+00 : f32
    %135 = vector.broadcast %cst_111 : f32 to vector<4x128xf32>
    %136 = arith.addf %135, %134 : vector<4x128xf32>
    %137 = arith.divf %135, %136 : vector<4x128xf32>
    %138 = arith.select %21, %132, %137 : vector<4x128xi1>, vector<4x128xf32>
    %139 = vector.extract_strided_slice %138 {offsets = [0, 0], sizes = [4, 32], strides = [1, 1]} : vector<4x128xf32> to vector<4x32xf32>
    %140 = vector.extract_strided_slice %138 {offsets = [0, 32], sizes = [4, 32], strides = [1, 1]} : vector<4x128xf32> to vector<4x32xf32>
    %141 = vector.extract_strided_slice %138 {offsets = [0, 64], sizes = [4, 32], strides = [1, 1]} : vector<4x128xf32> to vector<4x32xf32>
    %142 = vector.extract_strided_slice %138 {offsets = [0, 96], sizes = [4, 32], strides = [1, 1]} : vector<4x128xf32> to vector<4x32xf32>
    %143 = arith.mulf %140, %124 : vector<4x32xf32>
    %144 = arith.mulf %139, %141 : vector<4x32xf32>
    %145 = arith.addf %143, %144 : vector<4x32xf32>
    %146 = math.tanh %145 : vector<4x32xf32>
    %147 = arith.mulf %142, %146 : vector<4x32xf32>
    %c0_112 = arith.constant 0 : index
    %c0_113 = arith.constant 0 : index
    %c0_114 = arith.constant 0 : index
    %148 = vector.load %arg15[%c0_112, %c0_113, %c0_114] : memref<2x4x32xf32, #tpu.memory_space<vmem>>, vector<1x4x32xf32>
    %149 = vector.shape_cast %148 : vector<1x4x32xf32> to vector<4x32xf32>
    %150 = vector.shape_cast %147 : vector<4x32xf32> to vector<1x4x32xf32>
    tpu.vector_store %arg15[%c0_112, %c0_113, %c0_114], %150 {strides = array<i32>} : memref<2x4x32xf32, #tpu.memory_space<vmem>>, vector<1x4x32xf32>,
    %c0_115 = arith.constant 0 : index
    %c0_116 = arith.constant 0 : index
    %c0_117 = arith.constant 0 : index
    %151 = vector.load %arg16[%c0_115, %c0_116, %c0_117] : memref<2x4x32xf32, #tpu.memory_space<vmem>>, vector<1x4x32xf32>
    %152 = vector.shape_cast %151 : vector<1x4x32xf32> to vector<4x32xf32>
    %153 = vector.shape_cast %145 : vector<4x32xf32> to vector<1x4x32xf32>
    tpu.vector_store %arg16[%c0_115, %c0_116, %c0_117], %153 {strides = array<i32>} : memref<2x4x32xf32, #tpu.memory_space<vmem>>, vector<1x4x32xf32>,
    %c0_118 = arith.constant 0 : index
    %c0_119 = arith.constant 0 : index
    %c0_120 = arith.constant 0 : index
    %154 = vector.load %arg8[%c0_118, %c0_119, %c0_120] : memref<2x32x32xf32, #tpu.memory_space<vmem>>, vector<1x32x32xf32>
    %155 = vector.shape_cast %154 : vector<1x32x32xf32> to vector<32x32xf32>
    %cst_121 = arith.constant dense<0.000000e+00> : vector<4x32xf32>
    %156 = tpu.matmul %147, %155, %cst_121 {dimension_numbers = #tpu.dot_dimension_numbers<[1], [0], [0], [1], [0, 0, 1, 1], [], []>} : vector<4x32xf32>, vector<32x32xf32>, vector<4x32xf32> -> vector<4x32xf32>
    %157 = arith.addf %156, %33 : vector<4x32xf32>
    %158 = arith.addf %120, %157 : vector<4x32xf32>
    %cst_122 = arith.constant 0.000000e+00 : f32
    %159 = vector.broadcast %cst_122 : f32 to vector<4x32xf32>
    %160 = arith.maximumf %158, %159 : vector<4x32xf32>
    %c1_123 = arith.constant 1 : index
    %c0_124 = arith.constant 0 : index
    %c0_125 = arith.constant 0 : index
    %161 = vector.load %arg15[%c1_123, %c0_124, %c0_125] : memref<2x4x32xf32, #tpu.memory_space<vmem>>, vector<1x4x32xf32>
    %162 = vector.shape_cast %161 : vector<1x4x32xf32> to vector<4x32xf32>
    %c1_126 = arith.constant 1 : index
    %c0_127 = arith.constant 0 : index
    %c0_128 = arith.constant 0 : index
    %163 = vector.load %arg16[%c1_126, %c0_127, %c0_128] : memref<2x4x32xf32, #tpu.memory_space<vmem>>, vector<1x4x32xf32>
    %164 = vector.shape_cast %163 : vector<1x4x32xf32> to vector<4x32xf32>
    %c0_129 = arith.constant 0 : index
    %c0_130 = arith.constant 0 : index
    %165 = vector.load %arg18[%c0_129, %c0_130] : memref<4x64xf32, #tpu.memory_space<vmem>>, vector<4x32xf32>
    tpu.vector_store %arg18[%c0_129, %c0_130], %160 {strides = array<i32>} : memref<4x64xf32, #tpu.memory_space<vmem>>, vector<4x32xf32>,
    %c0_131 = arith.constant 0 : index
    %c32_132 = arith.constant 32 : index
    %166 = vector.load %arg18[%c0_131, %c32_132] : memref<4x64xf32, #tpu.memory_space<vmem>>, vector<4x32xf32>
    tpu.vector_store %arg18[%c0_131, %c32_132], %162 {strides = array<i32>} : memref<4x64xf32, #tpu.memory_space<vmem>>, vector<4x32xf32>,
    %c0_133 = arith.constant 0 : index
    %c0_134 = arith.constant 0 : index
    %167 = vector.load %arg18[%c0_133, %c0_134] : memref<4x64xf32, #tpu.memory_space<vmem>>, vector<4x64xf32>
    %c1_135 = arith.constant 1 : index
    %c0_136 = arith.constant 0 : index
    %c0_137 = arith.constant 0 : index
    %168 = vector.load %arg6[%c1_135, %c0_136, %c0_137] : memref<2x64x128xf32, #tpu.memory_space<vmem>>, vector<1x64x128xf32>
    %169 = vector.shape_cast %168 : vector<1x64x128xf32> to vector<64x128xf32>
    %cst_138 = arith.constant dense<0.000000e+00> : vector<4x128xf32>
    %170 = tpu.matmul %167, %169, %cst_138 {dimension_numbers = #tpu.dot_dimension_numbers<[1], [0], [0], [1], [0, 0, 1, 1], [], []>} : vector<4x64xf32>, vector<64x128xf32>, vector<4x128xf32> -> vector<4x128xf32>
    %171 = arith.addf %170, %29 : vector<4x128xf32>
    %172 = math.tanh %171 : vector<4x128xf32>
    %173 = arith.negf %171 : vector<4x128xf32>
    %174 = math.exp %173 : vector<4x128xf32>
    %cst_139 = arith.constant 1.000000e+00 : f32
    %175 = vector.broadcast %cst_139 : f32 to vector<4x128xf32>
    %176 = arith.addf %175, %174 : vector<4x128xf32>
    %177 = arith.divf %175, %176 : vector<4x128xf32>
    %178 = arith.select %21, %172, %177 : vector<4x128xi1>, vector<4x128xf32>
    %179 = vector.extract_strided_slice %178 {offsets = [0, 0], sizes = [4, 32], strides = [1, 1]} : vector<4x128xf32> to vector<4x32xf32>
    %180 = vector.extract_strided_slice %178 {offsets = [0, 32], sizes = [4, 32], strides = [1, 1]} : vector<4x128xf32> to vector<4x32xf32>
    %181 = vector.extract_strided_slice %178 {offsets = [0, 64], sizes = [4, 32], strides = [1, 1]} : vector<4x128xf32> to vector<4x32xf32>
    %182 = vector.extract_strided_slice %178 {offsets = [0, 96], sizes = [4, 32], strides = [1, 1]} : vector<4x128xf32> to vector<4x32xf32>
    %183 = arith.mulf %180, %164 : vector<4x32xf32>
    %184 = arith.mulf %179, %181 : vector<4x32xf32>
    %185 = arith.addf %183, %184 : vector<4x32xf32>
    %186 = math.tanh %185 : vector<4x32xf32>
    %187 = arith.mulf %182, %186 : vector<4x32xf32>
    %c1_140 = arith.constant 1 : index
    %c0_141 = arith.constant 0 : index
    %c0_142 = arith.constant 0 : index
    %188 = vector.load %arg15[%c1_140, %c0_141, %c0_142] : memref<2x4x32xf32, #tpu.memory_space<vmem>>, vector<1x4x32xf32>
    %189 = vector.shape_cast %188 : vector<1x4x32xf32> to vector<4x32xf32>
    %190 = vector.shape_cast %187 : vector<4x32xf32> to vector<1x4x32xf32>
    tpu.vector_store %arg15[%c1_140, %c0_141, %c0_142], %190 {strides = array<i32>} : memref<2x4x32xf32, #tpu.memory_space<vmem>>, vector<1x4x32xf32>,
    %c1_143 = arith.constant 1 : index
    %c0_144 = arith.constant 0 : index
    %c0_145 = arith.constant 0 : index
    %191 = vector.load %arg16[%c1_143, %c0_144, %c0_145] : memref<2x4x32xf32, #tpu.memory_space<vmem>>, vector<1x4x32xf32>
    %192 = vector.shape_cast %191 : vector<1x4x32xf32> to vector<4x32xf32>
    %193 = vector.shape_cast %185 : vector<4x32xf32> to vector<1x4x32xf32>
    tpu.vector_store %arg16[%c1_143, %c0_144, %c0_145], %193 {strides = array<i32>} : memref<2x4x32xf32, #tpu.memory_space<vmem>>, vector<1x4x32xf32>,
    %c1_146 = arith.constant 1 : index
    %c0_147 = arith.constant 0 : index
    %c0_148 = arith.constant 0 : index
    %194 = vector.load %arg8[%c1_146, %c0_147, %c0_148] : memref<2x32x32xf32, #tpu.memory_space<vmem>>, vector<1x32x32xf32>
    %195 = vector.shape_cast %194 : vector<1x32x32xf32> to vector<32x32xf32>
    %cst_149 = arith.constant dense<0.000000e+00> : vector<4x32xf32>
    %196 = tpu.matmul %187, %195, %cst_149 {dimension_numbers = #tpu.dot_dimension_numbers<[1], [0], [0], [1], [0, 0, 1, 1], [], []>} : vector<4x32xf32>, vector<32x32xf32>, vector<4x32xf32> -> vector<4x32xf32>
    %197 = arith.addf %196, %37 : vector<4x32xf32>
    %198 = arith.addf %160, %197 : vector<4x32xf32>
    %cst_150 = arith.constant 0.000000e+00 : f32
    %199 = vector.broadcast %cst_150 : f32 to vector<4x32xf32>
    %200 = arith.maximumf %198, %199 : vector<4x32xf32>
    %c4_151 = arith.constant 4 : index
    %c0_152 = arith.constant 0 : index
    %201 = vector.load %arg17[%c4_151, %c0_152] : memref<32x32xf32, #tpu.memory_space<vmem>>, vector<4x32xf32>
    tpu.vector_store %arg17[%c4_151, %c0_152], %200 {strides = array<i32>} : memref<32x32xf32, #tpu.memory_space<vmem>>, vector<4x32xf32>,
    %c8 = arith.constant 8 : index
    %c0_153 = arith.constant 0 : index
    %202 = vector.load %arg17[%c8, %c0_153] : memref<32x32xf32, #tpu.memory_space<vmem>>, vector<4x32xf32>
    %c0_154 = arith.constant 0 : index
    %c0_155 = arith.constant 0 : index
    %c0_156 = arith.constant 0 : index
    %203 = vector.load %arg15[%c0_154, %c0_155, %c0_156] : memref<2x4x32xf32, #tpu.memory_space<vmem>>, vector<1x4x32xf32>
    %204 = vector.shape_cast %203 : vector<1x4x32xf32> to vector<4x32xf32>
    %c0_157 = arith.constant 0 : index
    %c0_158 = arith.constant 0 : index
    %c0_159 = arith.constant 0 : index
    %205 = vector.load %arg16[%c0_157, %c0_158, %c0_159] : memref<2x4x32xf32, #tpu.memory_space<vmem>>, vector<1x4x32xf32>
    %206 = vector.shape_cast %205 : vector<1x4x32xf32> to vector<4x32xf32>
    %c0_160 = arith.constant 0 : index
    %c0_161 = arith.constant 0 : index
    %207 = vector.load %arg18[%c0_160, %c0_161] : memref<4x64xf32, #tpu.memory_space<vmem>>, vector<4x32xf32>
    tpu.vector_store %arg18[%c0_160, %c0_161], %202 {strides = array<i32>} : memref<4x64xf32, #tpu.memory_space<vmem>>, vector<4x32xf32>,
    %c0_162 = arith.constant 0 : index
    %c32_163 = arith.constant 32 : index
    %208 = vector.load %arg18[%c0_162, %c32_163] : memref<4x64xf32, #tpu.memory_space<vmem>>, vector<4x32xf32>
    tpu.vector_store %arg18[%c0_162, %c32_163], %204 {strides = array<i32>} : memref<4x64xf32, #tpu.memory_space<vmem>>, vector<4x32xf32>,
    %c0_164 = arith.constant 0 : index
    %c0_165 = arith.constant 0 : index
    %209 = vector.load %arg18[%c0_164, %c0_165] : memref<4x64xf32, #tpu.memory_space<vmem>>, vector<4x64xf32>
    %c0_166 = arith.constant 0 : index
    %c0_167 = arith.constant 0 : index
    %c0_168 = arith.constant 0 : index
    %210 = vector.load %arg6[%c0_166, %c0_167, %c0_168] : memref<2x64x128xf32, #tpu.memory_space<vmem>>, vector<1x64x128xf32>
    %211 = vector.shape_cast %210 : vector<1x64x128xf32> to vector<64x128xf32>
    %cst_169 = arith.constant dense<0.000000e+00> : vector<4x128xf32>
    %212 = tpu.matmul %209, %211, %cst_169 {dimension_numbers = #tpu.dot_dimension_numbers<[1], [0], [0], [1], [0, 0, 1, 1], [], []>} : vector<4x64xf32>, vector<64x128xf32>, vector<4x128xf32> -> vector<4x128xf32>
    %213 = arith.addf %212, %25 : vector<4x128xf32>
    %214 = math.tanh %213 : vector<4x128xf32>
    %215 = arith.negf %213 : vector<4x128xf32>
    %216 = math.exp %215 : vector<4x128xf32>
    %cst_170 = arith.constant 1.000000e+00 : f32
    %217 = vector.broadcast %cst_170 : f32 to vector<4x128xf32>
    %218 = arith.addf %217, %216 : vector<4x128xf32>
    %219 = arith.divf %217, %218 : vector<4x128xf32>
    %220 = arith.select %21, %214, %219 : vector<4x128xi1>, vector<4x128xf32>
    %221 = vector.extract_strided_slice %220 {offsets = [0, 0], sizes = [4, 32], strides = [1, 1]} : vector<4x128xf32> to vector<4x32xf32>
    %222 = vector.extract_strided_slice %220 {offsets = [0, 32], sizes = [4, 32], strides = [1, 1]} : vector<4x128xf32> to vector<4x32xf32>
    %223 = vector.extract_strided_slice %220 {offsets = [0, 64], sizes = [4, 32], strides = [1, 1]} : vector<4x128xf32> to vector<4x32xf32>
    %224 = vector.extract_strided_slice %220 {offsets = [0, 96], sizes = [4, 32], strides = [1, 1]} : vector<4x128xf32> to vector<4x32xf32>
    %225 = arith.mulf %222, %206 : vector<4x32xf32>
    %226 = arith.mulf %221, %223 : vector<4x32xf32>
    %227 = arith.addf %225, %226 : vector<4x32xf32>
    %228 = math.tanh %227 : vector<4x32xf32>
    %229 = arith.mulf %224, %228 : vector<4x32xf32>
    %c0_171 = arith.constant 0 : index
    %c0_172 = arith.constant 0 : index
    %c0_173 = arith.constant 0 : index
    %230 = vector.load %arg15[%c0_171, %c0_172, %c0_173] : memref<2x4x32xf32, #tpu.memory_space<vmem>>, vector<1x4x32xf32>
    %231 = vector.shape_cast %230 : vector<1x4x32xf32> to vector<4x32xf32>
    %232 = vector.shape_cast %229 : vector<4x32xf32> to vector<1x4x32xf32>
    tpu.vector_store %arg15[%c0_171, %c0_172, %c0_173], %232 {strides = array<i32>} : memref<2x4x32xf32, #tpu.memory_space<vmem>>, vector<1x4x32xf32>,
    %c0_174 = arith.constant 0 : index
    %c0_175 = arith.constant 0 : index
    %c0_176 = arith.constant 0 : index
    %233 = vector.load %arg16[%c0_174, %c0_175, %c0_176] : memref<2x4x32xf32, #tpu.memory_space<vmem>>, vector<1x4x32xf32>
    %234 = vector.shape_cast %233 : vector<1x4x32xf32> to vector<4x32xf32>
    %235 = vector.shape_cast %227 : vector<4x32xf32> to vector<1x4x32xf32>
    tpu.vector_store %arg16[%c0_174, %c0_175, %c0_176], %235 {strides = array<i32>} : memref<2x4x32xf32, #tpu.memory_space<vmem>>, vector<1x4x32xf32>,
    %c0_177 = arith.constant 0 : index
    %c0_178 = arith.constant 0 : index
    %c0_179 = arith.constant 0 : index
    %236 = vector.load %arg8[%c0_177, %c0_178, %c0_179] : memref<2x32x32xf32, #tpu.memory_space<vmem>>, vector<1x32x32xf32>
    %237 = vector.shape_cast %236 : vector<1x32x32xf32> to vector<32x32xf32>
    %cst_180 = arith.constant dense<0.000000e+00> : vector<4x32xf32>
    %238 = tpu.matmul %229, %237, %cst_180 {dimension_numbers = #tpu.dot_dimension_numbers<[1], [0], [0], [1], [0, 0, 1, 1], [], []>} : vector<4x32xf32>, vector<32x32xf32>, vector<4x32xf32> -> vector<4x32xf32>
    %239 = arith.addf %238, %33 : vector<4x32xf32>
    %240 = arith.addf %202, %239 : vector<4x32xf32>
    %cst_181 = arith.constant 0.000000e+00 : f32
    %241 = vector.broadcast %cst_181 : f32 to vector<4x32xf32>
    %242 = arith.maximumf %240, %241 : vector<4x32xf32>
    %c1_182 = arith.constant 1 : index
    %c0_183 = arith.constant 0 : index
    %c0_184 = arith.constant 0 : index
    %243 = vector.load %arg15[%c1_182, %c0_183, %c0_184] : memref<2x4x32xf32, #tpu.memory_space<vmem>>, vector<1x4x32xf32>
    %244 = vector.shape_cast %243 : vector<1x4x32xf32> to vector<4x32xf32>
    %c1_185 = arith.constant 1 : index
    %c0_186 = arith.constant 0 : index
    %c0_187 = arith.constant 0 : index
    %245 = vector.load %arg16[%c1_185, %c0_186, %c0_187] : memref<2x4x32xf32, #tpu.memory_space<vmem>>, vector<1x4x32xf32>
    %246 = vector.shape_cast %245 : vector<1x4x32xf32> to vector<4x32xf32>
    %c0_188 = arith.constant 0 : index
    %c0_189 = arith.constant 0 : index
    %247 = vector.load %arg18[%c0_188, %c0_189] : memref<4x64xf32, #tpu.memory_space<vmem>>, vector<4x32xf32>
    tpu.vector_store %arg18[%c0_188, %c0_189], %242 {strides = array<i32>} : memref<4x64xf32, #tpu.memory_space<vmem>>, vector<4x32xf32>,
    %c0_190 = arith.constant 0 : index
    %c32_191 = arith.constant 32 : index
    %248 = vector.load %arg18[%c0_190, %c32_191] : memref<4x64xf32, #tpu.memory_space<vmem>>, vector<4x32xf32>
    tpu.vector_store %arg18[%c0_190, %c32_191], %244 {strides = array<i32>} : memref<4x64xf32, #tpu.memory_space<vmem>>, vector<4x32xf32>,
    %c0_192 = arith.constant 0 : index
    %c0_193 = arith.constant 0 : index
    %249 = vector.load %arg18[%c0_192, %c0_193] : memref<4x64xf32, #tpu.memory_space<vmem>>, vector<4x64xf32>
    %c1_194 = arith.constant 1 : index
    %c0_195 = arith.constant 0 : index
    %c0_196 = arith.constant 0 : index
    %250 = vector.load %arg6[%c1_194, %c0_195, %c0_196] : memref<2x64x128xf32, #tpu.memory_space<vmem>>, vector<1x64x128xf32>
    %251 = vector.shape_cast %250 : vector<1x64x128xf32> to vector<64x128xf32>
    %cst_197 = arith.constant dense<0.000000e+00> : vector<4x128xf32>
    %252 = tpu.matmul %249, %251, %cst_197 {dimension_numbers = #tpu.dot_dimension_numbers<[1], [0], [0], [1], [0, 0, 1, 1], [], []>} : vector<4x64xf32>, vector<64x128xf32>, vector<4x128xf32> -> vector<4x128xf32>
    %253 = arith.addf %252, %29 : vector<4x128xf32>
    %254 = math.tanh %253 : vector<4x128xf32>
    %255 = arith.negf %253 : vector<4x128xf32>
    %256 = math.exp %255 : vector<4x128xf32>
    %cst_198 = arith.constant 1.000000e+00 : f32
    %257 = vector.broadcast %cst_198 : f32 to vector<4x128xf32>
    %258 = arith.addf %257, %256 : vector<4x128xf32>
    %259 = arith.divf %257, %258 : vector<4x128xf32>
    %260 = arith.select %21, %254, %259 : vector<4x128xi1>, vector<4x128xf32>
    %261 = vector.extract_strided_slice %260 {offsets = [0, 0], sizes = [4, 32], strides = [1, 1]} : vector<4x128xf32> to vector<4x32xf32>
    %262 = vector.extract_strided_slice %260 {offsets = [0, 32], sizes = [4, 32], strides = [1, 1]} : vector<4x128xf32> to vector<4x32xf32>
    %263 = vector.extract_strided_slice %260 {offsets = [0, 64], sizes = [4, 32], strides = [1, 1]} : vector<4x128xf32> to vector<4x32xf32>
    %264 = vector.extract_strided_slice %260 {offsets = [0, 96], sizes = [4, 32], strides = [1, 1]} : vector<4x128xf32> to vector<4x32xf32>
    %265 = arith.mulf %262, %246 : vector<4x32xf32>
    %266 = arith.mulf %261, %263 : vector<4x32xf32>
    %267 = arith.addf %265, %266 : vector<4x32xf32>
    %268 = math.tanh %267 : vector<4x32xf32>
    %269 = arith.mulf %264, %268 : vector<4x32xf32>
    %c1_199 = arith.constant 1 : index
    %c0_200 = arith.constant 0 : index
    %c0_201 = arith.constant 0 : index
    %270 = vector.load %arg15[%c1_199, %c0_200, %c0_201] : memref<2x4x32xf32, #tpu.memory_space<vmem>>, vector<1x4x32xf32>
    %271 = vector.shape_cast %270 : vector<1x4x32xf32> to vector<4x32xf32>
    %272 = vector.shape_cast %269 : vector<4x32xf32> to vector<1x4x32xf32>
    tpu.vector_store %arg15[%c1_199, %c0_200, %c0_201], %272 {strides = array<i32>} : memref<2x4x32xf32, #tpu.memory_space<vmem>>, vector<1x4x32xf32>,
    %c1_202 = arith.constant 1 : index
    %c0_203 = arith.constant 0 : index
    %c0_204 = arith.constant 0 : index
    %273 = vector.load %arg16[%c1_202, %c0_203, %c0_204] : memref<2x4x32xf32, #tpu.memory_space<vmem>>, vector<1x4x32xf32>
    %274 = vector.shape_cast %273 : vector<1x4x32xf32> to vector<4x32xf32>
    %275 = vector.shape_cast %267 : vector<4x32xf32> to vector<1x4x32xf32>
    tpu.vector_store %arg16[%c1_202, %c0_203, %c0_204], %275 {strides = array<i32>} : memref<2x4x32xf32, #tpu.memory_space<vmem>>, vector<1x4x32xf32>,
    %c1_205 = arith.constant 1 : index
    %c0_206 = arith.constant 0 : index
    %c0_207 = arith.constant 0 : index
    %276 = vector.load %arg8[%c1_205, %c0_206, %c0_207] : memref<2x32x32xf32, #tpu.memory_space<vmem>>, vector<1x32x32xf32>
    %277 = vector.shape_cast %276 : vector<1x32x32xf32> to vector<32x32xf32>
    %cst_208 = arith.constant dense<0.000000e+00> : vector<4x32xf32>
    %278 = tpu.matmul %269, %277, %cst_208 {dimension_numbers = #tpu.dot_dimension_numbers<[1], [0], [0], [1], [0, 0, 1, 1], [], []>} : vector<4x32xf32>, vector<32x32xf32>, vector<4x32xf32> -> vector<4x32xf32>
    %279 = arith.addf %278, %37 : vector<4x32xf32>
    %280 = arith.addf %242, %279 : vector<4x32xf32>
    %cst_209 = arith.constant 0.000000e+00 : f32
    %281 = vector.broadcast %cst_209 : f32 to vector<4x32xf32>
    %282 = arith.maximumf %280, %281 : vector<4x32xf32>
    %c8_210 = arith.constant 8 : index
    %c0_211 = arith.constant 0 : index
    %283 = vector.load %arg17[%c8_210, %c0_211] : memref<32x32xf32, #tpu.memory_space<vmem>>, vector<4x32xf32>
    tpu.vector_store %arg17[%c8_210, %c0_211], %282 {strides = array<i32>} : memref<32x32xf32, #tpu.memory_space<vmem>>, vector<4x32xf32>,
    %c12 = arith.constant 12 : index
    %c0_212 = arith.constant 0 : index
    %284 = vector.load %arg17[%c12, %c0_212] : memref<32x32xf32, #tpu.memory_space<vmem>>, vector<4x32xf32>
    %c0_213 = arith.constant 0 : index
    %c0_214 = arith.constant 0 : index
    %c0_215 = arith.constant 0 : index
    %285 = vector.load %arg15[%c0_213, %c0_214, %c0_215] : memref<2x4x32xf32, #tpu.memory_space<vmem>>, vector<1x4x32xf32>
    %286 = vector.shape_cast %285 : vector<1x4x32xf32> to vector<4x32xf32>
    %c0_216 = arith.constant 0 : index
    %c0_217 = arith.constant 0 : index
    %c0_218 = arith.constant 0 : index
    %287 = vector.load %arg16[%c0_216, %c0_217, %c0_218] : memref<2x4x32xf32, #tpu.memory_space<vmem>>, vector<1x4x32xf32>
    %288 = vector.shape_cast %287 : vector<1x4x32xf32> to vector<4x32xf32>
    %c0_219 = arith.constant 0 : index
    %c0_220 = arith.constant 0 : index
    %289 = vector.load %arg18[%c0_219, %c0_220] : memref<4x64xf32, #tpu.memory_space<vmem>>, vector<4x32xf32>
    tpu.vector_store %arg18[%c0_219, %c0_220], %284 {strides = array<i32>} : memref<4x64xf32, #tpu.memory_space<vmem>>, vector<4x32xf32>,
    %c0_221 = arith.constant 0 : index
    %c32_222 = arith.constant 32 : index
    %290 = vector.load %arg18[%c0_221, %c32_222] : memref<4x64xf32, #tpu.memory_space<vmem>>, vector<4x32xf32>
    tpu.vector_store %arg18[%c0_221, %c32_222], %286 {strides = array<i32>} : memref<4x64xf32, #tpu.memory_space<vmem>>, vector<4x32xf32>,
    %c0_223 = arith.constant 0 : index
    %c0_224 = arith.constant 0 : index
    %291 = vector.load %arg18[%c0_223, %c0_224] : memref<4x64xf32, #tpu.memory_space<vmem>>, vector<4x64xf32>
    %c0_225 = arith.constant 0 : index
    %c0_226 = arith.constant 0 : index
    %c0_227 = arith.constant 0 : index
    %292 = vector.load %arg6[%c0_225, %c0_226, %c0_227] : memref<2x64x128xf32, #tpu.memory_space<vmem>>, vector<1x64x128xf32>
    %293 = vector.shape_cast %292 : vector<1x64x128xf32> to vector<64x128xf32>
    %cst_228 = arith.constant dense<0.000000e+00> : vector<4x128xf32>
    %294 = tpu.matmul %291, %293, %cst_228 {dimension_numbers = #tpu.dot_dimension_numbers<[1], [0], [0], [1], [0, 0, 1, 1], [], []>} : vector<4x64xf32>, vector<64x128xf32>, vector<4x128xf32> -> vector<4x128xf32>
    %295 = arith.addf %294, %25 : vector<4x128xf32>
    %296 = math.tanh %295 : vector<4x128xf32>
    %297 = arith.negf %295 : vector<4x128xf32>
    %298 = math.exp %297 : vector<4x128xf32>
    %cst_229 = arith.constant 1.000000e+00 : f32
    %299 = vector.broadcast %cst_229 : f32 to vector<4x128xf32>
    %300 = arith.addf %299, %298 : vector<4x128xf32>
    %301 = arith.divf %299, %300 : vector<4x128xf32>
    %302 = arith.select %21, %296, %301 : vector<4x128xi1>, vector<4x128xf32>
    %303 = vector.extract_strided_slice %302 {offsets = [0, 0], sizes = [4, 32], strides = [1, 1]} : vector<4x128xf32> to vector<4x32xf32>
    %304 = vector.extract_strided_slice %302 {offsets = [0, 32], sizes = [4, 32], strides = [1, 1]} : vector<4x128xf32> to vector<4x32xf32>
    %305 = vector.extract_strided_slice %302 {offsets = [0, 64], sizes = [4, 32], strides = [1, 1]} : vector<4x128xf32> to vector<4x32xf32>
    %306 = vector.extract_strided_slice %302 {offsets = [0, 96], sizes = [4, 32], strides = [1, 1]} : vector<4x128xf32> to vector<4x32xf32>
    %307 = arith.mulf %304, %288 : vector<4x32xf32>
    %308 = arith.mulf %303, %305 : vector<4x32xf32>
    %309 = arith.addf %307, %308 : vector<4x32xf32>
    %310 = math.tanh %309 : vector<4x32xf32>
    %311 = arith.mulf %306, %310 : vector<4x32xf32>
    %c0_230 = arith.constant 0 : index
    %c0_231 = arith.constant 0 : index
    %c0_232 = arith.constant 0 : index
    %312 = vector.load %arg15[%c0_230, %c0_231, %c0_232] : memref<2x4x32xf32, #tpu.memory_space<vmem>>, vector<1x4x32xf32>
    %313 = vector.shape_cast %312 : vector<1x4x32xf32> to vector<4x32xf32>
    %314 = vector.shape_cast %311 : vector<4x32xf32> to vector<1x4x32xf32>
    tpu.vector_store %arg15[%c0_230, %c0_231, %c0_232], %314 {strides = array<i32>} : memref<2x4x32xf32, #tpu.memory_space<vmem>>, vector<1x4x32xf32>,
    %c0_233 = arith.constant 0 : index
    %c0_234 = arith.constant 0 : index
    %c0_235 = arith.constant 0 : index
    %315 = vector.load %arg16[%c0_233, %c0_234, %c0_235] : memref<2x4x32xf32, #tpu.memory_space<vmem>>, vector<1x4x32xf32>
    %316 = vector.shape_cast %315 : vector<1x4x32xf32> to vector<4x32xf32>
    %317 = vector.shape_cast %309 : vector<4x32xf32> to vector<1x4x32xf32>
    tpu.vector_store %arg16[%c0_233, %c0_234, %c0_235], %317 {strides = array<i32>} : memref<2x4x32xf32, #tpu.memory_space<vmem>>, vector<1x4x32xf32>,
    %c0_236 = arith.constant 0 : index
    %c0_237 = arith.constant 0 : index
    %c0_238 = arith.constant 0 : index
    %318 = vector.load %arg8[%c0_236, %c0_237, %c0_238] : memref<2x32x32xf32, #tpu.memory_space<vmem>>, vector<1x32x32xf32>
    %319 = vector.shape_cast %318 : vector<1x32x32xf32> to vector<32x32xf32>
    %cst_239 = arith.constant dense<0.000000e+00> : vector<4x32xf32>
    %320 = tpu.matmul %311, %319, %cst_239 {dimension_numbers = #tpu.dot_dimension_numbers<[1], [0], [0], [1], [0, 0, 1, 1], [], []>} : vector<4x32xf32>, vector<32x32xf32>, vector<4x32xf32> -> vector<4x32xf32>
    %321 = arith.addf %320, %33 : vector<4x32xf32>
    %322 = arith.addf %284, %321 : vector<4x32xf32>
    %cst_240 = arith.constant 0.000000e+00 : f32
    %323 = vector.broadcast %cst_240 : f32 to vector<4x32xf32>
    %324 = arith.maximumf %322, %323 : vector<4x32xf32>
    %c1_241 = arith.constant 1 : index
    %c0_242 = arith.constant 0 : index
    %c0_243 = arith.constant 0 : index
    %325 = vector.load %arg15[%c1_241, %c0_242, %c0_243] : memref<2x4x32xf32, #tpu.memory_space<vmem>>, vector<1x4x32xf32>
    %326 = vector.shape_cast %325 : vector<1x4x32xf32> to vector<4x32xf32>
    %c1_244 = arith.constant 1 : index
    %c0_245 = arith.constant 0 : index
    %c0_246 = arith.constant 0 : index
    %327 = vector.load %arg16[%c1_244, %c0_245, %c0_246] : memref<2x4x32xf32, #tpu.memory_space<vmem>>, vector<1x4x32xf32>
    %328 = vector.shape_cast %327 : vector<1x4x32xf32> to vector<4x32xf32>
    %c0_247 = arith.constant 0 : index
    %c0_248 = arith.constant 0 : index
    %329 = vector.load %arg18[%c0_247, %c0_248] : memref<4x64xf32, #tpu.memory_space<vmem>>, vector<4x32xf32>
    tpu.vector_store %arg18[%c0_247, %c0_248], %324 {strides = array<i32>} : memref<4x64xf32, #tpu.memory_space<vmem>>, vector<4x32xf32>,
    %c0_249 = arith.constant 0 : index
    %c32_250 = arith.constant 32 : index
    %330 = vector.load %arg18[%c0_249, %c32_250] : memref<4x64xf32, #tpu.memory_space<vmem>>, vector<4x32xf32>
    tpu.vector_store %arg18[%c0_249, %c32_250], %326 {strides = array<i32>} : memref<4x64xf32, #tpu.memory_space<vmem>>, vector<4x32xf32>,
    %c0_251 = arith.constant 0 : index
    %c0_252 = arith.constant 0 : index
    %331 = vector.load %arg18[%c0_251, %c0_252] : memref<4x64xf32, #tpu.memory_space<vmem>>, vector<4x64xf32>
    %c1_253 = arith.constant 1 : index
    %c0_254 = arith.constant 0 : index
    %c0_255 = arith.constant 0 : index
    %332 = vector.load %arg6[%c1_253, %c0_254, %c0_255] : memref<2x64x128xf32, #tpu.memory_space<vmem>>, vector<1x64x128xf32>
    %333 = vector.shape_cast %332 : vector<1x64x128xf32> to vector<64x128xf32>
    %cst_256 = arith.constant dense<0.000000e+00> : vector<4x128xf32>
    %334 = tpu.matmul %331, %333, %cst_256 {dimension_numbers = #tpu.dot_dimension_numbers<[1], [0], [0], [1], [0, 0, 1, 1], [], []>} : vector<4x64xf32>, vector<64x128xf32>, vector<4x128xf32> -> vector<4x128xf32>
    %335 = arith.addf %334, %29 : vector<4x128xf32>
    %336 = math.tanh %335 : vector<4x128xf32>
    %337 = arith.negf %335 : vector<4x128xf32>
    %338 = math.exp %337 : vector<4x128xf32>
    %cst_257 = arith.constant 1.000000e+00 : f32
    %339 = vector.broadcast %cst_257 : f32 to vector<4x128xf32>
    %340 = arith.addf %339, %338 : vector<4x128xf32>
    %341 = arith.divf %339, %340 : vector<4x128xf32>
    %342 = arith.select %21, %336, %341 : vector<4x128xi1>, vector<4x128xf32>
    %343 = vector.extract_strided_slice %342 {offsets = [0, 0], sizes = [4, 32], strides = [1, 1]} : vector<4x128xf32> to vector<4x32xf32>
    %344 = vector.extract_strided_slice %342 {offsets = [0, 32], sizes = [4, 32], strides = [1, 1]} : vector<4x128xf32> to vector<4x32xf32>
    %345 = vector.extract_strided_slice %342 {offsets = [0, 64], sizes = [4, 32], strides = [1, 1]} : vector<4x128xf32> to vector<4x32xf32>
    %346 = vector.extract_strided_slice %342 {offsets = [0, 96], sizes = [4, 32], strides = [1, 1]} : vector<4x128xf32> to vector<4x32xf32>
    %347 = arith.mulf %344, %328 : vector<4x32xf32>
    %348 = arith.mulf %343, %345 : vector<4x32xf32>
    %349 = arith.addf %347, %348 : vector<4x32xf32>
    %350 = math.tanh %349 : vector<4x32xf32>
    %351 = arith.mulf %346, %350 : vector<4x32xf32>
    %c1_258 = arith.constant 1 : index
    %c0_259 = arith.constant 0 : index
    %c0_260 = arith.constant 0 : index
    %352 = vector.load %arg15[%c1_258, %c0_259, %c0_260] : memref<2x4x32xf32, #tpu.memory_space<vmem>>, vector<1x4x32xf32>
    %353 = vector.shape_cast %352 : vector<1x4x32xf32> to vector<4x32xf32>
    %354 = vector.shape_cast %351 : vector<4x32xf32> to vector<1x4x32xf32>
    tpu.vector_store %arg15[%c1_258, %c0_259, %c0_260], %354 {strides = array<i32>} : memref<2x4x32xf32, #tpu.memory_space<vmem>>, vector<1x4x32xf32>,
    %c1_261 = arith.constant 1 : index
    %c0_262 = arith.constant 0 : index
    %c0_263 = arith.constant 0 : index
    %355 = vector.load %arg16[%c1_261, %c0_262, %c0_263] : memref<2x4x32xf32, #tpu.memory_space<vmem>>, vector<1x4x32xf32>
    %356 = vector.shape_cast %355 : vector<1x4x32xf32> to vector<4x32xf32>
    %357 = vector.shape_cast %349 : vector<4x32xf32> to vector<1x4x32xf32>
    tpu.vector_store %arg16[%c1_261, %c0_262, %c0_263], %357 {strides = array<i32>} : memref<2x4x32xf32, #tpu.memory_space<vmem>>, vector<1x4x32xf32>,
    %c1_264 = arith.constant 1 : index
    %c0_265 = arith.constant 0 : index
    %c0_266 = arith.constant 0 : index
    %358 = vector.load %arg8[%c1_264, %c0_265, %c0_266] : memref<2x32x32xf32, #tpu.memory_space<vmem>>, vector<1x32x32xf32>
    %359 = vector.shape_cast %358 : vector<1x32x32xf32> to vector<32x32xf32>
    %cst_267 = arith.constant dense<0.000000e+00> : vector<4x32xf32>
    %360 = tpu.matmul %351, %359, %cst_267 {dimension_numbers = #tpu.dot_dimension_numbers<[1], [0], [0], [1], [0, 0, 1, 1], [], []>} : vector<4x32xf32>, vector<32x32xf32>, vector<4x32xf32> -> vector<4x32xf32>
    %361 = arith.addf %360, %37 : vector<4x32xf32>
    %362 = arith.addf %324, %361 : vector<4x32xf32>
    %cst_268 = arith.constant 0.000000e+00 : f32
    %363 = vector.broadcast %cst_268 : f32 to vector<4x32xf32>
    %364 = arith.maximumf %362, %363 : vector<4x32xf32>
    %c12_269 = arith.constant 12 : index
    %c0_270 = arith.constant 0 : index
    %365 = vector.load %arg17[%c12_269, %c0_270] : memref<32x32xf32, #tpu.memory_space<vmem>>, vector<4x32xf32>
    tpu.vector_store %arg17[%c12_269, %c0_270], %364 {strides = array<i32>} : memref<32x32xf32, #tpu.memory_space<vmem>>, vector<4x32xf32>,
    %c16 = arith.constant 16 : index
    %c0_271 = arith.constant 0 : index
    %366 = vector.load %arg17[%c16, %c0_271] : memref<32x32xf32, #tpu.memory_space<vmem>>, vector<4x32xf32>
    %c0_272 = arith.constant 0 : index
    %c0_273 = arith.constant 0 : index
    %c0_274 = arith.constant 0 : index
    %367 = vector.load %arg15[%c0_272, %c0_273, %c0_274] : memref<2x4x32xf32, #tpu.memory_space<vmem>>, vector<1x4x32xf32>
    %368 = vector.shape_cast %367 : vector<1x4x32xf32> to vector<4x32xf32>
    %c0_275 = arith.constant 0 : index
    %c0_276 = arith.constant 0 : index
    %c0_277 = arith.constant 0 : index
    %369 = vector.load %arg16[%c0_275, %c0_276, %c0_277] : memref<2x4x32xf32, #tpu.memory_space<vmem>>, vector<1x4x32xf32>
    %370 = vector.shape_cast %369 : vector<1x4x32xf32> to vector<4x32xf32>
    %c0_278 = arith.constant 0 : index
    %c0_279 = arith.constant 0 : index
    %371 = vector.load %arg18[%c0_278, %c0_279] : memref<4x64xf32, #tpu.memory_space<vmem>>, vector<4x32xf32>
    tpu.vector_store %arg18[%c0_278, %c0_279], %366 {strides = array<i32>} : memref<4x64xf32, #tpu.memory_space<vmem>>, vector<4x32xf32>,
    %c0_280 = arith.constant 0 : index
    %c32_281 = arith.constant 32 : index
    %372 = vector.load %arg18[%c0_280, %c32_281] : memref<4x64xf32, #tpu.memory_space<vmem>>, vector<4x32xf32>
    tpu.vector_store %arg18[%c0_280, %c32_281], %368 {strides = array<i32>} : memref<4x64xf32, #tpu.memory_space<vmem>>, vector<4x32xf32>,
    %c0_282 = arith.constant 0 : index
    %c0_283 = arith.constant 0 : index
    %373 = vector.load %arg18[%c0_282, %c0_283] : memref<4x64xf32, #tpu.memory_space<vmem>>, vector<4x64xf32>
    %c0_284 = arith.constant 0 : index
    %c0_285 = arith.constant 0 : index
    %c0_286 = arith.constant 0 : index
    %374 = vector.load %arg6[%c0_284, %c0_285, %c0_286] : memref<2x64x128xf32, #tpu.memory_space<vmem>>, vector<1x64x128xf32>
    %375 = vector.shape_cast %374 : vector<1x64x128xf32> to vector<64x128xf32>
    %cst_287 = arith.constant dense<0.000000e+00> : vector<4x128xf32>
    %376 = tpu.matmul %373, %375, %cst_287 {dimension_numbers = #tpu.dot_dimension_numbers<[1], [0], [0], [1], [0, 0, 1, 1], [], []>} : vector<4x64xf32>, vector<64x128xf32>, vector<4x128xf32> -> vector<4x128xf32>
    %377 = arith.addf %376, %25 : vector<4x128xf32>
    %378 = math.tanh %377 : vector<4x128xf32>
    %379 = arith.negf %377 : vector<4x128xf32>
    %380 = math.exp %379 : vector<4x128xf32>
    %cst_288 = arith.constant 1.000000e+00 : f32
    %381 = vector.broadcast %cst_288 : f32 to vector<4x128xf32>
    %382 = arith.addf %381, %380 : vector<4x128xf32>
    %383 = arith.divf %381, %382 : vector<4x128xf32>
    %384 = arith.select %21, %378, %383 : vector<4x128xi1>, vector<4x128xf32>
    %385 = vector.extract_strided_slice %384 {offsets = [0, 0], sizes = [4, 32], strides = [1, 1]} : vector<4x128xf32> to vector<4x32xf32>
    %386 = vector.extract_strided_slice %384 {offsets = [0, 32], sizes = [4, 32], strides = [1, 1]} : vector<4x128xf32> to vector<4x32xf32>
    %387 = vector.extract_strided_slice %384 {offsets = [0, 64], sizes = [4, 32], strides = [1, 1]} : vector<4x128xf32> to vector<4x32xf32>
    %388 = vector.extract_strided_slice %384 {offsets = [0, 96], sizes = [4, 32], strides = [1, 1]} : vector<4x128xf32> to vector<4x32xf32>
    %389 = arith.mulf %386, %370 : vector<4x32xf32>
    %390 = arith.mulf %385, %387 : vector<4x32xf32>
    %391 = arith.addf %389, %390 : vector<4x32xf32>
    %392 = math.tanh %391 : vector<4x32xf32>
    %393 = arith.mulf %388, %392 : vector<4x32xf32>
    %c0_289 = arith.constant 0 : index
    %c0_290 = arith.constant 0 : index
    %c0_291 = arith.constant 0 : index
    %394 = vector.load %arg15[%c0_289, %c0_290, %c0_291] : memref<2x4x32xf32, #tpu.memory_space<vmem>>, vector<1x4x32xf32>
    %395 = vector.shape_cast %394 : vector<1x4x32xf32> to vector<4x32xf32>
    %396 = vector.shape_cast %393 : vector<4x32xf32> to vector<1x4x32xf32>
    tpu.vector_store %arg15[%c0_289, %c0_290, %c0_291], %396 {strides = array<i32>} : memref<2x4x32xf32, #tpu.memory_space<vmem>>, vector<1x4x32xf32>,
    %c0_292 = arith.constant 0 : index
    %c0_293 = arith.constant 0 : index
    %c0_294 = arith.constant 0 : index
    %397 = vector.load %arg16[%c0_292, %c0_293, %c0_294] : memref<2x4x32xf32, #tpu.memory_space<vmem>>, vector<1x4x32xf32>
    %398 = vector.shape_cast %397 : vector<1x4x32xf32> to vector<4x32xf32>
    %399 = vector.shape_cast %391 : vector<4x32xf32> to vector<1x4x32xf32>
    tpu.vector_store %arg16[%c0_292, %c0_293, %c0_294], %399 {strides = array<i32>} : memref<2x4x32xf32, #tpu.memory_space<vmem>>, vector<1x4x32xf32>,
    %c0_295 = arith.constant 0 : index
    %c0_296 = arith.constant 0 : index
    %c0_297 = arith.constant 0 : index
    %400 = vector.load %arg8[%c0_295, %c0_296, %c0_297] : memref<2x32x32xf32, #tpu.memory_space<vmem>>, vector<1x32x32xf32>
    %401 = vector.shape_cast %400 : vector<1x32x32xf32> to vector<32x32xf32>
    %cst_298 = arith.constant dense<0.000000e+00> : vector<4x32xf32>
    %402 = tpu.matmul %393, %401, %cst_298 {dimension_numbers = #tpu.dot_dimension_numbers<[1], [0], [0], [1], [0, 0, 1, 1], [], []>} : vector<4x32xf32>, vector<32x32xf32>, vector<4x32xf32> -> vector<4x32xf32>
    %403 = arith.addf %402, %33 : vector<4x32xf32>
    %404 = arith.addf %366, %403 : vector<4x32xf32>
    %cst_299 = arith.constant 0.000000e+00 : f32
    %405 = vector.broadcast %cst_299 : f32 to vector<4x32xf32>
    %406 = arith.maximumf %404, %405 : vector<4x32xf32>
    %c1_300 = arith.constant 1 : index
    %c0_301 = arith.constant 0 : index
    %c0_302 = arith.constant 0 : index
    %407 = vector.load %arg15[%c1_300, %c0_301, %c0_302] : memref<2x4x32xf32, #tpu.memory_space<vmem>>, vector<1x4x32xf32>
    %408 = vector.shape_cast %407 : vector<1x4x32xf32> to vector<4x32xf32>
    %c1_303 = arith.constant 1 : index
    %c0_304 = arith.constant 0 : index
    %c0_305 = arith.constant 0 : index
    %409 = vector.load %arg16[%c1_303, %c0_304, %c0_305] : memref<2x4x32xf32, #tpu.memory_space<vmem>>, vector<1x4x32xf32>
    %410 = vector.shape_cast %409 : vector<1x4x32xf32> to vector<4x32xf32>
    %c0_306 = arith.constant 0 : index
    %c0_307 = arith.constant 0 : index
    %411 = vector.load %arg18[%c0_306, %c0_307] : memref<4x64xf32, #tpu.memory_space<vmem>>, vector<4x32xf32>
    tpu.vector_store %arg18[%c0_306, %c0_307], %406 {strides = array<i32>} : memref<4x64xf32, #tpu.memory_space<vmem>>, vector<4x32xf32>,
    %c0_308 = arith.constant 0 : index
    %c32_309 = arith.constant 32 : index
    %412 = vector.load %arg18[%c0_308, %c32_309] : memref<4x64xf32, #tpu.memory_space<vmem>>, vector<4x32xf32>
    tpu.vector_store %arg18[%c0_308, %c32_309], %408 {strides = array<i32>} : memref<4x64xf32, #tpu.memory_space<vmem>>, vector<4x32xf32>,
    %c0_310 = arith.constant 0 : index
    %c0_311 = arith.constant 0 : index
    %413 = vector.load %arg18[%c0_310, %c0_311] : memref<4x64xf32, #tpu.memory_space<vmem>>, vector<4x64xf32>
    %c1_312 = arith.constant 1 : index
    %c0_313 = arith.constant 0 : index
    %c0_314 = arith.constant 0 : index
    %414 = vector.load %arg6[%c1_312, %c0_313, %c0_314] : memref<2x64x128xf32, #tpu.memory_space<vmem>>, vector<1x64x128xf32>
    %415 = vector.shape_cast %414 : vector<1x64x128xf32> to vector<64x128xf32>
    %cst_315 = arith.constant dense<0.000000e+00> : vector<4x128xf32>
    %416 = tpu.matmul %413, %415, %cst_315 {dimension_numbers = #tpu.dot_dimension_numbers<[1], [0], [0], [1], [0, 0, 1, 1], [], []>} : vector<4x64xf32>, vector<64x128xf32>, vector<4x128xf32> -> vector<4x128xf32>
    %417 = arith.addf %416, %29 : vector<4x128xf32>
    %418 = math.tanh %417 : vector<4x128xf32>
    %419 = arith.negf %417 : vector<4x128xf32>
    %420 = math.exp %419 : vector<4x128xf32>
    %cst_316 = arith.constant 1.000000e+00 : f32
    %421 = vector.broadcast %cst_316 : f32 to vector<4x128xf32>
    %422 = arith.addf %421, %420 : vector<4x128xf32>
    %423 = arith.divf %421, %422 : vector<4x128xf32>
    %424 = arith.select %21, %418, %423 : vector<4x128xi1>, vector<4x128xf32>
    %425 = vector.extract_strided_slice %424 {offsets = [0, 0], sizes = [4, 32], strides = [1, 1]} : vector<4x128xf32> to vector<4x32xf32>
    %426 = vector.extract_strided_slice %424 {offsets = [0, 32], sizes = [4, 32], strides = [1, 1]} : vector<4x128xf32> to vector<4x32xf32>
    %427 = vector.extract_strided_slice %424 {offsets = [0, 64], sizes = [4, 32], strides = [1, 1]} : vector<4x128xf32> to vector<4x32xf32>
    %428 = vector.extract_strided_slice %424 {offsets = [0, 96], sizes = [4, 32], strides = [1, 1]} : vector<4x128xf32> to vector<4x32xf32>
    %429 = arith.mulf %426, %410 : vector<4x32xf32>
    %430 = arith.mulf %425, %427 : vector<4x32xf32>
    %431 = arith.addf %429, %430 : vector<4x32xf32>
    %432 = math.tanh %431 : vector<4x32xf32>
    %433 = arith.mulf %428, %432 : vector<4x32xf32>
    %c1_317 = arith.constant 1 : index
    %c0_318 = arith.constant 0 : index
    %c0_319 = arith.constant 0 : index
    %434 = vector.load %arg15[%c1_317, %c0_318, %c0_319] : memref<2x4x32xf32, #tpu.memory_space<vmem>>, vector<1x4x32xf32>
    %435 = vector.shape_cast %434 : vector<1x4x32xf32> to vector<4x32xf32>
    %436 = vector.shape_cast %433 : vector<4x32xf32> to vector<1x4x32xf32>
    tpu.vector_store %arg15[%c1_317, %c0_318, %c0_319], %436 {strides = array<i32>} : memref<2x4x32xf32, #tpu.memory_space<vmem>>, vector<1x4x32xf32>,
    %c1_320 = arith.constant 1 : index
    %c0_321 = arith.constant 0 : index
    %c0_322 = arith.constant 0 : index
    %437 = vector.load %arg16[%c1_320, %c0_321, %c0_322] : memref<2x4x32xf32, #tpu.memory_space<vmem>>, vector<1x4x32xf32>
    %438 = vector.shape_cast %437 : vector<1x4x32xf32> to vector<4x32xf32>
    %439 = vector.shape_cast %431 : vector<4x32xf32> to vector<1x4x32xf32>
    tpu.vector_store %arg16[%c1_320, %c0_321, %c0_322], %439 {strides = array<i32>} : memref<2x4x32xf32, #tpu.memory_space<vmem>>, vector<1x4x32xf32>,
    %c1_323 = arith.constant 1 : index
    %c0_324 = arith.constant 0 : index
    %c0_325 = arith.constant 0 : index
    %440 = vector.load %arg8[%c1_323, %c0_324, %c0_325] : memref<2x32x32xf32, #tpu.memory_space<vmem>>, vector<1x32x32xf32>
    %441 = vector.shape_cast %440 : vector<1x32x32xf32> to vector<32x32xf32>
    %cst_326 = arith.constant dense<0.000000e+00> : vector<4x32xf32>
    %442 = tpu.matmul %433, %441, %cst_326 {dimension_numbers = #tpu.dot_dimension_numbers<[1], [0], [0], [1], [0, 0, 1, 1], [], []>} : vector<4x32xf32>, vector<32x32xf32>, vector<4x32xf32> -> vector<4x32xf32>
    %443 = arith.addf %442, %37 : vector<4x32xf32>
    %444 = arith.addf %406, %443 : vector<4x32xf32>
    %cst_327 = arith.constant 0.000000e+00 : f32
    %445 = vector.broadcast %cst_327 : f32 to vector<4x32xf32>
    %446 = arith.maximumf %444, %445 : vector<4x32xf32>
    %c16_328 = arith.constant 16 : index
    %c0_329 = arith.constant 0 : index
    %447 = vector.load %arg17[%c16_328, %c0_329] : memref<32x32xf32, #tpu.memory_space<vmem>>, vector<4x32xf32>
    tpu.vector_store %arg17[%c16_328, %c0_329], %446 {strides = array<i32>} : memref<32x32xf32, #tpu.memory_space<vmem>>, vector<4x32xf32>,
    %c20 = arith.constant 20 : index
    %c0_330 = arith.constant 0 : index
    %448 = vector.load %arg17[%c20, %c0_330] : memref<32x32xf32, #tpu.memory_space<vmem>>, vector<4x32xf32>
    %c0_331 = arith.constant 0 : index
    %c0_332 = arith.constant 0 : index
    %c0_333 = arith.constant 0 : index
    %449 = vector.load %arg15[%c0_331, %c0_332, %c0_333] : memref<2x4x32xf32, #tpu.memory_space<vmem>>, vector<1x4x32xf32>
    %450 = vector.shape_cast %449 : vector<1x4x32xf32> to vector<4x32xf32>
    %c0_334 = arith.constant 0 : index
    %c0_335 = arith.constant 0 : index
    %c0_336 = arith.constant 0 : index
    %451 = vector.load %arg16[%c0_334, %c0_335, %c0_336] : memref<2x4x32xf32, #tpu.memory_space<vmem>>, vector<1x4x32xf32>
    %452 = vector.shape_cast %451 : vector<1x4x32xf32> to vector<4x32xf32>
    %c0_337 = arith.constant 0 : index
    %c0_338 = arith.constant 0 : index
    %453 = vector.load %arg18[%c0_337, %c0_338] : memref<4x64xf32, #tpu.memory_space<vmem>>, vector<4x32xf32>
    tpu.vector_store %arg18[%c0_337, %c0_338], %448 {strides = array<i32>} : memref<4x64xf32, #tpu.memory_space<vmem>>, vector<4x32xf32>,
    %c0_339 = arith.constant 0 : index
    %c32_340 = arith.constant 32 : index
    %454 = vector.load %arg18[%c0_339, %c32_340] : memref<4x64xf32, #tpu.memory_space<vmem>>, vector<4x32xf32>
    tpu.vector_store %arg18[%c0_339, %c32_340], %450 {strides = array<i32>} : memref<4x64xf32, #tpu.memory_space<vmem>>, vector<4x32xf32>,
    %c0_341 = arith.constant 0 : index
    %c0_342 = arith.constant 0 : index
    %455 = vector.load %arg18[%c0_341, %c0_342] : memref<4x64xf32, #tpu.memory_space<vmem>>, vector<4x64xf32>
    %c0_343 = arith.constant 0 : index
    %c0_344 = arith.constant 0 : index
    %c0_345 = arith.constant 0 : index
    %456 = vector.load %arg6[%c0_343, %c0_344, %c0_345] : memref<2x64x128xf32, #tpu.memory_space<vmem>>, vector<1x64x128xf32>
    %457 = vector.shape_cast %456 : vector<1x64x128xf32> to vector<64x128xf32>
    %cst_346 = arith.constant dense<0.000000e+00> : vector<4x128xf32>
    %458 = tpu.matmul %455, %457, %cst_346 {dimension_numbers = #tpu.dot_dimension_numbers<[1], [0], [0], [1], [0, 0, 1, 1], [], []>} : vector<4x64xf32>, vector<64x128xf32>, vector<4x128xf32> -> vector<4x128xf32>
    %459 = arith.addf %458, %25 : vector<4x128xf32>
    %460 = math.tanh %459 : vector<4x128xf32>
    %461 = arith.negf %459 : vector<4x128xf32>
    %462 = math.exp %461 : vector<4x128xf32>
    %cst_347 = arith.constant 1.000000e+00 : f32
    %463 = vector.broadcast %cst_347 : f32 to vector<4x128xf32>
    %464 = arith.addf %463, %462 : vector<4x128xf32>
    %465 = arith.divf %463, %464 : vector<4x128xf32>
    %466 = arith.select %21, %460, %465 : vector<4x128xi1>, vector<4x128xf32>
    %467 = vector.extract_strided_slice %466 {offsets = [0, 0], sizes = [4, 32], strides = [1, 1]} : vector<4x128xf32> to vector<4x32xf32>
    %468 = vector.extract_strided_slice %466 {offsets = [0, 32], sizes = [4, 32], strides = [1, 1]} : vector<4x128xf32> to vector<4x32xf32>
    %469 = vector.extract_strided_slice %466 {offsets = [0, 64], sizes = [4, 32], strides = [1, 1]} : vector<4x128xf32> to vector<4x32xf32>
    %470 = vector.extract_strided_slice %466 {offsets = [0, 96], sizes = [4, 32], strides = [1, 1]} : vector<4x128xf32> to vector<4x32xf32>
    %471 = arith.mulf %468, %452 : vector<4x32xf32>
    %472 = arith.mulf %467, %469 : vector<4x32xf32>
    %473 = arith.addf %471, %472 : vector<4x32xf32>
    %474 = math.tanh %473 : vector<4x32xf32>
    %475 = arith.mulf %470, %474 : vector<4x32xf32>
    %c0_348 = arith.constant 0 : index
    %c0_349 = arith.constant 0 : index
    %c0_350 = arith.constant 0 : index
    %476 = vector.load %arg15[%c0_348, %c0_349, %c0_350] : memref<2x4x32xf32, #tpu.memory_space<vmem>>, vector<1x4x32xf32>
    %477 = vector.shape_cast %476 : vector<1x4x32xf32> to vector<4x32xf32>
    %478 = vector.shape_cast %475 : vector<4x32xf32> to vector<1x4x32xf32>
    tpu.vector_store %arg15[%c0_348, %c0_349, %c0_350], %478 {strides = array<i32>} : memref<2x4x32xf32, #tpu.memory_space<vmem>>, vector<1x4x32xf32>,
    %c0_351 = arith.constant 0 : index
    %c0_352 = arith.constant 0 : index
    %c0_353 = arith.constant 0 : index
    %479 = vector.load %arg16[%c0_351, %c0_352, %c0_353] : memref<2x4x32xf32, #tpu.memory_space<vmem>>, vector<1x4x32xf32>
    %480 = vector.shape_cast %479 : vector<1x4x32xf32> to vector<4x32xf32>
    %481 = vector.shape_cast %473 : vector<4x32xf32> to vector<1x4x32xf32>
    tpu.vector_store %arg16[%c0_351, %c0_352, %c0_353], %481 {strides = array<i32>} : memref<2x4x32xf32, #tpu.memory_space<vmem>>, vector<1x4x32xf32>,
    %c0_354 = arith.constant 0 : index
    %c0_355 = arith.constant 0 : index
    %c0_356 = arith.constant 0 : index
    %482 = vector.load %arg8[%c0_354, %c0_355, %c0_356] : memref<2x32x32xf32, #tpu.memory_space<vmem>>, vector<1x32x32xf32>
    %483 = vector.shape_cast %482 : vector<1x32x32xf32> to vector<32x32xf32>
    %cst_357 = arith.constant dense<0.000000e+00> : vector<4x32xf32>
    %484 = tpu.matmul %475, %483, %cst_357 {dimension_numbers = #tpu.dot_dimension_numbers<[1], [0], [0], [1], [0, 0, 1, 1], [], []>} : vector<4x32xf32>, vector<32x32xf32>, vector<4x32xf32> -> vector<4x32xf32>
    %485 = arith.addf %484, %33 : vector<4x32xf32>
    %486 = arith.addf %448, %485 : vector<4x32xf32>
    %cst_358 = arith.constant 0.000000e+00 : f32
    %487 = vector.broadcast %cst_358 : f32 to vector<4x32xf32>
    %488 = arith.maximumf %486, %487 : vector<4x32xf32>
    %c1_359 = arith.constant 1 : index
    %c0_360 = arith.constant 0 : index
    %c0_361 = arith.constant 0 : index
    %489 = vector.load %arg15[%c1_359, %c0_360, %c0_361] : memref<2x4x32xf32, #tpu.memory_space<vmem>>, vector<1x4x32xf32>
    %490 = vector.shape_cast %489 : vector<1x4x32xf32> to vector<4x32xf32>
    %c1_362 = arith.constant 1 : index
    %c0_363 = arith.constant 0 : index
    %c0_364 = arith.constant 0 : index
    %491 = vector.load %arg16[%c1_362, %c0_363, %c0_364] : memref<2x4x32xf32, #tpu.memory_space<vmem>>, vector<1x4x32xf32>
    %492 = vector.shape_cast %491 : vector<1x4x32xf32> to vector<4x32xf32>
    %c0_365 = arith.constant 0 : index
    %c0_366 = arith.constant 0 : index
    %493 = vector.load %arg18[%c0_365, %c0_366] : memref<4x64xf32, #tpu.memory_space<vmem>>, vector<4x32xf32>
    tpu.vector_store %arg18[%c0_365, %c0_366], %488 {strides = array<i32>} : memref<4x64xf32, #tpu.memory_space<vmem>>, vector<4x32xf32>,
    %c0_367 = arith.constant 0 : index
    %c32_368 = arith.constant 32 : index
    %494 = vector.load %arg18[%c0_367, %c32_368] : memref<4x64xf32, #tpu.memory_space<vmem>>, vector<4x32xf32>
    tpu.vector_store %arg18[%c0_367, %c32_368], %490 {strides = array<i32>} : memref<4x64xf32, #tpu.memory_space<vmem>>, vector<4x32xf32>,
    %c0_369 = arith.constant 0 : index
    %c0_370 = arith.constant 0 : index
    %495 = vector.load %arg18[%c0_369, %c0_370] : memref<4x64xf32, #tpu.memory_space<vmem>>, vector<4x64xf32>
    %c1_371 = arith.constant 1 : index
    %c0_372 = arith.constant 0 : index
    %c0_373 = arith.constant 0 : index
    %496 = vector.load %arg6[%c1_371, %c0_372, %c0_373] : memref<2x64x128xf32, #tpu.memory_space<vmem>>, vector<1x64x128xf32>
    %497 = vector.shape_cast %496 : vector<1x64x128xf32> to vector<64x128xf32>
    %cst_374 = arith.constant dense<0.000000e+00> : vector<4x128xf32>
    %498 = tpu.matmul %495, %497, %cst_374 {dimension_numbers = #tpu.dot_dimension_numbers<[1], [0], [0], [1], [0, 0, 1, 1], [], []>} : vector<4x64xf32>, vector<64x128xf32>, vector<4x128xf32> -> vector<4x128xf32>
    %499 = arith.addf %498, %29 : vector<4x128xf32>
    %500 = math.tanh %499 : vector<4x128xf32>
    %501 = arith.negf %499 : vector<4x128xf32>
    %502 = math.exp %501 : vector<4x128xf32>
    %cst_375 = arith.constant 1.000000e+00 : f32
    %503 = vector.broadcast %cst_375 : f32 to vector<4x128xf32>
    %504 = arith.addf %503, %502 : vector<4x128xf32>
    %505 = arith.divf %503, %504 : vector<4x128xf32>
    %506 = arith.select %21, %500, %505 : vector<4x128xi1>, vector<4x128xf32>
    %507 = vector.extract_strided_slice %506 {offsets = [0, 0], sizes = [4, 32], strides = [1, 1]} : vector<4x128xf32> to vector<4x32xf32>
    %508 = vector.extract_strided_slice %506 {offsets = [0, 32], sizes = [4, 32], strides = [1, 1]} : vector<4x128xf32> to vector<4x32xf32>
    %509 = vector.extract_strided_slice %506 {offsets = [0, 64], sizes = [4, 32], strides = [1, 1]} : vector<4x128xf32> to vector<4x32xf32>
    %510 = vector.extract_strided_slice %506 {offsets = [0, 96], sizes = [4, 32], strides = [1, 1]} : vector<4x128xf32> to vector<4x32xf32>
    %511 = arith.mulf %508, %492 : vector<4x32xf32>
    %512 = arith.mulf %507, %509 : vector<4x32xf32>
    %513 = arith.addf %511, %512 : vector<4x32xf32>
    %514 = math.tanh %513 : vector<4x32xf32>
    %515 = arith.mulf %510, %514 : vector<4x32xf32>
    %c1_376 = arith.constant 1 : index
    %c0_377 = arith.constant 0 : index
    %c0_378 = arith.constant 0 : index
    %516 = vector.load %arg15[%c1_376, %c0_377, %c0_378] : memref<2x4x32xf32, #tpu.memory_space<vmem>>, vector<1x4x32xf32>
    %517 = vector.shape_cast %516 : vector<1x4x32xf32> to vector<4x32xf32>
    %518 = vector.shape_cast %515 : vector<4x32xf32> to vector<1x4x32xf32>
    tpu.vector_store %arg15[%c1_376, %c0_377, %c0_378], %518 {strides = array<i32>} : memref<2x4x32xf32, #tpu.memory_space<vmem>>, vector<1x4x32xf32>,
    %c1_379 = arith.constant 1 : index
    %c0_380 = arith.constant 0 : index
    %c0_381 = arith.constant 0 : index
    %519 = vector.load %arg16[%c1_379, %c0_380, %c0_381] : memref<2x4x32xf32, #tpu.memory_space<vmem>>, vector<1x4x32xf32>
    %520 = vector.shape_cast %519 : vector<1x4x32xf32> to vector<4x32xf32>
    %521 = vector.shape_cast %513 : vector<4x32xf32> to vector<1x4x32xf32>
    tpu.vector_store %arg16[%c1_379, %c0_380, %c0_381], %521 {strides = array<i32>} : memref<2x4x32xf32, #tpu.memory_space<vmem>>, vector<1x4x32xf32>,
    %c1_382 = arith.constant 1 : index
    %c0_383 = arith.constant 0 : index
    %c0_384 = arith.constant 0 : index
    %522 = vector.load %arg8[%c1_382, %c0_383, %c0_384] : memref<2x32x32xf32, #tpu.memory_space<vmem>>, vector<1x32x32xf32>
    %523 = vector.shape_cast %522 : vector<1x32x32xf32> to vector<32x32xf32>
    %cst_385 = arith.constant dense<0.000000e+00> : vector<4x32xf32>
    %524 = tpu.matmul %515, %523, %cst_385 {dimension_numbers = #tpu.dot_dimension_numbers<[1], [0], [0], [1], [0, 0, 1, 1], [], []>} : vector<4x32xf32>, vector<32x32xf32>, vector<4x32xf32> -> vector<4x32xf32>
    %525 = arith.addf %524, %37 : vector<4x32xf32>
    %526 = arith.addf %488, %525 : vector<4x32xf32>
    %cst_386 = arith.constant 0.000000e+00 : f32
    %527 = vector.broadcast %cst_386 : f32 to vector<4x32xf32>
    %528 = arith.maximumf %526, %527 : vector<4x32xf32>
    %c20_387 = arith.constant 20 : index
    %c0_388 = arith.constant 0 : index
    %529 = vector.load %arg17[%c20_387, %c0_388] : memref<32x32xf32, #tpu.memory_space<vmem>>, vector<4x32xf32>
    tpu.vector_store %arg17[%c20_387, %c0_388], %528 {strides = array<i32>} : memref<32x32xf32, #tpu.memory_space<vmem>>, vector<4x32xf32>,
    %c24 = arith.constant 24 : index
    %c0_389 = arith.constant 0 : index
    %530 = vector.load %arg17[%c24, %c0_389] : memref<32x32xf32, #tpu.memory_space<vmem>>, vector<4x32xf32>
    %c0_390 = arith.constant 0 : index
    %c0_391 = arith.constant 0 : index
    %c0_392 = arith.constant 0 : index
    %531 = vector.load %arg15[%c0_390, %c0_391, %c0_392] : memref<2x4x32xf32, #tpu.memory_space<vmem>>, vector<1x4x32xf32>
    %532 = vector.shape_cast %531 : vector<1x4x32xf32> to vector<4x32xf32>
    %c0_393 = arith.constant 0 : index
    %c0_394 = arith.constant 0 : index
    %c0_395 = arith.constant 0 : index
    %533 = vector.load %arg16[%c0_393, %c0_394, %c0_395] : memref<2x4x32xf32, #tpu.memory_space<vmem>>, vector<1x4x32xf32>
    %534 = vector.shape_cast %533 : vector<1x4x32xf32> to vector<4x32xf32>
    %c0_396 = arith.constant 0 : index
    %c0_397 = arith.constant 0 : index
    %535 = vector.load %arg18[%c0_396, %c0_397] : memref<4x64xf32, #tpu.memory_space<vmem>>, vector<4x32xf32>
    tpu.vector_store %arg18[%c0_396, %c0_397], %530 {strides = array<i32>} : memref<4x64xf32, #tpu.memory_space<vmem>>, vector<4x32xf32>,
    %c0_398 = arith.constant 0 : index
    %c32_399 = arith.constant 32 : index
    %536 = vector.load %arg18[%c0_398, %c32_399] : memref<4x64xf32, #tpu.memory_space<vmem>>, vector<4x32xf32>
    tpu.vector_store %arg18[%c0_398, %c32_399], %532 {strides = array<i32>} : memref<4x64xf32, #tpu.memory_space<vmem>>, vector<4x32xf32>,
    %c0_400 = arith.constant 0 : index
    %c0_401 = arith.constant 0 : index
    %537 = vector.load %arg18[%c0_400, %c0_401] : memref<4x64xf32, #tpu.memory_space<vmem>>, vector<4x64xf32>
    %c0_402 = arith.constant 0 : index
    %c0_403 = arith.constant 0 : index
    %c0_404 = arith.constant 0 : index
    %538 = vector.load %arg6[%c0_402, %c0_403, %c0_404] : memref<2x64x128xf32, #tpu.memory_space<vmem>>, vector<1x64x128xf32>
    %539 = vector.shape_cast %538 : vector<1x64x128xf32> to vector<64x128xf32>
    %cst_405 = arith.constant dense<0.000000e+00> : vector<4x128xf32>
    %540 = tpu.matmul %537, %539, %cst_405 {dimension_numbers = #tpu.dot_dimension_numbers<[1], [0], [0], [1], [0, 0, 1, 1], [], []>} : vector<4x64xf32>, vector<64x128xf32>, vector<4x128xf32> -> vector<4x128xf32>
    %541 = arith.addf %540, %25 : vector<4x128xf32>
    %542 = math.tanh %541 : vector<4x128xf32>
    %543 = arith.negf %541 : vector<4x128xf32>
    %544 = math.exp %543 : vector<4x128xf32>
    %cst_406 = arith.constant 1.000000e+00 : f32
    %545 = vector.broadcast %cst_406 : f32 to vector<4x128xf32>
    %546 = arith.addf %545, %544 : vector<4x128xf32>
    %547 = arith.divf %545, %546 : vector<4x128xf32>
    %548 = arith.select %21, %542, %547 : vector<4x128xi1>, vector<4x128xf32>
    %549 = vector.extract_strided_slice %548 {offsets = [0, 0], sizes = [4, 32], strides = [1, 1]} : vector<4x128xf32> to vector<4x32xf32>
    %550 = vector.extract_strided_slice %548 {offsets = [0, 32], sizes = [4, 32], strides = [1, 1]} : vector<4x128xf32> to vector<4x32xf32>
    %551 = vector.extract_strided_slice %548 {offsets = [0, 64], sizes = [4, 32], strides = [1, 1]} : vector<4x128xf32> to vector<4x32xf32>
    %552 = vector.extract_strided_slice %548 {offsets = [0, 96], sizes = [4, 32], strides = [1, 1]} : vector<4x128xf32> to vector<4x32xf32>
    %553 = arith.mulf %550, %534 : vector<4x32xf32>
    %554 = arith.mulf %549, %551 : vector<4x32xf32>
    %555 = arith.addf %553, %554 : vector<4x32xf32>
    %556 = math.tanh %555 : vector<4x32xf32>
    %557 = arith.mulf %552, %556 : vector<4x32xf32>
    %c0_407 = arith.constant 0 : index
    %c0_408 = arith.constant 0 : index
    %c0_409 = arith.constant 0 : index
    %558 = vector.load %arg15[%c0_407, %c0_408, %c0_409] : memref<2x4x32xf32, #tpu.memory_space<vmem>>, vector<1x4x32xf32>
    %559 = vector.shape_cast %558 : vector<1x4x32xf32> to vector<4x32xf32>
    %560 = vector.shape_cast %557 : vector<4x32xf32> to vector<1x4x32xf32>
    tpu.vector_store %arg15[%c0_407, %c0_408, %c0_409], %560 {strides = array<i32>} : memref<2x4x32xf32, #tpu.memory_space<vmem>>, vector<1x4x32xf32>,
    %c0_410 = arith.constant 0 : index
    %c0_411 = arith.constant 0 : index
    %c0_412 = arith.constant 0 : index
    %561 = vector.load %arg16[%c0_410, %c0_411, %c0_412] : memref<2x4x32xf32, #tpu.memory_space<vmem>>, vector<1x4x32xf32>
    %562 = vector.shape_cast %561 : vector<1x4x32xf32> to vector<4x32xf32>
    %563 = vector.shape_cast %555 : vector<4x32xf32> to vector<1x4x32xf32>
    tpu.vector_store %arg16[%c0_410, %c0_411, %c0_412], %563 {strides = array<i32>} : memref<2x4x32xf32, #tpu.memory_space<vmem>>, vector<1x4x32xf32>,
    %c0_413 = arith.constant 0 : index
    %c0_414 = arith.constant 0 : index
    %c0_415 = arith.constant 0 : index
    %564 = vector.load %arg8[%c0_413, %c0_414, %c0_415] : memref<2x32x32xf32, #tpu.memory_space<vmem>>, vector<1x32x32xf32>
    %565 = vector.shape_cast %564 : vector<1x32x32xf32> to vector<32x32xf32>
    %cst_416 = arith.constant dense<0.000000e+00> : vector<4x32xf32>
    %566 = tpu.matmul %557, %565, %cst_416 {dimension_numbers = #tpu.dot_dimension_numbers<[1], [0], [0], [1], [0, 0, 1, 1], [], []>} : vector<4x32xf32>, vector<32x32xf32>, vector<4x32xf32> -> vector<4x32xf32>
    %567 = arith.addf %566, %33 : vector<4x32xf32>
    %568 = arith.addf %530, %567 : vector<4x32xf32>
    %cst_417 = arith.constant 0.000000e+00 : f32
    %569 = vector.broadcast %cst_417 : f32 to vector<4x32xf32>
    %570 = arith.maximumf %568, %569 : vector<4x32xf32>
    %c1_418 = arith.constant 1 : index
    %c0_419 = arith.constant 0 : index
    %c0_420 = arith.constant 0 : index
    %571 = vector.load %arg15[%c1_418, %c0_419, %c0_420] : memref<2x4x32xf32, #tpu.memory_space<vmem>>, vector<1x4x32xf32>
    %572 = vector.shape_cast %571 : vector<1x4x32xf32> to vector<4x32xf32>
    %c1_421 = arith.constant 1 : index
    %c0_422 = arith.constant 0 : index
    %c0_423 = arith.constant 0 : index
    %573 = vector.load %arg16[%c1_421, %c0_422, %c0_423] : memref<2x4x32xf32, #tpu.memory_space<vmem>>, vector<1x4x32xf32>
    %574 = vector.shape_cast %573 : vector<1x4x32xf32> to vector<4x32xf32>
    %c0_424 = arith.constant 0 : index
    %c0_425 = arith.constant 0 : index
    %575 = vector.load %arg18[%c0_424, %c0_425] : memref<4x64xf32, #tpu.memory_space<vmem>>, vector<4x32xf32>
    tpu.vector_store %arg18[%c0_424, %c0_425], %570 {strides = array<i32>} : memref<4x64xf32, #tpu.memory_space<vmem>>, vector<4x32xf32>,
    %c0_426 = arith.constant 0 : index
    %c32_427 = arith.constant 32 : index
    %576 = vector.load %arg18[%c0_426, %c32_427] : memref<4x64xf32, #tpu.memory_space<vmem>>, vector<4x32xf32>
    tpu.vector_store %arg18[%c0_426, %c32_427], %572 {strides = array<i32>} : memref<4x64xf32, #tpu.memory_space<vmem>>, vector<4x32xf32>,
    %c0_428 = arith.constant 0 : index
    %c0_429 = arith.constant 0 : index
    %577 = vector.load %arg18[%c0_428, %c0_429] : memref<4x64xf32, #tpu.memory_space<vmem>>, vector<4x64xf32>
    %c1_430 = arith.constant 1 : index
    %c0_431 = arith.constant 0 : index
    %c0_432 = arith.constant 0 : index
    %578 = vector.load %arg6[%c1_430, %c0_431, %c0_432] : memref<2x64x128xf32, #tpu.memory_space<vmem>>, vector<1x64x128xf32>
    %579 = vector.shape_cast %578 : vector<1x64x128xf32> to vector<64x128xf32>
    %cst_433 = arith.constant dense<0.000000e+00> : vector<4x128xf32>
    %580 = tpu.matmul %577, %579, %cst_433 {dimension_numbers = #tpu.dot_dimension_numbers<[1], [0], [0], [1], [0, 0, 1, 1], [], []>} : vector<4x64xf32>, vector<64x128xf32>, vector<4x128xf32> -> vector<4x128xf32>
    %581 = arith.addf %580, %29 : vector<4x128xf32>
    %582 = math.tanh %581 : vector<4x128xf32>
    %583 = arith.negf %581 : vector<4x128xf32>
    %584 = math.exp %583 : vector<4x128xf32>
    %cst_434 = arith.constant 1.000000e+00 : f32
    %585 = vector.broadcast %cst_434 : f32 to vector<4x128xf32>
    %586 = arith.addf %585, %584 : vector<4x128xf32>
    %587 = arith.divf %585, %586 : vector<4x128xf32>
    %588 = arith.select %21, %582, %587 : vector<4x128xi1>, vector<4x128xf32>
    %589 = vector.extract_strided_slice %588 {offsets = [0, 0], sizes = [4, 32], strides = [1, 1]} : vector<4x128xf32> to vector<4x32xf32>
    %590 = vector.extract_strided_slice %588 {offsets = [0, 32], sizes = [4, 32], strides = [1, 1]} : vector<4x128xf32> to vector<4x32xf32>
    %591 = vector.extract_strided_slice %588 {offsets = [0, 64], sizes = [4, 32], strides = [1, 1]} : vector<4x128xf32> to vector<4x32xf32>
    %592 = vector.extract_strided_slice %588 {offsets = [0, 96], sizes = [4, 32], strides = [1, 1]} : vector<4x128xf32> to vector<4x32xf32>
    %593 = arith.mulf %590, %574 : vector<4x32xf32>
    %594 = arith.mulf %589, %591 : vector<4x32xf32>
    %595 = arith.addf %593, %594 : vector<4x32xf32>
    %596 = math.tanh %595 : vector<4x32xf32>
    %597 = arith.mulf %592, %596 : vector<4x32xf32>
    %c1_435 = arith.constant 1 : index
    %c0_436 = arith.constant 0 : index
    %c0_437 = arith.constant 0 : index
    %598 = vector.load %arg15[%c1_435, %c0_436, %c0_437] : memref<2x4x32xf32, #tpu.memory_space<vmem>>, vector<1x4x32xf32>
    %599 = vector.shape_cast %598 : vector<1x4x32xf32> to vector<4x32xf32>
    %600 = vector.shape_cast %597 : vector<4x32xf32> to vector<1x4x32xf32>
    tpu.vector_store %arg15[%c1_435, %c0_436, %c0_437], %600 {strides = array<i32>} : memref<2x4x32xf32, #tpu.memory_space<vmem>>, vector<1x4x32xf32>,
    %c1_438 = arith.constant 1 : index
    %c0_439 = arith.constant 0 : index
    %c0_440 = arith.constant 0 : index
    %601 = vector.load %arg16[%c1_438, %c0_439, %c0_440] : memref<2x4x32xf32, #tpu.memory_space<vmem>>, vector<1x4x32xf32>
    %602 = vector.shape_cast %601 : vector<1x4x32xf32> to vector<4x32xf32>
    %603 = vector.shape_cast %595 : vector<4x32xf32> to vector<1x4x32xf32>
    tpu.vector_store %arg16[%c1_438, %c0_439, %c0_440], %603 {strides = array<i32>} : memref<2x4x32xf32, #tpu.memory_space<vmem>>, vector<1x4x32xf32>,
    %c1_441 = arith.constant 1 : index
    %c0_442 = arith.constant 0 : index
    %c0_443 = arith.constant 0 : index
    %604 = vector.load %arg8[%c1_441, %c0_442, %c0_443] : memref<2x32x32xf32, #tpu.memory_space<vmem>>, vector<1x32x32xf32>
    %605 = vector.shape_cast %604 : vector<1x32x32xf32> to vector<32x32xf32>
    %cst_444 = arith.constant dense<0.000000e+00> : vector<4x32xf32>
    %606 = tpu.matmul %597, %605, %cst_444 {dimension_numbers = #tpu.dot_dimension_numbers<[1], [0], [0], [1], [0, 0, 1, 1], [], []>} : vector<4x32xf32>, vector<32x32xf32>, vector<4x32xf32> -> vector<4x32xf32>
    %607 = arith.addf %606, %37 : vector<4x32xf32>
    %608 = arith.addf %570, %607 : vector<4x32xf32>
    %cst_445 = arith.constant 0.000000e+00 : f32
    %609 = vector.broadcast %cst_445 : f32 to vector<4x32xf32>
    %610 = arith.maximumf %608, %609 : vector<4x32xf32>
    %c24_446 = arith.constant 24 : index
    %c0_447 = arith.constant 0 : index
    %611 = vector.load %arg17[%c24_446, %c0_447] : memref<32x32xf32, #tpu.memory_space<vmem>>, vector<4x32xf32>
    tpu.vector_store %arg17[%c24_446, %c0_447], %610 {strides = array<i32>} : memref<32x32xf32, #tpu.memory_space<vmem>>, vector<4x32xf32>,
    %c28 = arith.constant 28 : index
    %c0_448 = arith.constant 0 : index
    %612 = vector.load %arg17[%c28, %c0_448] : memref<32x32xf32, #tpu.memory_space<vmem>>, vector<4x32xf32>
    %c0_449 = arith.constant 0 : index
    %c0_450 = arith.constant 0 : index
    %c0_451 = arith.constant 0 : index
    %613 = vector.load %arg15[%c0_449, %c0_450, %c0_451] : memref<2x4x32xf32, #tpu.memory_space<vmem>>, vector<1x4x32xf32>
    %614 = vector.shape_cast %613 : vector<1x4x32xf32> to vector<4x32xf32>
    %c0_452 = arith.constant 0 : index
    %c0_453 = arith.constant 0 : index
    %c0_454 = arith.constant 0 : index
    %615 = vector.load %arg16[%c0_452, %c0_453, %c0_454] : memref<2x4x32xf32, #tpu.memory_space<vmem>>, vector<1x4x32xf32>
    %616 = vector.shape_cast %615 : vector<1x4x32xf32> to vector<4x32xf32>
    %c0_455 = arith.constant 0 : index
    %c0_456 = arith.constant 0 : index
    %617 = vector.load %arg18[%c0_455, %c0_456] : memref<4x64xf32, #tpu.memory_space<vmem>>, vector<4x32xf32>
    tpu.vector_store %arg18[%c0_455, %c0_456], %612 {strides = array<i32>} : memref<4x64xf32, #tpu.memory_space<vmem>>, vector<4x32xf32>,
    %c0_457 = arith.constant 0 : index
    %c32_458 = arith.constant 32 : index
    %618 = vector.load %arg18[%c0_457, %c32_458] : memref<4x64xf32, #tpu.memory_space<vmem>>, vector<4x32xf32>
    tpu.vector_store %arg18[%c0_457, %c32_458], %614 {strides = array<i32>} : memref<4x64xf32, #tpu.memory_space<vmem>>, vector<4x32xf32>,
    %c0_459 = arith.constant 0 : index
    %c0_460 = arith.constant 0 : index
    %619 = vector.load %arg18[%c0_459, %c0_460] : memref<4x64xf32, #tpu.memory_space<vmem>>, vector<4x64xf32>
    %c0_461 = arith.constant 0 : index
    %c0_462 = arith.constant 0 : index
    %c0_463 = arith.constant 0 : index
    %620 = vector.load %arg6[%c0_461, %c0_462, %c0_463] : memref<2x64x128xf32, #tpu.memory_space<vmem>>, vector<1x64x128xf32>
    %621 = vector.shape_cast %620 : vector<1x64x128xf32> to vector<64x128xf32>
    %cst_464 = arith.constant dense<0.000000e+00> : vector<4x128xf32>
    %622 = tpu.matmul %619, %621, %cst_464 {dimension_numbers = #tpu.dot_dimension_numbers<[1], [0], [0], [1], [0, 0, 1, 1], [], []>} : vector<4x64xf32>, vector<64x128xf32>, vector<4x128xf32> -> vector<4x128xf32>
    %623 = arith.addf %622, %25 : vector<4x128xf32>
    %624 = math.tanh %623 : vector<4x128xf32>
    %625 = arith.negf %623 : vector<4x128xf32>
    %626 = math.exp %625 : vector<4x128xf32>
    %cst_465 = arith.constant 1.000000e+00 : f32
    %627 = vector.broadcast %cst_465 : f32 to vector<4x128xf32>
    %628 = arith.addf %627, %626 : vector<4x128xf32>
    %629 = arith.divf %627, %628 : vector<4x128xf32>
    %630 = arith.select %21, %624, %629 : vector<4x128xi1>, vector<4x128xf32>
    %631 = vector.extract_strided_slice %630 {offsets = [0, 0], sizes = [4, 32], strides = [1, 1]} : vector<4x128xf32> to vector<4x32xf32>
    %632 = vector.extract_strided_slice %630 {offsets = [0, 32], sizes = [4, 32], strides = [1, 1]} : vector<4x128xf32> to vector<4x32xf32>
    %633 = vector.extract_strided_slice %630 {offsets = [0, 64], sizes = [4, 32], strides = [1, 1]} : vector<4x128xf32> to vector<4x32xf32>
    %634 = vector.extract_strided_slice %630 {offsets = [0, 96], sizes = [4, 32], strides = [1, 1]} : vector<4x128xf32> to vector<4x32xf32>
    %635 = arith.mulf %632, %616 : vector<4x32xf32>
    %636 = arith.mulf %631, %633 : vector<4x32xf32>
    %637 = arith.addf %635, %636 : vector<4x32xf32>
    %638 = math.tanh %637 : vector<4x32xf32>
    %639 = arith.mulf %634, %638 : vector<4x32xf32>
    %c0_466 = arith.constant 0 : index
    %c0_467 = arith.constant 0 : index
    %c0_468 = arith.constant 0 : index
    %640 = vector.load %arg15[%c0_466, %c0_467, %c0_468] : memref<2x4x32xf32, #tpu.memory_space<vmem>>, vector<1x4x32xf32>
    %641 = vector.shape_cast %640 : vector<1x4x32xf32> to vector<4x32xf32>
    %642 = vector.shape_cast %639 : vector<4x32xf32> to vector<1x4x32xf32>
    tpu.vector_store %arg15[%c0_466, %c0_467, %c0_468], %642 {strides = array<i32>} : memref<2x4x32xf32, #tpu.memory_space<vmem>>, vector<1x4x32xf32>,
    %c0_469 = arith.constant 0 : index
    %c0_470 = arith.constant 0 : index
    %c0_471 = arith.constant 0 : index
    %643 = vector.load %arg16[%c0_469, %c0_470, %c0_471] : memref<2x4x32xf32, #tpu.memory_space<vmem>>, vector<1x4x32xf32>
    %644 = vector.shape_cast %643 : vector<1x4x32xf32> to vector<4x32xf32>
    %645 = vector.shape_cast %637 : vector<4x32xf32> to vector<1x4x32xf32>
    tpu.vector_store %arg16[%c0_469, %c0_470, %c0_471], %645 {strides = array<i32>} : memref<2x4x32xf32, #tpu.memory_space<vmem>>, vector<1x4x32xf32>,
    %c0_472 = arith.constant 0 : index
    %c0_473 = arith.constant 0 : index
    %c0_474 = arith.constant 0 : index
    %646 = vector.load %arg8[%c0_472, %c0_473, %c0_474] : memref<2x32x32xf32, #tpu.memory_space<vmem>>, vector<1x32x32xf32>
    %647 = vector.shape_cast %646 : vector<1x32x32xf32> to vector<32x32xf32>
    %cst_475 = arith.constant dense<0.000000e+00> : vector<4x32xf32>
    %648 = tpu.matmul %639, %647, %cst_475 {dimension_numbers = #tpu.dot_dimension_numbers<[1], [0], [0], [1], [0, 0, 1, 1], [], []>} : vector<4x32xf32>, vector<32x32xf32>, vector<4x32xf32> -> vector<4x32xf32>
    %649 = arith.addf %648, %33 : vector<4x32xf32>
    %650 = arith.addf %612, %649 : vector<4x32xf32>
    %cst_476 = arith.constant 0.000000e+00 : f32
    %651 = vector.broadcast %cst_476 : f32 to vector<4x32xf32>
    %652 = arith.maximumf %650, %651 : vector<4x32xf32>
    %c1_477 = arith.constant 1 : index
    %c0_478 = arith.constant 0 : index
    %c0_479 = arith.constant 0 : index
    %653 = vector.load %arg15[%c1_477, %c0_478, %c0_479] : memref<2x4x32xf32, #tpu.memory_space<vmem>>, vector<1x4x32xf32>
    %654 = vector.shape_cast %653 : vector<1x4x32xf32> to vector<4x32xf32>
    %c1_480 = arith.constant 1 : index
    %c0_481 = arith.constant 0 : index
    %c0_482 = arith.constant 0 : index
    %655 = vector.load %arg16[%c1_480, %c0_481, %c0_482] : memref<2x4x32xf32, #tpu.memory_space<vmem>>, vector<1x4x32xf32>
    %656 = vector.shape_cast %655 : vector<1x4x32xf32> to vector<4x32xf32>
    %c0_483 = arith.constant 0 : index
    %c0_484 = arith.constant 0 : index
    %657 = vector.load %arg18[%c0_483, %c0_484] : memref<4x64xf32, #tpu.memory_space<vmem>>, vector<4x32xf32>
    tpu.vector_store %arg18[%c0_483, %c0_484], %652 {strides = array<i32>} : memref<4x64xf32, #tpu.memory_space<vmem>>, vector<4x32xf32>,
    %c0_485 = arith.constant 0 : index
    %c32_486 = arith.constant 32 : index
    %658 = vector.load %arg18[%c0_485, %c32_486] : memref<4x64xf32, #tpu.memory_space<vmem>>, vector<4x32xf32>
    tpu.vector_store %arg18[%c0_485, %c32_486], %654 {strides = array<i32>} : memref<4x64xf32, #tpu.memory_space<vmem>>, vector<4x32xf32>,
    %c0_487 = arith.constant 0 : index
    %c0_488 = arith.constant 0 : index
    %659 = vector.load %arg18[%c0_487, %c0_488] : memref<4x64xf32, #tpu.memory_space<vmem>>, vector<4x64xf32>
    %c1_489 = arith.constant 1 : index
    %c0_490 = arith.constant 0 : index
    %c0_491 = arith.constant 0 : index
    %660 = vector.load %arg6[%c1_489, %c0_490, %c0_491] : memref<2x64x128xf32, #tpu.memory_space<vmem>>, vector<1x64x128xf32>
    %661 = vector.shape_cast %660 : vector<1x64x128xf32> to vector<64x128xf32>
    %cst_492 = arith.constant dense<0.000000e+00> : vector<4x128xf32>
    %662 = tpu.matmul %659, %661, %cst_492 {dimension_numbers = #tpu.dot_dimension_numbers<[1], [0], [0], [1], [0, 0, 1, 1], [], []>} : vector<4x64xf32>, vector<64x128xf32>, vector<4x128xf32> -> vector<4x128xf32>
    %663 = arith.addf %662, %29 : vector<4x128xf32>
    %664 = math.tanh %663 : vector<4x128xf32>
    %665 = arith.negf %663 : vector<4x128xf32>
    %666 = math.exp %665 : vector<4x128xf32>
    %cst_493 = arith.constant 1.000000e+00 : f32
    %667 = vector.broadcast %cst_493 : f32 to vector<4x128xf32>
    %668 = arith.addf %667, %666 : vector<4x128xf32>
    %669 = arith.divf %667, %668 : vector<4x128xf32>
    %670 = arith.select %21, %664, %669 : vector<4x128xi1>, vector<4x128xf32>
    %671 = vector.extract_strided_slice %670 {offsets = [0, 0], sizes = [4, 32], strides = [1, 1]} : vector<4x128xf32> to vector<4x32xf32>
    %672 = vector.extract_strided_slice %670 {offsets = [0, 32], sizes = [4, 32], strides = [1, 1]} : vector<4x128xf32> to vector<4x32xf32>
    %673 = vector.extract_strided_slice %670 {offsets = [0, 64], sizes = [4, 32], strides = [1, 1]} : vector<4x128xf32> to vector<4x32xf32>
    %674 = vector.extract_strided_slice %670 {offsets = [0, 96], sizes = [4, 32], strides = [1, 1]} : vector<4x128xf32> to vector<4x32xf32>
    %675 = arith.mulf %672, %656 : vector<4x32xf32>
    %676 = arith.mulf %671, %673 : vector<4x32xf32>
    %677 = arith.addf %675, %676 : vector<4x32xf32>
    %678 = math.tanh %677 : vector<4x32xf32>
    %679 = arith.mulf %674, %678 : vector<4x32xf32>
    %c1_494 = arith.constant 1 : index
    %c0_495 = arith.constant 0 : index
    %c0_496 = arith.constant 0 : index
    %680 = vector.load %arg15[%c1_494, %c0_495, %c0_496] : memref<2x4x32xf32, #tpu.memory_space<vmem>>, vector<1x4x32xf32>
    %681 = vector.shape_cast %680 : vector<1x4x32xf32> to vector<4x32xf32>
    %682 = vector.shape_cast %679 : vector<4x32xf32> to vector<1x4x32xf32>
    tpu.vector_store %arg15[%c1_494, %c0_495, %c0_496], %682 {strides = array<i32>} : memref<2x4x32xf32, #tpu.memory_space<vmem>>, vector<1x4x32xf32>,
    %c1_497 = arith.constant 1 : index
    %c0_498 = arith.constant 0 : index
    %c0_499 = arith.constant 0 : index
    %683 = vector.load %arg16[%c1_497, %c0_498, %c0_499] : memref<2x4x32xf32, #tpu.memory_space<vmem>>, vector<1x4x32xf32>
    %684 = vector.shape_cast %683 : vector<1x4x32xf32> to vector<4x32xf32>
    %685 = vector.shape_cast %677 : vector<4x32xf32> to vector<1x4x32xf32>
    tpu.vector_store %arg16[%c1_497, %c0_498, %c0_499], %685 {strides = array<i32>} : memref<2x4x32xf32, #tpu.memory_space<vmem>>, vector<1x4x32xf32>,
    %c1_500 = arith.constant 1 : index
    %c0_501 = arith.constant 0 : index
    %c0_502 = arith.constant 0 : index
    %686 = vector.load %arg8[%c1_500, %c0_501, %c0_502] : memref<2x32x32xf32, #tpu.memory_space<vmem>>, vector<1x32x32xf32>
    %687 = vector.shape_cast %686 : vector<1x32x32xf32> to vector<32x32xf32>
    %cst_503 = arith.constant dense<0.000000e+00> : vector<4x32xf32>
    %688 = tpu.matmul %679, %687, %cst_503 {dimension_numbers = #tpu.dot_dimension_numbers<[1], [0], [0], [1], [0, 0, 1, 1], [], []>} : vector<4x32xf32>, vector<32x32xf32>, vector<4x32xf32> -> vector<4x32xf32>
    %689 = arith.addf %688, %37 : vector<4x32xf32>
    %690 = arith.addf %652, %689 : vector<4x32xf32>
    %cst_504 = arith.constant 0.000000e+00 : f32
    %691 = vector.broadcast %cst_504 : f32 to vector<4x32xf32>
    %692 = arith.maximumf %690, %691 : vector<4x32xf32>
    %c28_505 = arith.constant 28 : index
    %c0_506 = arith.constant 0 : index
    %693 = vector.load %arg17[%c28_505, %c0_506] : memref<32x32xf32, #tpu.memory_space<vmem>>, vector<4x32xf32>
    tpu.vector_store %arg17[%c28_505, %c0_506], %692 {strides = array<i32>} : memref<32x32xf32, #tpu.memory_space<vmem>>, vector<4x32xf32>,
    %c0_507 = arith.constant 0 : index
    %c0_508 = arith.constant 0 : index
    %694 = vector.load %arg17[%c0_507, %c0_508] : memref<32x32xf32, #tpu.memory_space<vmem>>, vector<32x32xf32>
    %c0_509 = arith.constant 0 : index
    %c0_510 = arith.constant 0 : index
    %695 = vector.load %arg10[%c0_509, %c0_510] : memref<32x1xf32, #tpu.memory_space<vmem>>, vector<32x1xf32>
    %cst_511 = arith.constant dense<0.000000e+00> : vector<32x1xf32>
    %696 = tpu.matmul %694, %695, %cst_511 {dimension_numbers = #tpu.dot_dimension_numbers<[1], [0], [0], [1], [0, 0, 1, 1], [], []>} : vector<32x32xf32>, vector<32x1xf32>, vector<32x1xf32> -> vector<32x1xf32>
    %c0_512 = arith.constant 0 : index
    %c0_513 = arith.constant 0 : index
    %697 = vector.load %arg11[%c0_512, %c0_513] : memref<1x1xf32, #tpu.memory_space<vmem>>, vector<1x1xf32>
    %698 = vector.broadcast %697 : vector<1x1xf32> to vector<32x1xf32>
    %699 = arith.addf %696, %698 : vector<32x1xf32>
    %c0_514 = arith.constant 0 : index
    %c0_515 = arith.constant 0 : index
    %700 = vector.load %arg14[%c0_514, %c0_515] : memref<32x1xf32, #tpu.memory_space<vmem>>, vector<32x1xf32>
    tpu.vector_store %arg14[%c0_514, %c0_515], %699 {strides = array<i32>} : memref<32x1xf32, #tpu.memory_space<vmem>>, vector<32x1xf32>,
    return
  }
  func.func @transform_0(%arg0: i32) -> (i32, i32) {
    %c0_i32 = arith.constant 0 : i32
    %c0_i32_0 = arith.constant 0 : i32
    %c0_i32_1 = arith.constant 0 : i32
    return %c0_i32, %c0_i32_0 : i32, i32
  }
  func.func @transform_1(%arg0: i32) -> (i32, i32) {
    %c0_i32 = arith.constant 0 : i32
    %c0_i32_0 = arith.constant 0 : i32
    %c0_i32_1 = arith.constant 0 : i32
    return %c0_i32, %c0_i32_0 : i32, i32
  }
  func.func @transform_2(%arg0: i32) -> (i32, i32) {
    %c0_i32 = arith.constant 0 : i32
    %c0_i32_0 = arith.constant 0 : i32
    %c0_i32_1 = arith.constant 0 : i32
    return %c0_i32, %c0_i32_0 : i32, i32
  }
  func.func @transform_3(%arg0: i32) -> (i32, i32) {
    %c0_i32 = arith.constant 0 : i32
    %c0_i32_0 = arith.constant 0 : i32
    %c0_i32_1 = arith.constant 0 : i32
    return %c0_i32, %c0_i32_0 : i32, i32
  }
  func.func @transform_4(%arg0: i32) -> (i32, i32) {
    %c0_i32 = arith.constant 0 : i32
    %c0_i32_0 = arith.constant 0 : i32
    %c0_i32_1 = arith.constant 0 : i32
    return %c0_i32, %c0_i32_0 : i32, i32
  }
  func.func @transform_5(%arg0: i32) -> (i32, i32, i32) {
    %c0_i32 = arith.constant 0 : i32
    %c0_i32_0 = arith.constant 0 : i32
    %c0_i32_1 = arith.constant 0 : i32
    %c0_i32_2 = arith.constant 0 : i32
    return %c0_i32, %c0_i32_0, %c0_i32_1 : i32, i32, i32
  }
  func.func @transform_6(%arg0: i32) -> (i32, i32, i32) {
    %c0_i32 = arith.constant 0 : i32
    %c0_i32_0 = arith.constant 0 : i32
    %c0_i32_1 = arith.constant 0 : i32
    %c0_i32_2 = arith.constant 0 : i32
    return %c0_i32, %c0_i32_0, %c0_i32_1 : i32, i32, i32
  }
  func.func @transform_7(%arg0: i32) -> (i32, i32, i32) {
    %c0_i32 = arith.constant 0 : i32
    %c0_i32_0 = arith.constant 0 : i32
    %c0_i32_1 = arith.constant 0 : i32
    %c0_i32_2 = arith.constant 0 : i32
    return %c0_i32, %c0_i32_0, %c0_i32_1 : i32, i32, i32
  }
  func.func @transform_8(%arg0: i32) -> (i32, i32, i32) {
    %c0_i32 = arith.constant 0 : i32
    %c0_i32_0 = arith.constant 0 : i32
    %c0_i32_1 = arith.constant 0 : i32
    %c0_i32_2 = arith.constant 0 : i32
    return %c0_i32, %c0_i32_0, %c0_i32_1 : i32, i32, i32
  }
  func.func @transform_9(%arg0: i32) -> (i32, i32) {
    %c0_i32 = arith.constant 0 : i32
    %c0_i32_0 = arith.constant 0 : i32
    %c0_i32_1 = arith.constant 0 : i32
    return %c0_i32, %c0_i32_0 : i32, i32
  }
  func.func @transform_10(%arg0: i32) -> (i32, i32) {
    %c0_i32 = arith.constant 0 : i32
    %c0_i32_0 = arith.constant 0 : i32
    %c0_i32_1 = arith.constant 0 : i32
    return %c0_i32, %c0_i32_0 : i32, i32
  }
  func.func @transform_11(%arg0: i32) -> (i32, i32, i32) {
    %c0_i32 = arith.constant 0 : i32
    %c0_i32_0 = arith.constant 0 : i32
    %c0_i32_1 = arith.constant 0 : i32
    %c0_i32_2 = arith.constant 0 : i32
    return %c0_i32, %c0_i32_0, %c0_i32_1 : i32, i32, i32
  }
  func.func @transform_12(%arg0: i32) -> (i32, i32, i32) {
    %c0_i32 = arith.constant 0 : i32
    %c0_i32_0 = arith.constant 0 : i32
    %c0_i32_1 = arith.constant 0 : i32
    %c0_i32_2 = arith.constant 0 : i32
    return %c0_i32, %c0_i32_0, %c0_i32_1 : i32, i32, i32
  }
  func.func @transform_13(%arg0: i32) -> (i32, i32) {
    %c0_i32 = arith.constant 0 : i32
    %c0_i32_0 = arith.constant 0 : i32
    %c0_i32_1 = arith.constant 0 : i32
    return %c0_i32, %c0_i32_0 : i32, i32
  }
  func.func @transform_14(%arg0: i32) -> (i32, i32, i32) {
    %c0_i32 = arith.constant 0 : i32
    %c0_i32_0 = arith.constant 0 : i32
    %c0_i32_1 = arith.constant 0 : i32
    %c0_i32_2 = arith.constant 0 : i32
    return %c0_i32, %c0_i32_0, %c0_i32_1 : i32, i32, i32
  }
  func.func @transform_15(%arg0: i32) -> (i32, i32, i32) {
    %c0_i32 = arith.constant 0 : i32
    %c0_i32_0 = arith.constant 0 : i32
    %c0_i32_1 = arith.constant 0 : i32
    %c0_i32_2 = arith.constant 0 : i32
    return %c0_i32, %c0_i32_0, %c0_i32_1 : i32, i32, i32
  }
}

</mosaic_0001>

<bundles_post_ra>
// kernel: tpu_custom_call.1
= control target key start
LH: loop header
LB: loop body
LE: loop exit
PB: predicated region body
PF: predicated region fallthrough
CT: control target
= control target key end

     0   :  { %s6403_s0 = inlined_call_operand.vmem [shape: f32[32,16], index: 0, kind: input, shape index: {}]   ;;  %s6404_s1 = inlined_call_operand.hbm [shape: f32[16,32], index: 1, kind: input, shape index: {}]   ;;  %s6405_s2 = inlined_call_operand.vmem [shape: f32[1,32], index: 2, kind: input, shape index: {}]   ;;  %s6406_s3 = inlined_call_operand.vmem [shape: f32[32,32], index: 3, kind: input, shape index: {}]   ;;  %s6407_s4 = inlined_call_operand.hbm [shape: f32[1,32], index: 4, kind: input, shape index: {}]   ;;  %s6408_s5 = inlined_call_operand.hbm [shape: f32[2,64,128], index: 5, kind: input, shape index: {}]   ;;  %s6409_s6 = inlined_call_operand.vmem [shape: f32[2,1,128], index: 6, kind: input, shape index: {}]   ;;  %s6410_s7 = inlined_call_operand.vmem [shape: f32[2,32,32], index: 7, kind: input, shape index: {}]   ;;  %s6411_s8 = inlined_call_operand.hbm [shape: f32[2,1,32], index: 8, kind: input, shape index: {}]   ;;  %s6412_s9 = inlined_call_operand.vmem [shape: f32[32,1], index: 9, kind: input, shape index: {}]   ;;  %s6413_s10 = inlined_call_operand.<no memory space> [shape: f32[1,1], index: 10, kind: input, shape index: {}]   ;;  %s6414_s11 = inlined_call_operand.vmem [shape: f32[2,4,32], index: 11, kind: input, shape index: {}]   ;;  %s6415_s12 = inlined_call_operand.vmem [shape: f32[2,4,32], index: 12, kind: input, shape index: {}]   ;;  %s6416_s13 = inlined_call_operand.vmem [shape: f32[32,1], index: 13, kind: output, shape index: {0}]   ;;  %s6417_s14 = inlined_call_operand.hbm [shape: f32[2,4,32], index: 14, kind: output, shape index: {1}]   ;;  %s6418_s15 = inlined_call_operand.hbm [shape: f32[2,4,32], index: 15, kind: output, shape index: {2}]  }
   0x1   :  { %v21_v0 = vstv %s6413_s10 }
   0x2   :  { %22 = vst [vmem:[#allocation4] sm:$0x1] %v21_v0 }
   0x3   :  { %23 = vsyncpa [#allocation6], 0 }
   0x4   :  { %24 = vsyncpa [#allocation9], 0 }
   0x5   :  { %25 = vsyncpa [#allocation12], 0 }
   0x6   :  { %26 = vsyncpa [#allocation7], 0 }
   0x7   :  { %27 = vsyncpa [#allocation15], 0  ;;  %s5325_s20 = smov [#allocation8]   ;;  %s5326_s22 = smov [#allocation5]  }
   0x8   :  { %s52_s21 = sshll.u32 %s5325_s20, 4  ;;  %s35_s23 = sshll.u32 %s5326_s22, 4  ;;  %s53_s21 = int_to_ptr.vmem [resolvable:$true] %s52_s21  ;;  %s5425_s23 = int_to_ptr.vmem [resolvable:$true] %s35_s23 }
   0x9   :  { %s5183_s26 = scalar_lea.hbm %s6407_s4, 16 }
   0xa   :  { %p5184_p0 = scmp.ne.s32.totalorder %s6407_s4, %s5183_s26  ;;  %p5187_p1 = scmp.lt.u32.totalorder %s5183_s26, %s6407_s4 }
   0xc   :  { %p5189_p2 = pnand %p5187_p1, %p5184_p0 }
   0xe   :  { %5192 = shalt.err (!%p5189_p2)
}
   0xf   :  { %s5193_s30 = scalar_lea.vmem %s53_s21, 16  ;;  %s5197_s16 = scalar_lea.vmem %s53_s21, 32 }
  0x10   :  { %p5194_p3 = scmp.ne.s32.totalorder %s53_s21, %s5193_s30  ;;  %p5198_p4 = scmp.lt.s32.totalorder %s53_s21, %s53_s21 }
  0x11   :  { %p5199_p5 = scmp.lt.s32.totalorder %s5197_s16, %s5193_s30 }
  0x13   :  { %p5200_p6 = por %p5199_p5, %p5198_p4 }
  0x15   :  { %p5201_p7 = pnand %p5200_p6, %p5194_p3 }
  0x17   :  { %5204 = shalt.err (!%p5201_p7)
}
  0x18   :  { %55 = dma.hbm_to_vmem [thread:$0]  %s6407_s4, 16, %s53_s21, [#allocation9]  }
  0x19   :  { %s5205_s22 = scalar_lea.hbm %s6404_s1, 256 }
  0x1a   :  { %p5206_p8 = scmp.ne.s32.totalorder %s6404_s1, %s5205_s22  ;;  %p5209_p9 = scmp.lt.u32.totalorder %s5205_s22, %s6404_s1 }
  0x1c   :  { %p5211_p10 = pnand %p5209_p9, %p5206_p8 }
  0x1e   :  { %5214 = shalt.err (!%p5211_p10)
}
  0x1f   :  { %s5215_s28 = scalar_lea.vmem %s5425_s23, 256  ;;  %p5220_p12 = scmp.lt.s32.totalorder %s5425_s23, %s5425_s23 }
  0x20   :  { %p5216_p11 = scmp.ne.s32.totalorder %s5425_s23, %s5215_s28  ;;  %p5221_p13 = scmp.lt.s32.totalorder %s5215_s28, %s5215_s28 }
  0x22   :  { %p5222_p0 = por %p5221_p13, %p5220_p12 }
  0x24   :  { %p5223_p1 = pnand %p5222_p0, %p5216_p11 }
  0x26   :  { %5226 = shalt.err (!%p5223_p1)
}
  0x27   :  { %s5327_s4 = smov 128   ;;  %s5328_s21 = smov 8  }
  0x28   :  { %41 = dma.hbm_to_vmem [thread:$0]  %s6404_s1, 256, %s5425_s23, [#allocation6], %s5327_s4, %s5327_s4, %s5328_s21  }
  0x29   :  { %s5329_s30 = smov [#allocation10]   ;;  %s5330_s17 = smov [#allocation11]  }
  0x2a   :  { %s61_s16 = sshll.u32 %s5329_s30, 4  ;;  %s77_s18 = sshll.u32 %s5330_s17, 4  ;;  %s62_s16 = int_to_ptr.vmem [resolvable:$true] %s61_s16  ;;  %s5456_s18 = int_to_ptr.vmem [resolvable:$true] %s77_s18 }
  0x2b   :  { %s5227_s22 = scalar_lea.hbm %s6408_s5, 2048 }
  0x2c   :  { %p5228_p2 = scmp.ne.s32.totalorder %s6408_s5, %s5227_s22  ;;  %p5231_p3 = scmp.lt.u32.totalorder %s5227_s22, %s6408_s5 }
  0x2e   :  { %p5233_p4 = pnand %p5231_p3, %p5228_p2 }
  0x30   :  { %5236 = shalt.err (!%p5233_p4)
}
  0x31   :  { %s5237_s1 = scalar_lea.vmem %s62_s16, 2048  ;;  %p5242_p6 = scmp.lt.s32.totalorder %s62_s16, %s62_s16 }
  0x32   :  { %p5238_p5 = scmp.ne.s32.totalorder %s62_s16, %s5237_s1  ;;  %p5243_p7 = scmp.lt.s32.totalorder %s5237_s1, %s5237_s1 }
  0x34   :  { %p5244_p8 = por %p5243_p7, %p5242_p6 }
  0x36   :  { %p5245_p9 = pnand %p5244_p8, %p5238_p5 }
  0x38   :  { %5248 = shalt.err (!%p5245_p9)
}
  0x39   :  { %67 = dma.hbm_to_vmem [thread:$0]  %s6408_s5, 2048, %s62_s16, [#allocation9], %s5327_s4, %s5327_s4, %s5328_s21  }
  0x3a   :  { %s5249_s30 = scalar_lea.hbm %s6411_s8, 32 }
  0x3b   :  { %p5250_p10 = scmp.ne.s32.totalorder %s6411_s8, %s5249_s30  ;;  %p5253_p11 = scmp.lt.u32.totalorder %s5249_s30, %s6411_s8 }
  0x3d   :  { %p5255_p12 = pnand %p5253_p11, %p5250_p10 }
  0x3f   :  { %5258 = shalt.err (!%p5255_p12)
}
  0x40   :  { %s5259_s24 = scalar_lea.vmem %s5456_s18, 32  ;;  %p5264_p0 = scmp.lt.s32.totalorder %s5456_s18, %s5456_s18 }
  0x41   :  { %p5260_p13 = scmp.ne.s32.totalorder %s5456_s18, %s5259_s24  ;;  %p5265_p1 = scmp.lt.s32.totalorder %s5259_s24, %s5259_s24 }
  0x43   :  { %p5266_p2 = por %p5265_p1, %p5264_p0 }
  0x45   :  { %p5267_p3 = pnand %p5266_p2, %p5260_p13 }
  0x47   :  { %5270 = shalt.err (!%p5267_p3)
}
  0x48   :  { %s5331_s5 = smov 16   ;;  %s5332_s4 = smov 1  }
  0x49   :  { %83 = dma.hbm_to_vmem [thread:$0]  %s6411_s8, 32, %s5456_s18, [#allocation12], %s5331_s5, %s5331_s5, %s5332_s4  }
  0x4a   :  { %5315 = dma.done.wait [#allocation6], 256  }
  0x4b   :  { %5316 = vsyncadd [#allocation6], 4294967040 }
  0x4c   :  { %5317 = dma.done.wait [#allocation9], 2064  }
  0x4d   :  { %5318 = vsyncadd [#allocation9], 4294965232 }
  0x4e   :  { %5319 = dma.done.wait [#allocation12], 32  }
  0x4f   :  { %5320 = vsyncadd [#allocation12], 4294967264  ;;  %vm126_vm0 = vcmask 130048   ;;  %v117_v1 = vld [vmem:[#allocation5] sm:$0xff]  ;;  %v118_v2 = vld [vmem:[#allocation5 + $0x8] sm:$0xff]  ;;  %vm106_vm1 = vcmask 257024   ;;  %v337_v59 = vlaneseq }
  0x50   :  { %v113_v3 = vld [vmem:[%s6403_s0] sm:$0xff]  ;;  %v4726_v4 = vpack.c.bf16 %v118_v2, %v117_v1  ;;  %v225_v6 = vld [vmem:[%s6406_s3 + $0x8] sm:$0xff]  ;;  %v115_v9 = vld [vmem:[%s6403_s0 + $0x10] sm:$0xff]  ;;  %vm235_vm2 = vcmask 261120   ;;  %v5334_v28 = vmov 0.0|0.0   ;;  %vm5335_vm3 = vmmov 0  }
  0x51   :  { %4212 = vmatprep.mubr.msk.f32.mxu1 %vm126_vm0, %v113_v3  ;;  %v224_v5 = vld [vmem:[%s6406_s3] sm:$0xff]  ;;  %v114_v8 = vld [vmem:[%s6403_s0 + $0x8] sm:$0xff]  ;;  %v116_v10 = vld [vmem:[%s6403_s0 + $0x18] sm:$0xff]  ;;  %s5333_s0 = smov 32   ;;  %4738 = vmatprep.subr.bf16.mxu0 %v5334_v28  ;;  %v5336_v38 = vmov 0.0   ;;  %vm380_vm4 = vcmask 519424  }
  0x52   :  { %v4730_v7 = vpack.c.bf16 %v225_v6, %v224_v5  ;;  %4727 = vmatprep.subr.bf16.mxu1 %v4726_v4  ;;  %v226_v11 = vld [vmem:[%s6406_s3 + $0x10] sm:$0xff]  ;;  %v227_v12 = vld [vmem:[%s6406_s3 + $0x18] sm:$0xff]  ;;  %v104_v14 = vld [vmem:[%s6414_s11] sm:$0xf]  ;;  %4248 = vmatprep.mubr.msk.f32.mxu0 %vm5335_vm3, %v5336_v38  ;;  %vm391_vm5 = vcmask 523264   ;;  %v338_v61 = vand.u32 127, %v337_v59 }
  0x53   :  { %4729 = vmatpush3.bf16.msra.mxu1 %v4726_v4  ;;  %v4734_v13 = vpack.c.bf16 %v227_v12, %v226_v11  ;;  %107 = vst.msk [vmem:[#allocation13] sm:$0xf] %vm106_vm1, %v104_v14  ;;  %v3862_v16 = vld [vmem:[%s6405_s2] ss:$0 sm:$0xff]  ;;  %v383_v25 = vld [vmem:[#allocation10] sm:$0xff]  ;;  %v385_v29 = vld [vmem:[#allocation10 + $0x10] sm:$0xff] }
  0x54   :  { %4731 = vmatprep.subr.bf16.mxu1 %v4730_v7  ;;  %v384_v26 = vld [vmem:[#allocation10 + $0x8] sm:$0xff]  ;;  %v386_v30 = vld [vmem:[#allocation10 + $0x18] sm:$0xff]  ;;  %v387_v32 = vld [vmem:[#allocation10 + $0x20] sm:$0xff]  ;;  %vm339_vm6 = vcmp.ge.s32.totalorder %v338_v61, 64  ;;  %vm340_vm7 = vcmp.lt.s32.totalorder %v338_v61, 96  ;;  %s5337_s27 = smov 64  }
  0x55   :  { %v5527_v27 = vpack.c.bf16 %v384_v26, %v383_v25  ;;  %v5533_v31 = vpack.c.bf16 %v386_v30, %v385_v29  ;;  %v388_v33 = vld [vmem:[#allocation10 + $0x28] sm:$0xff]  ;;  %v389_v35 = vld [vmem:[#allocation10 + $0x30] sm:$0xff]  ;;  %v390_v36 = vld [vmem:[#allocation10 + $0x38] sm:$0xff]  ;;  %s5338_s26 = smov 96   ;;  %vm3818_vm9 = vcmask 7168   ;;  %s5339_s10 = smov [#allocation13]  }
  0x56   :  { %4213 = vmatmul.mubr.msk.f32.vlgmr.msra.gmra.mrb[0].mxu1 %vm126_vm0, %v114_v8  ;;  %v5537_v34 = vpack.c.bf16 %v388_v33, %v387_v32  ;;  %v5541_v37 = vpack.c.bf16 %v390_v36, %v389_v35  ;;  %v109_v39 = vld [vmem:[%s6415_s12] sm:$0xf]  ;;  %v3867_v41 = vld [vmem:[#allocation8] ss:$0 sm:$0xff]  ;;  %vm5572_vm8 = vmand %vm339_vm6, %vm340_vm7  ;;  %s3830_s29 = sshll.u32 %s5339_s10, 4  ;;  %s5340_s30 = smov [#allocation14]   ;;  %s3831_s29 = int_to_ptr.vmem [resolvable:$true] %s3830_s29 }
  0x57   :  { %4215 = vmatprep.mubr.msk.f32.mxu1 %vm126_vm0, %v115_v9  ;;  %4733 = vmatpush3.bf16.msra.mxu1 %v4730_v7  ;;  %111 = vst.msk [vmem:[#allocation14] sm:$0xf] %vm106_vm1, %v109_v39  ;;  %v5569_v53 = vld [vmem:[%s6409_s6] ss:$0 sm:$0xff]  ;;  %v505_v9 = vld [vmem:[%s6410_s7 + $0x8] sm:$0xff]  ;;  %v507_v12 = vld [vmem:[%s6410_s7 + $0x18] sm:$0xff]  ;;  %p5276_p5 = scmp.lt.s32.totalorder %s3831_s29, %s3831_s29 }
  0x58   :  { %4735 = vmatprep.subr.bf16.mxu1 %v4734_v13  ;;  %4740 = vmatpush3.bf16.msra.mxu0 %v5527_v27  ;;  %v504_v8 = vld [vmem:[%s6410_s7] sm:$0xff]  ;;  %v598_v26 = vld [vmem:[#allocation10 + $0x60] sm:$0xff]  ;;  %v601_v33 = vld [vmem:[#allocation10 + $0x78] sm:$0xff]  ;;  %s3842_s17 = sshll.u32 %s5340_s30, 4  ;;  %s5271_s19 = scalar_lea.vmem %s3831_s29, 128  ;;  %s3843_s17 = int_to_ptr.vmem [resolvable:$true] %s3842_s17 }
  0x59   :  { %4741 = vmatprep.subr.bf16.mxu0 %v5334_v28  ;;  %v5592_v11 = vpack.c.bf16 %v505_v9, %v504_v8  ;;  %v599_v29 = vld [vmem:[#allocation10 + $0x68] sm:$0xff]  ;;  %v600_v32 = vld [vmem:[#allocation10 + $0x70] sm:$0xff]  ;;  %p5272_p4 = scmp.ne.s32.totalorder %s3831_s29, %s5271_s19  ;;  %p5277_p6 = scmp.lt.s32.totalorder %s5271_s19, %s5271_s19 }
  0x5a   :  { %4216 = vmatmul.mubr.msk.f32.gmra.mrb[2].mxu1 %vm126_vm0, %v116_v10  ;;  %v373_v15 = vld [vmem:[#allocation13] sm:$0xf]  ;;  %v506_v10 = vld [vmem:[%s6410_s7 + $0x10] sm:$0xff]  ;;  %v5622_v30 = vpack.c.bf16 %v599_v29, %v598_v26  ;;  %v5626_v35 = vpack.c.bf16 %v601_v33, %v600_v32  ;;  %v110_v36 = vld [vmem:[%s6415_s12 + $0x4] sm:$0xf] }
  0x5b   :  { %4737 = vmatpush3.bf16.msra.mxu1 %v4734_v13  ;;  %377 = vrot.lane.b32.xlu0 %v373_v15, %s5333_s0  ;;  %v5598_v13 = vpack.c.bf16 %v507_v12, %v506_v10  ;;  %v105_v15 = vld [vmem:[%s6414_s11 + $0x4] sm:$0xf]  ;;  %112 = vst.msk [vmem:[#allocation14 + $0x4] sm:$0xf] %vm106_vm1, %v110_v36  ;;  %v3885_v9 = vld [vmem:[%s6410_s7 + $0x38] sm:$0xff]  ;;  %v3711_v62 = vld [vmem:[%s6412_s9 + $0x8] sm:$0xff]  ;;  %p5278_p7 = por %p5277_p6, %p5276_p5 }
  0x5c   :  { %4750 = vmatprep.subr.bf16.mxu1 %v5334_v28  ;;  %4743 = vmatpush3.bf16.msra.mxu0 %v5533_v31  ;;  %108 = vst.msk [vmem:[#allocation13 + $0x4] sm:$0xf] %vm106_vm1, %v105_v15 }
  0x5d   :  { %4744 = vmatprep.subr.bf16.mxu0 %v5334_v28  ;;  %p5279_p8 = pnand %p5278_p7, %p5272_p4 }
  0x5e   :  { %v374_v40 = vld [vmem:[#allocation14] sm:$0xf] }
  0x5f   :  { %474 = vrot.lane.b32.xlu1 %v374_v40, %s5333_s0  ;;  %v5635_v40 = vld [vmem:[#allocation11] ss:$0 sm:$0xff] }
  0x60   :  { %4746 = vmatpush3.bf16.msra.mxu0 %v5537_v34 }
  0x61   :  { %4747 = vmatprep.subr.bf16.mxu0 %v5334_v28 }
  0x62   :  { %v585_v39 = vld [vmem:[#allocation14 + $0x4] sm:$0xf] }
  0x64   :  { %4749 = vmatpush3.bf16.msra.mxu0 %v5541_v37 }
  0x65   :  { %4768 = vmatprep.subr.bf16.mxu0 %v5334_v28 }
  0xcd   :  { %v378_v50 = vpop.permute.xlu0 %377 }
  0xd1   :  { %v475_v4 = vpop.permute.xlu1 %474 }
 0x129   :  { %v4214_v17 = vpop.f32.mrb[0].mxu1 }
 0x12a   :  { %v205_v18 = vpop.f32.mrb[1].mxu1  ;;  %v211_v20 = vadd.f32 %v4214_v17, %v3862_v16 }
 0x12b   :  { %v206_v19 = vadd.f32 %v3862_v16, %v205_v18 }
 0x12d   :  { %4226 = vmatprep.mubr.msk.f32.mxu1 %vm235_vm2, %v206_v19  ;;  %v4217_v21 = vpop.f32.mrb[2].mxu1 }
 0x12e   :  { %4227 = vmatmul.mubr.msk.f32.vlgmr.msra.gmra.mrb[4].mxu1 %vm235_vm2, %v211_v20  ;;  %v221_v22 = vadd.f32 %v4217_v21, %v3862_v16  ;;  %v215_v23 = vpop.f32.mrb[3].mxu1  ;;  %v594_v20 = vld [vmem:[#allocation10 + $0x40] sm:$0xff]  ;;  %v595_v21 = vld [vmem:[#allocation10 + $0x48] sm:$0xff] }
 0x12f   :  { %v216_v24 = vadd.f32 %v3862_v16, %v215_v23  ;;  %4752 = vmatpush3.bf16.msra.mxu1 %v5592_v11  ;;  %v583_v16 = vld [vmem:[#allocation13 + $0x4] sm:$0xf]  ;;  %v596_v23 = vld [vmem:[#allocation10 + $0x50] sm:$0xff] }
 0x130   :  { %4753 = vmatprep.subr.bf16.mxu1 %v5334_v28 }
 0x131   :  { %4229 = vmatprep.mubr.msk.f32.mxu1 %vm235_vm2, %v216_v24  ;;  %v597_v24 = vld [vmem:[#allocation10 + $0x58] sm:$0xff] }
 0x132   :  { %4230 = vmatmul.mubr.msk.f32.gmra.mrb[6].mxu1 %vm235_vm2, %v221_v22  ;;  %v5614_v22 = vpack.c.bf16 %v595_v21, %v594_v20  ;;  %v5618_v25 = vpack.c.bf16 %v597_v24, %v596_v23  ;;  %v5717_v20 = vld [vmem:[#allocation11 + $0x1] ss:$0 sm:$0xff] }
 0x133   :  { %4259 = vmatprep.mubr.msk.f32.mxu1 %vm5335_vm3, %v5336_v38  ;;  %4755 = vmatpush3.bf16.msra.mxu1 %v5598_v13 }
 0x134   :  { %4756 = vmatprep.subr.bf16.mxu1 %v5334_v28 }
 0x201   :  { %v4228_v42 = vpop.f32.mrb[4].mxu1 }
 0x202   :  { %v320_v43 = vadd.f32 %v4228_v42, %v3867_v41  ;;  %v314_v44 = vpop.f32.mrb[5].mxu1 }
 0x203   :  { %v315_v45 = vadd.f32 %v3867_v41, %v314_v44 }
 0x204   :  { %334 = vst.msk [vmem:[#allocation2 + $0x8] sm:$0xff] %vm235_vm2, %v320_v43 }
 0x205   :  { %333 = vst.msk [vmem:[#allocation2] sm:$0xff] %vm235_vm2, %v315_v45  ;;  %v4231_v46 = vpop.f32.mrb[6].mxu1 }
 0x206   :  { %v330_v47 = vadd.f32 %v4231_v46, %v3867_v41  ;;  %v324_v48 = vpop.f32.mrb[7].mxu1 }
 0x207   :  { %v325_v49 = vadd.f32 %v3867_v41, %v324_v48 }
 0x208   :  { %336 = vst.msk [vmem:[#allocation2 + $0x18] sm:$0xff] %vm235_vm2, %v330_v47 }
 0x209   :  { %335 = vst.msk [vmem:[#allocation2 + $0x10] sm:$0xff] %vm235_vm2, %v325_v49  ;;  %v5660_v49 = vld [vmem:[%s6409_s6 + $0x1] ss:$0 sm:$0xff] }
 0x20c   :  { %v5558_v51 = vld [vmem:[#allocation2] sm:$0xf]  ;;  %v5646_v47 = vld [vmem:[#allocation2 + $0x4] sm:$0xf] }
 0x20d   :  { %375 = vst.msk [vmem:[#allocation3] sm:$0xf] %vm106_vm1, %v5558_v51 }
 0x20e   :  { %381 = vst.msk [vmem:[#allocation3] sm:$0xf] %vm380_vm4, %v378_v50 }
 0x215   :  { %v382_v52 = vld [vmem:[#allocation3] sm:$0xf] }
 0x216   :  { %4249 = vmatmul.mubr.msk.f32.vlgmr.msra.gmra.mrb[0].mxu0 %vm391_vm5, %v382_v52 }
 0x217   :  { %4289 = vmatprep.mubr.msk.f32.mxu0 %vm5335_vm3, %v5336_v38 }
 0x2e9   :  { %v461_v54 = vpop.f32.mrb[0].mxu0 }
 0x2ea   :  { %v462_v55 = vadd.f32 %v5569_v53, %v461_v54  ;;  %v4250_v56 = vpop.f32.mrb[1].mxu0 }
 0x2ec   :  { %v3878_v57 = vmul.f32 -1.442695, %v462_v55 }
 0x2ee   :  { %5051 = vpow2.f32 %v3878_v57 }
 0x2ef   :  { %5053 = vtanh.f32 %v462_v55 }
 0x2f8   :  { %v5052_v58 = vpop.eup %5051 }
 0x2f9   :  { %v469_v60 = vadd.f32 1.0, %v5052_v58  ;;  %v5054_v63 = vpop.eup %5053 }
 0x2fb   :  { %5055 = vrcp.f32 %v469_v60 }
 0x305   :  { %v5056_v0 = vpop.eup %5055 }
 0x306   :  { %v472_v1 = vsel %vm5572_vm8, %v5054_v63, %v5056_v0 }
 0x307   :  { %479 = vrot.lane.b32.xlu0 %v472_v1, %s5337_s27  ;;  %v477_v5 = vmul.f32 %v475_v4, %v472_v1  ;;  %v3883_v4 = vld [vmem:[%s6410_s7 + $0x28] sm:$0xff] }
 0x379   :  { %v480_v2 = vpop.permute.xlu0 %479 }
 0x37a   :  { %v482_v3 = vmul.f32 %v480_v2, %v472_v1 }
 0x37c   :  { %484 = vrot.lane.b32.xlu1 %v482_v3, %s5333_s0  ;;  %v3882_v3 = vld [vmem:[%s6410_s7 + $0x20] sm:$0xff] }
 0x37d   :  { %v5679_v8 = vpack.c.bf16 %v3883_v4, %v3882_v3 }
 0x37f   :  { %4770 = vmatpush3.bf16.msra.mxu0 %v5679_v8 }
 0x380   :  { %4771 = vmatprep.subr.bf16.mxu0 %v5334_v28 }
 0x3ee   :  { %v485_v6 = vpop.permute.xlu1 %484 }
 0x3ef   :  { %v5580_v7 = vadd.f32 %v485_v6, %v477_v5  ;;  %v3884_v5 = vld [vmem:[%s6410_s7 + $0x30] sm:$0xff] }
 0x3f0   :  { %v5686_v10 = vpack.c.bf16 %v3885_v9, %v3884_v5  ;;  %v5759_v5 = vld [vmem:[#allocation2 + $0x8] sm:$0xf] }
 0x3f1   :  { %5057 = vtanh.f32 %v5580_v7 }
 0x3f2   :  { %4773 = vmatpush3.bf16.msra.mxu0 %v5686_v10 }
 0x3f3   :  { %4774 = vmatprep.subr.bf16.mxu0 %v5334_v28 }
 0x3fb   :  { %v5058_v14 = vpop.eup %5057 }
 0x3fc   :  { %490 = vrot.lane.b32.xlu0 %v5058_v14, %s5337_s27 }
 0x400   :  { %588 = vrot.lane.b32.xlu0 %v583_v16, %s5333_s0 }
 0x404   :  { %684 = vrot.lane.b32.xlu0 %v585_v39, %s5333_s0 }
 0x46e   :  { %v491_v17 = vpop.permute.xlu0 %490 }
 0x46f   :  { %v493_v18 = vmul.f32 %v491_v17, %v472_v1 }
 0x471   :  { %495 = vrot.lane.b32.xlu1 %v493_v18, %s5333_s0 }
 0x472   :  { %v589_v46 = vpop.permute.xlu0 %588 }
 0x476   :  { %v685_v63 = vpop.permute.xlu0 %684 }
 0x4e3   :  { %v496_v19 = vpop.permute.xlu1 %495 }
 0x4e4   :  { %498 = vst.msk [vmem:[#allocation13] sm:$0xf] %vm106_vm1, %v496_v19  ;;  %4260 = vmatmul.mubr.msk.f32.vlgmr.msra.gmra.mrb[8].mxu1 %vm235_vm2, %v496_v19 }
 0x4e5   :  { %4278 = vmatprep.mubr.msk.f32.mxu1 %vm5335_vm3, %v5336_v38  ;;  %4758 = vmatpush3.bf16.msra.mxu1 %v5614_v22 }
 0x4e6   :  { %4759 = vmatprep.subr.bf16.mxu1 %v5334_v28 }
 0x4e9   :  { %4761 = vmatpush3.bf16.msra.mxu1 %v5618_v25 }
 0x4ea   :  { %4762 = vmatprep.subr.bf16.mxu1 %v5334_v28 }
 0x4eb   :  { %v795_v12 = vld [vmem:[#allocation13] sm:$0xf] }
 0x4ed   :  { %4764 = vmatpush3.bf16.msra.mxu1 %v5622_v30 }
 0x4ee   :  { %4765 = vmatprep.subr.bf16.mxu1 %v5334_v28 }
 0x4f1   :  { %4767 = vmatpush3.bf16.msra.mxu1 %v5626_v35 }
 0x4f2   :  { %4786 = vmatprep.subr.bf16.mxu1 %v5334_v28 }
 0x5b7   :  { %v576_v41 = vpop.f32.mrb[8].mxu1 }
 0x5b8   :  { %v577_v42 = vadd.f32 %v5635_v40, %v576_v41  ;;  %v4261_v43 = vpop.f32.mrb[9].mxu1 }
 0x5ba   :  { %v5639_v44 = vadd.f32 %v577_v42, %v5558_v51 }
 0x5bc   :  { %v581_v45 = vmax.f32 %v5639_v44, 0.0 }
 0x5be   :  { %586 = vst.msk [vmem:[#allocation3] sm:$0xf] %vm106_vm1, %v581_v45 }
 0x5bf   :  { %591 = vst.msk [vmem:[#allocation3] sm:$0xf] %vm380_vm4, %v589_v46 }
 0x5c6   :  { %v592_v48 = vld [vmem:[#allocation3] sm:$0xf] }
 0x5c7   :  { %797 = vst.msk [vmem:[#allocation3] sm:$0xf] %vm106_vm1, %v5646_v47  ;;  %4279 = vmatmul.mubr.msk.f32.vlgmr.msra.gmra.mrb[10].mxu1 %vm391_vm5, %v592_v48 }
 0x5c8   :  { %4788 = vmatpush3.bf16.msra.mxu1 %v5592_v11  ;;  %4319 = vmatprep.mubr.msk.f32.mxu1 %vm5335_vm3, %v5336_v38 }
 0x5c9   :  { %4789 = vmatprep.subr.bf16.mxu1 %v5334_v28 }
 0x5cc   :  { %4791 = vmatpush3.bf16.msra.mxu1 %v5598_v13 }
 0x5cd   :  { %4792 = vmatprep.subr.bf16.mxu1 %v5334_v28 }
 0x69a   :  { %v671_v50 = vpop.f32.mrb[10].mxu1 }
 0x69b   :  { %v672_v51 = vadd.f32 %v5660_v49, %v671_v50  ;;  %v4280_v52 = vpop.f32.mrb[11].mxu1 }
 0x69d   :  { %v3881_v54 = vmul.f32 -1.442695, %v672_v51 }
 0x69f   :  { %5059 = vpow2.f32 %v3881_v54 }
 0x6a0   :  { %5061 = vtanh.f32 %v672_v51 }
 0x6a9   :  { %v5060_v55 = vpop.eup %5059 }
 0x6aa   :  { %v679_v56 = vadd.f32 1.0, %v5060_v55  ;;  %v5062_v57 = vpop.eup %5061 }
 0x6ac   :  { %5063 = vrcp.f32 %v679_v56 }
 0x6b6   :  { %v5064_v58 = vpop.eup %5063 }
 0x6b7   :  { %v682_v59 = vsel %vm5572_vm8, %v5062_v57, %v5064_v58 }
 0x6b8   :  { %689 = vrot.lane.b32.xlu1 %v682_v59, %s5337_s27  ;;  %v687_v0 = vmul.f32 %v685_v63, %v682_v59 }
 0x72a   :  { %v690_v60 = vpop.permute.xlu1 %689 }
 0x72b   :  { %v692_v61 = vmul.f32 %v690_v60, %v682_v59 }
 0x72d   :  { %694 = vrot.lane.b32.xlu1 %v692_v61, %s5333_s0 }
 0x79f   :  { %v695_v1 = vpop.permute.xlu1 %694 }
 0x7a0   :  { %v5667_v2 = vadd.f32 %v695_v1, %v687_v0 }
 0x7a2   :  { %5065 = vtanh.f32 %v5667_v2 }
 0x7ac   :  { %v5066_v6 = vpop.eup %5065 }
 0x7ad   :  { %700 = vrot.lane.b32.xlu0 %v5066_v6, %s5337_s27 }
 0x7b1   :  { %799 = vrot.lane.b32.xlu0 %v795_v12, %s5333_s0 }
 0x81f   :  { %v701_v14 = vpop.permute.xlu0 %700 }
 0x820   :  { %v703_v15 = vmul.f32 %v701_v14, %v682_v59 }
 0x822   :  { %705 = vrot.lane.b32.xlu1 %v703_v15, %s5333_s0 }
 0x823   :  { %v800_v16 = vpop.permute.xlu0 %799 }
 0x824   :  { %802 = vst.msk [vmem:[#allocation3] sm:$0xf] %vm380_vm4, %v800_v16 }
 0x826   :  { %500 = vrot.lane.b32.xlu1 %v5580_v7, %s5338_s26 }
 0x82b   :  { %v803_v19 = vld [vmem:[#allocation3] sm:$0xf] }
 0x894   :  { %v706_v17 = vpop.permute.xlu1 %705 }
 0x895   :  { %708 = vst.msk [vmem:[#allocation13 + $0x4] sm:$0xf] %vm106_vm1, %v706_v17  ;;  %4290 = vmatmul.mubr.msk.f32.vlgmr.msra.gmra.mrb[2].mxu0 %vm235_vm2, %v706_v17 }
 0x896   :  { %4776 = vmatpush3.bf16.msra.mxu0 %v5527_v27  ;;  %4308 = vmatprep.mubr.msk.f32.mxu0 %vm5335_vm3, %v5336_v38 }
 0x897   :  { %4777 = vmatprep.subr.bf16.mxu0 %v5334_v28 }
 0x898   :  { %v501_v18 = vpop.permute.xlu1 %500 }
 0x899   :  { %503 = vst.msk [vmem:[#allocation14] sm:$0xf] %vm106_vm1, %v501_v18 }
 0x89a   :  { %4779 = vmatpush3.bf16.msra.mxu0 %v5533_v31 }
 0x89b   :  { %4780 = vmatprep.subr.bf16.mxu0 %v5334_v28 }
 0x89c   :  { %v1002_v56 = vld [vmem:[#allocation13 + $0x4] sm:$0xf] }
 0x89e   :  { %4782 = vmatpush3.bf16.msra.mxu0 %v5537_v34 }
 0x89f   :  { %4783 = vmatprep.subr.bf16.mxu0 %v5334_v28 }
 0x8a0   :  { %v796_v7 = vld [vmem:[#allocation14] sm:$0xf] }
 0x8a1   :  { %894 = vrot.lane.b32.xlu1 %v796_v7, %s5333_s0 }
 0x8a2   :  { %4785 = vmatpush3.bf16.msra.mxu0 %v5541_v37 }
 0x8a3   :  { %4804 = vmatprep.subr.bf16.mxu0 %v5334_v28 }
 0x8a5   :  { %4309 = vmatmul.mubr.msk.f32.vlgmr.msra.gmra.mrb[4].mxu0 %vm391_vm5, %v803_v19 }
 0x8a6   :  { %4806 = vmatpush3.bf16.msra.mxu0 %v5679_v8  ;;  %4349 = vmatprep.mubr.msk.f32.mxu0 %vm5335_vm3, %v5336_v38 }
 0x8a7   :  { %4807 = vmatprep.subr.bf16.mxu0 %v5334_v28 }
 0x8aa   :  { %4809 = vmatpush3.bf16.msra.mxu0 %v5686_v10 }
 0x8ab   :  { %4810 = vmatprep.subr.bf16.mxu0 %v5334_v28 }
 0x913   :  { %v895_v50 = vpop.permute.xlu1 %894 }
 0x968   :  { %v787_v21 = vpop.f32.mrb[2].mxu0 }
 0x969   :  { %v788_v23 = vadd.f32 %v5717_v20, %v787_v21  ;;  %v4291_v24 = vpop.f32.mrb[3].mxu0 }
 0x96b   :  { %v791_v26 = vadd.f32 %v788_v23, %v581_v45 }
 0x96d   :  { %v792_v29 = vmax.f32 %v791_v26, 0.0 }
 0x96f   :  { %793 = vst.msk [vmem:[#allocation2] sm:$0xf] %vm106_vm1, %v792_v29 }
 0x978   :  { %v881_v32 = vpop.f32.mrb[4].mxu0 }
 0x979   :  { %v882_v33 = vadd.f32 %v5569_v53, %v881_v32  ;;  %v4310_v36 = vpop.f32.mrb[5].mxu0 }
 0x97b   :  { %v3888_v39 = vmul.f32 -1.442695, %v882_v33 }
 0x97d   :  { %5067 = vpow2.f32 %v3888_v39 }
 0x97e   :  { %5069 = vtanh.f32 %v882_v33 }
 0x987   :  { %v5068_v41 = vpop.eup %5067 }
 0x988   :  { %v889_v42 = vadd.f32 1.0, %v5068_v41  ;;  %v5070_v43 = vpop.eup %5069 }
 0x98a   :  { %5071 = vrcp.f32 %v889_v42 }
 0x994   :  { %v5072_v46 = vpop.eup %5071 }
 0x995   :  { %v892_v48 = vsel %vm5572_vm8, %v5070_v43, %v5072_v46 }
 0x996   :  { %899 = vrot.lane.b32.xlu0 %v892_v48, %s5337_s27  ;;  %v897_v51 = vmul.f32 %v895_v50, %v892_v48 }
 0xa08   :  { %v900_v44 = vpop.permute.xlu0 %899 }
 0xa09   :  { %v902_v45 = vmul.f32 %v900_v44, %v892_v48 }
 0xa0b   :  { %904 = vrot.lane.b32.xlu0 %v902_v45, %s5333_s0 }
 0xa7d   :  { %v905_v52 = vpop.permute.xlu0 %904 }
 0xa7e   :  { %v5728_v54 = vadd.f32 %v905_v52, %v897_v51 }
 0xa80   :  { %5073 = vtanh.f32 %v5728_v54 }
 0xa8a   :  { %v5074_v55 = vpop.eup %5073 }
 0xa8b   :  { %910 = vrot.lane.b32.xlu1 %v5074_v55, %s5337_s27 }
 0xa8f   :  { %1006 = vrot.lane.b32.xlu1 %v1002_v56, %s5333_s0 }
 0xafd   :  { %v911_v57 = vpop.permute.xlu1 %910 }
 0xafe   :  { %v913_v58 = vmul.f32 %v911_v57, %v892_v48 }
 0xb00   :  { %915 = vrot.lane.b32.xlu0 %v913_v58, %s5333_s0 }
 0xb01   :  { %v1007_v4 = vpop.permute.xlu1 %1006 }
 0xb04   :  { %710 = vrot.lane.b32.xlu0 %v5667_v2, %s5338_s26 }
 0xb72   :  { %v916_v59 = vpop.permute.xlu0 %915 }
 0xb73   :  { %918 = vst.msk [vmem:[#allocation13] sm:$0xf] %vm106_vm1, %v916_v59  ;;  %4320 = vmatmul.mubr.msk.f32.vlgmr.msra.gmra.mrb[12].mxu1 %vm235_vm2, %v916_v59 }
 0xb74   :  { %4794 = vmatpush3.bf16.msra.mxu1 %v5614_v22  ;;  %4338 = vmatprep.mubr.msk.f32.mxu1 %vm5335_vm3, %v5336_v38 }
 0xb75   :  { %4795 = vmatprep.subr.bf16.mxu1 %v5334_v28 }
 0xb76   :  { %v711_v60 = vpop.permute.xlu0 %710 }
 0xb77   :  { %713 = vst.msk [vmem:[#allocation14 + $0x4] sm:$0xf] %vm106_vm1, %v711_v60 }
 0xb78   :  { %4797 = vmatpush3.bf16.msra.mxu1 %v5618_v25 }
 0xb79   :  { %4798 = vmatprep.subr.bf16.mxu1 %v5334_v28 }
 0xb7a   :  { %v1211_v33 = vld [vmem:[#allocation13] sm:$0xf] }
 0xb7c   :  { %4800 = vmatpush3.bf16.msra.mxu1 %v5622_v30 }
 0xb7d   :  { %4801 = vmatprep.subr.bf16.mxu1 %v5334_v28 }
 0xb7e   :  { %v1003_v61 = vld [vmem:[#allocation14 + $0x4] sm:$0xf] }
 0xb7f   :  { %1101 = vrot.lane.b32.xlu0 %v1003_v61, %s5333_s0 }
 0xb80   :  { %4803 = vmatpush3.bf16.msra.mxu1 %v5626_v35 }
 0xb81   :  { %4822 = vmatprep.subr.bf16.mxu1 %v5334_v28 }
 0xbf1   :  { %v1102_v23 = vpop.permute.xlu0 %1101 }
 0xc46   :  { %v996_v63 = vpop.f32.mrb[12].mxu1 }
 0xc47   :  { %v997_v0 = vadd.f32 %v5635_v40, %v996_v63  ;;  %v4321_v1 = vpop.f32.mrb[13].mxu1 }
 0xc49   :  { %v5752_v2 = vadd.f32 %v997_v0, %v5646_v47 }
 0xc4b   :  { %v1001_v3 = vmax.f32 %v5752_v2, 0.0 }
 0xc4d   :  { %1004 = vst.msk [vmem:[#allocation3] sm:$0xf] %vm106_vm1, %v1001_v3 }
 0xc4e   :  { %1009 = vst.msk [vmem:[#allocation3] sm:$0xf] %vm380_vm4, %v1007_v4 }
 0xc55   :  { %v1010_v6 = vld [vmem:[#allocation3] sm:$0xf] }
 0xc56   :  { %1213 = vst.msk [vmem:[#allocation3] sm:$0xf] %vm106_vm1, %v5759_v5  ;;  %4339 = vmatmul.mubr.msk.f32.vlgmr.msra.gmra.mrb[14].mxu1 %vm391_vm5, %v1010_v6 }
 0xc57   :  { %4824 = vmatpush3.bf16.msra.mxu1 %v5592_v11  ;;  %4379 = vmatprep.mubr.msk.f32.mxu1 %vm5335_vm3, %v5336_v38 }
 0xc58   :  { %4825 = vmatprep.subr.bf16.mxu1 %v5334_v28 }
 0xc5b   :  { %4827 = vmatpush3.bf16.msra.mxu1 %v5598_v13 }
 0xc5c   :  { %4828 = vmatprep.subr.bf16.mxu1 %v5334_v28 }
 0xd29   :  { %v1088_v47 = vpop.f32.mrb[14].mxu1 }
 0xd2a   :  { %v1089_v9 = vadd.f32 %v5660_v49, %v1088_v47  ;;  %v4340_v12 = vpop.f32.mrb[15].mxu1 }
 0xd2c   :  { %v3891_v14 = vmul.f32 -1.442695, %v1089_v9 }
 0xd2e   :  { %5075 = vpow2.f32 %v3891_v14 }
 0xd2f   :  { %5077 = vtanh.f32 %v1089_v9 }
 0xd38   :  { %v5076_v15 = vpop.eup %5075 }
 0xd39   :  { %v1096_v16 = vadd.f32 1.0, %v5076_v15  ;;  %v5078_v17 = vpop.eup %5077 }
 0xd3b   :  { %5079 = vrcp.f32 %v1096_v16 }
 0xd45   :  { %v5080_v18 = vpop.eup %5079 }
 0xd46   :  { %v1099_v7 = vsel %vm5572_vm8, %v5078_v17, %v5080_v18 }
 0xd47   :  { %1106 = vrot.lane.b32.xlu1 %v1099_v7, %s5337_s27  ;;  %v1104_v24 = vmul.f32 %v1102_v23, %v1099_v7 }
 0xdb9   :  { %v1107_v19 = vpop.permute.xlu1 %1106 }
 0xdba   :  { %v1109_v21 = vmul.f32 %v1107_v19, %v1099_v7 }
 0xdbc   :  { %1111 = vrot.lane.b32.xlu1 %v1109_v21, %s5333_s0 }
 0xe2e   :  { %v1112_v26 = vpop.permute.xlu1 %1111 }
 0xe2f   :  { %v5775_v29 = vadd.f32 %v1112_v26, %v1104_v24  ;;  %v5845_v26 = vld [vmem:[#allocation2 + $0xc] sm:$0xf] }
 0xe31   :  { %5081 = vtanh.f32 %v5775_v29 }
 0xe3b   :  { %v5082_v32 = vpop.eup %5081 }
 0xe3c   :  { %1117 = vrot.lane.b32.xlu0 %v5082_v32, %s5337_s27 }
 0xe40   :  { %1215 = vrot.lane.b32.xlu0 %v1211_v33, %s5333_s0 }
 0xeae   :  { %v1118_v36 = vpop.permute.xlu0 %1117 }
 0xeaf   :  { %v1120_v39 = vmul.f32 %v1118_v36, %v1099_v7 }
 0xeb1   :  { %1122 = vrot.lane.b32.xlu1 %v1120_v39, %s5333_s0 }
 0xeb2   :  { %v1216_v41 = vpop.permute.xlu0 %1215 }
 0xeb3   :  { %1218 = vst.msk [vmem:[#allocation3] sm:$0xf] %vm380_vm4, %v1216_v41 }
 0xeb5   :  { %920 = vrot.lane.b32.xlu1 %v5728_v54, %s5338_s26 }
 0xeba   :  { %v1219_v48 = vld [vmem:[#allocation3] sm:$0xf] }
 0xf23   :  { %v1123_v42 = vpop.permute.xlu1 %1122 }
 0xf24   :  { %1125 = vst.msk [vmem:[#allocation13 + $0x4] sm:$0xf] %vm106_vm1, %v1123_v42  ;;  %4350 = vmatmul.mubr.msk.f32.vlgmr.msra.gmra.mrb[6].mxu0 %vm235_vm2, %v1123_v42 }
 0xf25   :  { %4812 = vmatpush3.bf16.msra.mxu0 %v5527_v27  ;;  %4368 = vmatprep.mubr.msk.f32.mxu0 %vm5335_vm3, %v5336_v38 }
 0xf26   :  { %4813 = vmatprep.subr.bf16.mxu0 %v5334_v28 }
 0xf27   :  { %v921_v43 = vpop.permute.xlu1 %920 }
 0xf28   :  { %923 = vst.msk [vmem:[#allocation14] sm:$0xf] %vm106_vm1, %v921_v43 }
 0xf29   :  { %4815 = vmatpush3.bf16.msra.mxu0 %v5533_v31 }
 0xf2a   :  { %4816 = vmatprep.subr.bf16.mxu0 %v5334_v28 }
 0xf2b   :  { %v1418_v9 = vld [vmem:[#allocation13 + $0x4] sm:$0xf] }
 0xf2d   :  { %4818 = vmatpush3.bf16.msra.mxu0 %v5537_v34 }
 0xf2e   :  { %4819 = vmatprep.subr.bf16.mxu0 %v5334_v28 }
 0xf2f   :  { %v1212_v46 = vld [vmem:[#allocation14] sm:$0xf] }
 0xf30   :  { %1310 = vrot.lane.b32.xlu1 %v1212_v46, %s5333_s0 }
 0xf31   :  { %4821 = vmatpush3.bf16.msra.mxu0 %v5541_v37 }
 0xf32   :  { %4840 = vmatprep.subr.bf16.mxu0 %v5334_v28 }
 0xf34   :  { %4369 = vmatmul.mubr.msk.f32.vlgmr.msra.gmra.mrb[8].mxu0 %vm391_vm5, %v1219_v48 }
 0xf35   :  { %4842 = vmatpush3.bf16.msra.mxu0 %v5679_v8  ;;  %4409 = vmatprep.mubr.msk.f32.mxu0 %vm5335_vm3, %v5336_v38 }
 0xf36   :  { %4843 = vmatprep.subr.bf16.mxu0 %v5334_v28 }
 0xf39   :  { %4845 = vmatpush3.bf16.msra.mxu0 %v5686_v10 }
 0xf3a   :  { %4846 = vmatprep.subr.bf16.mxu0 %v5334_v28 }
 0xfa2   :  { %v1311_v2 = vpop.permute.xlu1 %1310 }
 0xff7   :  { %v1203_v44 = vpop.f32.mrb[6].mxu0 }
 0xff8   :  { %v1204_v45 = vadd.f32 %v5717_v20, %v1203_v44  ;;  %v4351_v50 = vpop.f32.mrb[7].mxu0 }
 0xffa   :  { %v1207_v51 = vadd.f32 %v1204_v45, %v1001_v3 }
 0xffc   :  { %v1208_v52 = vmax.f32 %v1207_v51, 0.0 }
 0xffe   :  { %1209 = vst.msk [vmem:[#allocation2 + $0x4] sm:$0xf] %vm106_vm1, %v1208_v52 }
0x1007   :  { %v1297_v54 = vpop.f32.mrb[8].mxu0 }
0x1008   :  { %v1298_v55 = vadd.f32 %v5569_v53, %v1297_v54  ;;  %v4370_v56 = vpop.f32.mrb[9].mxu0 }
0x100a   :  { %v3898_v57 = vmul.f32 -1.442695, %v1298_v55 }
0x100c   :  { %5083 = vpow2.f32 %v3898_v57 }
0x100d   :  { %5085 = vtanh.f32 %v1298_v55 }
0x1016   :  { %v5084_v58 = vpop.eup %5083 }
0x1017   :  { %v1305_v59 = vadd.f32 1.0, %v5084_v58  ;;  %v5086_v60 = vpop.eup %5085 }
0x1019   :  { %5087 = vrcp.f32 %v1305_v59 }
0x1023   :  { %v5088_v61 = vpop.eup %5087 }
0x1024   :  { %v1308_v63 = vsel %vm5572_vm8, %v5086_v60, %v5088_v61 }
0x1025   :  { %1315 = vrot.lane.b32.xlu0 %v1308_v63, %s5337_s27  ;;  %v1313_v3 = vmul.f32 %v1311_v2, %v1308_v63 }
0x1097   :  { %v1316_v0 = vpop.permute.xlu0 %1315 }
0x1098   :  { %v1318_v1 = vmul.f32 %v1316_v0, %v1308_v63 }
0x109a   :  { %1320 = vrot.lane.b32.xlu0 %v1318_v1, %s5333_s0 }
0x110c   :  { %v1321_v4 = vpop.permute.xlu0 %1320 }
0x110d   :  { %v5814_v6 = vadd.f32 %v1321_v4, %v1313_v3 }
0x110f   :  { %5089 = vtanh.f32 %v5814_v6 }
0x1119   :  { %v5090_v47 = vpop.eup %5089 }
0x111a   :  { %1326 = vrot.lane.b32.xlu1 %v5090_v47, %s5337_s27 }
0x111e   :  { %1422 = vrot.lane.b32.xlu1 %v1418_v9, %s5333_s0 }
0x118c   :  { %v1327_v12 = vpop.permute.xlu1 %1326 }
0x118d   :  { %v1329_v14 = vmul.f32 %v1327_v12, %v1308_v63 }
0x118f   :  { %1331 = vrot.lane.b32.xlu0 %v1329_v14, %s5333_s0 }
0x1190   :  { %v1423_v24 = vpop.permute.xlu1 %1422 }
0x1193   :  { %1127 = vrot.lane.b32.xlu0 %v5775_v29, %s5338_s26 }
0x1201   :  { %v1332_v15 = vpop.permute.xlu0 %1331 }
0x1202   :  { %1334 = vst.msk [vmem:[#allocation13] sm:$0xf] %vm106_vm1, %v1332_v15  ;;  %4380 = vmatmul.mubr.msk.f32.vlgmr.msra.gmra.mrb[16].mxu1 %vm235_vm2, %v1332_v15 }
0x1203   :  { %4830 = vmatpush3.bf16.msra.mxu1 %v5614_v22  ;;  %4398 = vmatprep.mubr.msk.f32.mxu1 %vm5335_vm3, %v5336_v38 }
0x1204   :  { %4831 = vmatprep.subr.bf16.mxu1 %v5334_v28 }
0x1205   :  { %v1128_v16 = vpop.permute.xlu0 %1127 }
0x1206   :  { %1130 = vst.msk [vmem:[#allocation14 + $0x4] sm:$0xf] %vm106_vm1, %v1128_v16 }
0x1207   :  { %4833 = vmatpush3.bf16.msra.mxu1 %v5618_v25 }
0x1208   :  { %4834 = vmatprep.subr.bf16.mxu1 %v5334_v28 }
0x1209   :  { %v1627_v52 = vld [vmem:[#allocation13] sm:$0xf] }
0x120b   :  { %4836 = vmatpush3.bf16.msra.mxu1 %v5622_v30 }
0x120c   :  { %4837 = vmatprep.subr.bf16.mxu1 %v5334_v28 }
0x120d   :  { %v1419_v17 = vld [vmem:[#allocation14 + $0x4] sm:$0xf] }
0x120e   :  { %1517 = vrot.lane.b32.xlu0 %v1419_v17, %s5333_s0 }
0x120f   :  { %4839 = vmatpush3.bf16.msra.mxu1 %v5626_v35 }
0x1210   :  { %4858 = vmatprep.subr.bf16.mxu1 %v5334_v28 }
0x1280   :  { %v1518_v48 = vpop.permute.xlu0 %1517 }
0x12d5   :  { %v1412_v18 = vpop.f32.mrb[16].mxu1 }
0x12d6   :  { %v1413_v7 = vadd.f32 %v5635_v40, %v1412_v18  ;;  %v4381_v19 = vpop.f32.mrb[17].mxu1 }
0x12d8   :  { %v5838_v21 = vadd.f32 %v1413_v7, %v5759_v5 }
0x12da   :  { %v1417_v23 = vmax.f32 %v5838_v21, 0.0 }
0x12dc   :  { %1420 = vst.msk [vmem:[#allocation3] sm:$0xf] %vm106_vm1, %v1417_v23 }
0x12dd   :  { %1425 = vst.msk [vmem:[#allocation3] sm:$0xf] %vm380_vm4, %v1423_v24 }
0x12e4   :  { %v1426_v29 = vld [vmem:[#allocation3] sm:$0xf] }
0x12e5   :  { %1629 = vst.msk [vmem:[#allocation3] sm:$0xf] %vm106_vm1, %v5845_v26  ;;  %4399 = vmatmul.mubr.msk.f32.vlgmr.msra.gmra.mrb[18].mxu1 %vm391_vm5, %v1426_v29 }
0x12e6   :  { %4860 = vmatpush3.bf16.msra.mxu1 %v5592_v11  ;;  %4439 = vmatprep.mubr.msk.f32.mxu1 %vm5335_vm3, %v5336_v38 }
0x12e7   :  { %4861 = vmatprep.subr.bf16.mxu1 %v5334_v28 }
0x12ea   :  { %4863 = vmatpush3.bf16.msra.mxu1 %v5598_v13 }
0x12eb   :  { %4864 = vmatprep.subr.bf16.mxu1 %v5334_v28 }
0x13b8   :  { %v1504_v5 = vpop.f32.mrb[18].mxu1 }
0x13b9   :  { %v1505_v32 = vadd.f32 %v5660_v49, %v1504_v5  ;;  %v4400_v33 = vpop.f32.mrb[19].mxu1 }
0x13bb   :  { %v3901_v36 = vmul.f32 -1.442695, %v1505_v32 }
0x13bd   :  { %5091 = vpow2.f32 %v3901_v36 }
0x13be   :  { %5093 = vtanh.f32 %v1505_v32 }
0x13c7   :  { %v5092_v39 = vpop.eup %5091 }
0x13c8   :  { %v1512_v41 = vadd.f32 1.0, %v5092_v39  ;;  %v5094_v11 = vpop.eup %5093 }
0x13ca   :  { %5095 = vrcp.f32 %v1512_v41 }
0x13d4   :  { %v5096_v42 = vpop.eup %5095 }
0x13d5   :  { %v1515_v43 = vsel %vm5572_vm8, %v5094_v11, %v5096_v42 }
0x13d6   :  { %1522 = vrot.lane.b32.xlu1 %v1515_v43, %s5337_s27  ;;  %v1520_v44 = vmul.f32 %v1518_v48, %v1515_v43 }
0x1448   :  { %v1523_v13 = vpop.permute.xlu1 %1522 }
0x1449   :  { %v1525_v46 = vmul.f32 %v1523_v13, %v1515_v43 }
0x144b   :  { %1527 = vrot.lane.b32.xlu1 %v1525_v46, %s5333_s0 }
0x14bd   :  { %v1528_v45 = vpop.permute.xlu1 %1527 }
0x14be   :  { %v5861_v50 = vadd.f32 %v1528_v45, %v1520_v44 }
0x14c0   :  { %5097 = vtanh.f32 %v5861_v50 }
0x14ca   :  { %v5098_v51 = vpop.eup %5097 }
0x14cb   :  { %1533 = vrot.lane.b32.xlu0 %v5098_v51, %s5337_s27 }
0x14cf   :  { %1631 = vrot.lane.b32.xlu0 %v1627_v52, %s5333_s0 }
0x153d   :  { %v1534_v54 = vpop.permute.xlu0 %1533 }
0x153e   :  { %v1536_v55 = vmul.f32 %v1534_v54, %v1515_v43 }
0x1540   :  { %1538 = vrot.lane.b32.xlu1 %v1536_v55, %s5333_s0 }
0x1541   :  { %v1632_v56 = vpop.permute.xlu0 %1631 }
0x1542   :  { %1634 = vst.msk [vmem:[#allocation3] sm:$0xf] %vm380_vm4, %v1632_v56  ;;  %v2052_v56 = vld [vmem:[#allocation10] sm:$0xff] }
0x1544   :  { %1336 = vrot.lane.b32.xlu1 %v5814_v6, %s5338_s26 }
0x15b2   :  { %v1539_v57 = vpop.permute.xlu1 %1538 }
0x15b3   :  { %1541 = vst.msk [vmem:[#allocation13 + $0x4] sm:$0xf] %vm106_vm1, %v1539_v57  ;;  %4410 = vmatmul.mubr.msk.f32.vlgmr.msra.gmra.mrb[10].mxu0 %vm235_vm2, %v1539_v57  ;;  %v2053_v57 = vld [vmem:[#allocation10 + $0x8] sm:$0xff] }
0x15b4   :  { %4848 = vmatpush3.bf16.msra.mxu0 %v5527_v27  ;;  %4428 = vmatprep.mubr.msk.f32.mxu0 %vm5335_vm3, %v5336_v38  ;;  %v1635_v27 = vld [vmem:[#allocation3] sm:$0xf] }
0x15b5   :  { %4849 = vmatprep.subr.bf16.mxu0 %v5334_v28 }
0x15b6   :  { %v1337_v58 = vpop.permute.xlu1 %1336 }
0x15b7   :  { %1339 = vst.msk [vmem:[#allocation14] sm:$0xf] %vm106_vm1, %v1337_v58  ;;  %v5952_v58 = vpack.c.bf16 %v2053_v57, %v2052_v56  ;;  %v2266_v56 = vld [vmem:[#allocation10 + $0x78] sm:$0xff] }
0x15b8   :  { %4851 = vmatpush3.bf16.msra.mxu0 %v5533_v31 }
0x15b9   :  { %4852 = vmatprep.subr.bf16.mxu0 %v5334_v28 }
0x15ba   :  { %v1834_v17 = vld [vmem:[#allocation13 + $0x4] sm:$0xf] }
0x15bc   :  { %4854 = vmatpush3.bf16.msra.mxu0 %v5537_v34 }
0x15bd   :  { %4855 = vmatprep.subr.bf16.mxu0 %v5334_v28 }
0x15be   :  { %v1628_v59 = vld [vmem:[#allocation14] sm:$0xf] }
0x15bf   :  { %1726 = vrot.lane.b32.xlu1 %v1628_v59, %s5333_s0  ;;  %v2054_v59 = vld [vmem:[#allocation10 + $0x10] sm:$0xff] }
0x15c0   :  { %4857 = vmatpush3.bf16.msra.mxu0 %v5541_v37 }
0x15c1   :  { %4876 = vmatprep.subr.bf16.mxu0 %v5334_v28 }
0x15c3   :  { %4429 = vmatmul.mubr.msk.f32.vlgmr.msra.gmra.mrb[12].mxu0 %vm391_vm5, %v1635_v27  ;;  %v2055_v27 = vld [vmem:[#allocation10 + $0x18] sm:$0xff] }
0x15c4   :  { %4878 = vmatpush3.bf16.msra.mxu0 %v5679_v8  ;;  %4469 = vmatprep.mubr.msk.f32.mxu0 %vm5335_vm3, %v5336_v38 }
0x15c5   :  { %4879 = vmatprep.subr.bf16.mxu0 %v5334_v28 }
0x15c8   :  { %4881 = vmatpush3.bf16.msra.mxu0 %v5686_v10 }
0x15c9   :  { %4882 = vmatprep.subr.bf16.mxu0 %v5334_v28 }
0x1631   :  { %v1727_v12 = vpop.permute.xlu1 %1726 }
0x1686   :  { %v1619_v31 = vpop.f32.mrb[10].mxu0 }
0x1687   :  { %v1620_v34 = vadd.f32 %v5717_v20, %v1619_v31  ;;  %v4411_v37 = vpop.f32.mrb[11].mxu0 }
0x1688   :  { %v2056_v37 = vld [vmem:[#allocation10 + $0x20] sm:$0xff] }
0x1689   :  { %v1623_v60 = vadd.f32 %v1620_v34, %v1417_v23  ;;  %v5957_v34 = vpack.c.bf16 %v2055_v27, %v2054_v59  ;;  %v6041_v27 = vld [vmem:[#allocation11] ss:$0 sm:$0xff] }
0x168b   :  { %v1624_v61 = vmax.f32 %v1623_v60, 0.0  ;;  %v2057_v60 = vld [vmem:[#allocation10 + $0x28] sm:$0xff] }
0x168d   :  { %1625 = vst.msk [vmem:[#allocation2 + $0x8] sm:$0xf] %vm106_vm1, %v1624_v61 }
0x1696   :  { %v1713_v8 = vpop.f32.mrb[12].mxu0 }
0x1697   :  { %v1714_v63 = vadd.f32 %v5569_v53, %v1713_v8  ;;  %v4430_v0 = vpop.f32.mrb[13].mxu0  ;;  %v5964_v8 = vpack.c.bf16 %v2057_v60, %v2056_v37 }
0x1698   :  { %v2059_v0 = vld [vmem:[#allocation10 + $0x38] sm:$0xff] }
0x1699   :  { %v3908_v1 = vmul.f32 -1.442695, %v1714_v63 }
0x169b   :  { %5099 = vpow2.f32 %v3908_v1 }
0x169c   :  { %5101 = vtanh.f32 %v1714_v63  ;;  %v2058_v63 = vld [vmem:[#allocation10 + $0x30] sm:$0xff] }
0x169d   :  { %v5968_v1 = vpack.c.bf16 %v2059_v0, %v2058_v63  ;;  %v6052_v0 = vld [vmem:[#allocation2 + $0x14] sm:$0xf] }
0x16a5   :  { %v5100_v2 = vpop.eup %5099 }
0x16a6   :  { %v1721_v10 = vadd.f32 1.0, %v5100_v2  ;;  %v5102_v3 = vpop.eup %5101 }
0x16a8   :  { %5103 = vrcp.f32 %v1721_v10 }
0x16b2   :  { %v5104_v4 = vpop.eup %5103 }
0x16b3   :  { %v1724_v6 = vsel %vm5572_vm8, %v5102_v3, %v5104_v4 }
0x16b4   :  { %1731 = vrot.lane.b32.xlu0 %v1724_v6, %s5337_s27  ;;  %v1729_v53 = vmul.f32 %v1727_v12, %v1724_v6 }
0x1726   :  { %v1732_v47 = vpop.permute.xlu0 %1731 }
0x1727   :  { %v1734_v9 = vmul.f32 %v1732_v47, %v1724_v6 }
0x1729   :  { %1736 = vrot.lane.b32.xlu0 %v1734_v9, %s5333_s0 }
0x179b   :  { %v1737_v14 = vpop.permute.xlu0 %1736 }
0x179c   :  { %v5900_v15 = vadd.f32 %v1737_v14, %v1729_v53  ;;  %v5984_v53 = vld [vmem:[%s6409_s6] ss:$0 sm:$0xff] }
0x179e   :  { %5105 = vtanh.f32 %v5900_v15 }
0x17a8   :  { %v5106_v16 = vpop.eup %5105 }
0x17a9   :  { %1742 = vrot.lane.b32.xlu1 %v5106_v16, %s5337_s27 }
0x17ad   :  { %1838 = vrot.lane.b32.xlu1 %v1834_v17, %s5333_s0 }
0x181b   :  { %v1743_v18 = vpop.permute.xlu1 %1742 }
0x181c   :  { %v1745_v7 = vmul.f32 %v1743_v18, %v1724_v6 }
0x181e   :  { %1747 = vrot.lane.b32.xlu0 %v1745_v7, %s5333_s0 }
0x181f   :  { %v1839_v32 = vpop.permute.xlu1 %1838 }
0x1822   :  { %1543 = vrot.lane.b32.xlu0 %v5861_v50, %s5338_s26 }
0x1890   :  { %v1748_v19 = vpop.permute.xlu0 %1747 }
0x1891   :  { %1750 = vst.msk [vmem:[#allocation13] sm:$0xf] %vm106_vm1, %v1748_v19  ;;  %4440 = vmatmul.mubr.msk.f32.vlgmr.msra.gmra.mrb[20].mxu1 %vm235_vm2, %v1748_v19 }
0x1892   :  { %4866 = vmatpush3.bf16.msra.mxu1 %v5614_v22  ;;  %4458 = vmatprep.mubr.msk.f32.mxu1 %vm5335_vm3, %v5336_v38 }
0x1893   :  { %4867 = vmatprep.subr.bf16.mxu1 %v5334_v28 }
0x1894   :  { %v1544_v21 = vpop.permute.xlu0 %1543 }
0x1895   :  { %1546 = vst.msk [vmem:[#allocation14 + $0x4] sm:$0xf] %vm106_vm1, %v1544_v21 }
0x1896   :  { %4869 = vmatpush3.bf16.msra.mxu1 %v5618_v25 }
0x1897   :  { %4870 = vmatprep.subr.bf16.mxu1 %v5334_v28 }
0x1898   :  { %v2043_v51 = vld [vmem:[#allocation13] sm:$0xf] }
0x189a   :  { %4872 = vmatpush3.bf16.msra.mxu1 %v5622_v30  ;;  %v5931_v30 = vld [vmem:[#allocation2 + $0x10] sm:$0xf] }
0x189b   :  { %4873 = vmatprep.subr.bf16.mxu1 %v5334_v28 }
0x189c   :  { %v1835_v23 = vld [vmem:[#allocation14 + $0x4] sm:$0xf] }
0x189d   :  { %1933 = vrot.lane.b32.xlu0 %v1835_v23, %s5333_s0 }
0x189e   :  { %4875 = vmatpush3.bf16.msra.mxu1 %v5626_v35 }
0x189f   :  { %4894 = vmatprep.subr.bf16.mxu1 %v5334_v28 }
0x190f   :  { %v1934_v48 = vpop.permute.xlu0 %1933 }
0x1964   :  { %v1828_v22 = vpop.f32.mrb[20].mxu1 }
0x1965   :  { %v1829_v24 = vadd.f32 %v5635_v40, %v1828_v22  ;;  %v4441_v29 = vpop.f32.mrb[21].mxu1 }
0x1967   :  { %v5924_v5 = vadd.f32 %v1829_v24, %v5845_v26 }
0x1969   :  { %v1833_v25 = vmax.f32 %v5924_v5, 0.0 }
0x196b   :  { %1836 = vst.msk [vmem:[#allocation3] sm:$0xf] %vm106_vm1, %v1833_v25 }
0x196c   :  { %1841 = vst.msk [vmem:[#allocation3] sm:$0xf] %vm380_vm4, %v1839_v32  ;;  %v2173_v32 = vld [vmem:[%s6410_s7 + $0x8] sm:$0xff] }
0x1973   :  { %v1842_v35 = vld [vmem:[#allocation3] sm:$0xf] }
0x1974   :  { %4459 = vmatmul.mubr.msk.f32.vlgmr.msra.gmra.mrb[22].mxu1 %vm391_vm5, %v1842_v35  ;;  %2045 = vst.msk [vmem:[#allocation3] sm:$0xf] %vm106_vm1, %v5931_v30  ;;  %v2174_v35 = vld [vmem:[%s6410_s7 + $0x10] sm:$0xff] }
0x1975   :  { %4499 = vmatprep.mubr.msk.f32.mxu1 %vm5335_vm3, %v5336_v38 }
0x1a47   :  { %v1920_v40 = vpop.f32.mrb[22].mxu1 }
0x1a48   :  { %v1921_v26 = vadd.f32 %v5660_v49, %v1920_v40  ;;  %v4460_v33 = vpop.f32.mrb[23].mxu1 }
0x1a4a   :  { %v3911_v36 = vmul.f32 -1.442695, %v1921_v26 }
0x1a4c   :  { %5107 = vpow2.f32 %v3911_v36 }
0x1a4d   :  { %5109 = vtanh.f32 %v1921_v26  ;;  %v2175_v26 = vld [vmem:[%s6410_s7 + $0x18] sm:$0xff] }
0x1a4e   :  { %v6009_v33 = vpack.c.bf16 %v2175_v26, %v2174_v35 }
0x1a56   :  { %v5108_v39 = vpop.eup %5107 }
0x1a57   :  { %v1928_v41 = vadd.f32 1.0, %v5108_v39  ;;  %v5110_v11 = vpop.eup %5109 }
0x1a59   :  { %5111 = vrcp.f32 %v1928_v41 }
0x1a63   :  { %v5112_v42 = vpop.eup %5111 }
0x1a64   :  { %v1931_v43 = vsel %vm5572_vm8, %v5110_v11, %v5112_v42 }
0x1a65   :  { %1938 = vrot.lane.b32.xlu1 %v1931_v43, %s5337_s27  ;;  %v1936_v49 = vmul.f32 %v1934_v48, %v1931_v43  ;;  %v2260_v48 = vld [vmem:[#allocation10 + $0x48] sm:$0xff] }
0x1ad7   :  { %v1939_v13 = vpop.permute.xlu1 %1938 }
0x1ad8   :  { %v1941_v46 = vmul.f32 %v1939_v13, %v1931_v43 }
0x1ada   :  { %1943 = vrot.lane.b32.xlu1 %v1941_v46, %s5333_s0  ;;  %v2259_v46 = vld [vmem:[#allocation10 + $0x40] sm:$0xff] }
0x1b4c   :  { %v1944_v44 = vpop.permute.xlu1 %1943 }
0x1b4d   :  { %v5943_v45 = vadd.f32 %v1944_v44, %v1936_v49  ;;  %v6025_v49 = vpack.c.bf16 %v2260_v48, %v2259_v46  ;;  %v2261_v44 = vld [vmem:[#allocation10 + $0x50] sm:$0xff] }
0x1b4f   :  { %5113 = vtanh.f32 %v5943_v45 }
0x1b59   :  { %v5114_v50 = vpop.eup %5113 }
0x1b5a   :  { %1949 = vrot.lane.b32.xlu0 %v5114_v50, %s5337_s27 }
0x1b5e   :  { %2047 = vrot.lane.b32.xlu0 %v2043_v51, %s5333_s0  ;;  %v2263_v51 = vld [vmem:[#allocation10 + $0x60] sm:$0xff] }
0x1bcc   :  { %v1950_v52 = vpop.permute.xlu0 %1949 }
0x1bcd   :  { %v1952_v54 = vmul.f32 %v1950_v52, %v1931_v43  ;;  %v2264_v52 = vld [vmem:[#allocation10 + $0x68] sm:$0xff] }
0x1bcf   :  { %1954 = vrot.lane.b32.xlu1 %v1952_v54, %s5333_s0  ;;  %v6033_v54 = vpack.c.bf16 %v2264_v52, %v2263_v51 }
0x1bd0   :  { %v2048_v55 = vpop.permute.xlu0 %2047 }
0x1bd1   :  { %2050 = vst.msk [vmem:[#allocation3] sm:$0xf] %vm380_vm4, %v2048_v55  ;;  %v2265_v55 = vld [vmem:[#allocation10 + $0x70] sm:$0xff] }
0x1bd2   :  { %v6036_v57 = vpack.c.bf16 %v2266_v56, %v2265_v55 }
0x1bd3   :  { %1752 = vrot.lane.b32.xlu1 %v5900_v15, %s5338_s26 }
0x1bd8   :  { %v2051_v10 = vld [vmem:[#allocation3] sm:$0xf] }
0x1c41   :  { %v1955_v31 = vpop.permute.xlu1 %1954 }
0x1c42   :  { %1957 = vst.msk [vmem:[#allocation13 + $0x4] sm:$0xf] %vm106_vm1, %v1955_v31  ;;  %4470 = vmatmul.mubr.msk.f32.vlgmr.msra.gmra.mrb[14].mxu0 %vm235_vm2, %v1955_v31 }
0x1c43   :  { %4884 = vmatpush3.bf16.msra.mxu0 %v5952_v58  ;;  %4488 = vmatprep.mubr.msk.f32.mxu0 %vm5335_vm3, %v5336_v38 }
0x1c44   :  { %4885 = vmatprep.subr.bf16.mxu0 %v5334_v28 }
0x1c45   :  { %v1753_v61 = vpop.permute.xlu1 %1752 }
0x1c46   :  { %1755 = vst.msk [vmem:[#allocation14] sm:$0xf] %vm106_vm1, %v1753_v61 }
0x1c47   :  { %4887 = vmatpush3.bf16.msra.mxu0 %v5957_v34 }
0x1c48   :  { %4888 = vmatprep.subr.bf16.mxu0 %v5334_v28 }
0x1c49   :  { %v2250_v39 = vld [vmem:[#allocation13 + $0x4] sm:$0xf] }
0x1c4b   :  { %4890 = vmatpush3.bf16.msra.mxu0 %v5964_v8 }
0x1c4c   :  { %4891 = vmatprep.subr.bf16.mxu0 %v5334_v28 }
0x1c4d   :  { %v2044_v2 = vld [vmem:[#allocation14] sm:$0xf] }
0x1c4e   :  { %2142 = vrot.lane.b32.xlu1 %v2044_v2, %s5333_s0 }
0x1c4f   :  { %4893 = vmatpush3.bf16.msra.mxu0 %v5968_v1 }
0x1c50   :  { %4912 = vmatprep.subr.bf16.mxu0 %v5334_v28 }
0x1c52   :  { %4489 = vmatmul.mubr.msk.f32.vlgmr.msra.gmra.mrb[16].mxu0 %vm391_vm5, %v2051_v10  ;;  %v6066_v10 = vld [vmem:[%s6409_s6 + $0x1] ss:$0 sm:$0xff] }
0x1c53   :  { %4529 = vmatprep.mubr.msk.f32.mxu0 %vm5335_vm3, %v5336_v38 }
0x1cc0   :  { %v2143_v22 = vpop.permute.xlu1 %2142 }
0x1d15   :  { %v2035_v3 = vpop.f32.mrb[14].mxu0 }
0x1d16   :  { %v2036_v4 = vadd.f32 %v5717_v20, %v2035_v3  ;;  %v4471_v6 = vpop.f32.mrb[15].mxu0 }
0x1d18   :  { %v2039_v47 = vadd.f32 %v2036_v4, %v1833_v25  ;;  %v2172_v25 = vld [vmem:[%s6410_s7] sm:$0xff] }
0x1d19   :  { %v6003_v40 = vpack.c.bf16 %v2173_v32, %v2172_v25 }
0x1d1a   :  { %v2040_v9 = vmax.f32 %v2039_v47, 0.0 }
0x1d1b   :  { %4896 = vmatpush3.bf16.msra.mxu1 %v6003_v40 }
0x1d1c   :  { %2041 = vst.msk [vmem:[#allocation2 + $0xc] sm:$0xf] %vm106_vm1, %v2040_v9  ;;  %4897 = vmatprep.subr.bf16.mxu1 %v5334_v28 }
0x1d1f   :  { %4899 = vmatpush3.bf16.msra.mxu1 %v6009_v33 }
0x1d20   :  { %4900 = vmatprep.subr.bf16.mxu1 %v5334_v28 }
0x1d25   :  { %v2129_v12 = vpop.f32.mrb[16].mxu0 }
0x1d26   :  { %v2130_v14 = vadd.f32 %v5984_v53, %v2129_v12  ;;  %v4490_v15 = vpop.f32.mrb[17].mxu0 }
0x1d28   :  { %v3918_v16 = vmul.f32 -1.442695, %v2130_v14 }
0x1d2a   :  { %5115 = vpow2.f32 %v3918_v16 }
0x1d2b   :  { %5117 = vtanh.f32 %v2130_v14 }
0x1d34   :  { %v5116_v17 = vpop.eup %5115 }
0x1d35   :  { %v2137_v20 = vadd.f32 1.0, %v5116_v17  ;;  %v5118_v18 = vpop.eup %5117 }
0x1d37   :  { %5119 = vrcp.f32 %v2137_v20 }
0x1d41   :  { %v5120_v7 = vpop.eup %5119 }
0x1d42   :  { %v2140_v19 = vsel %vm5572_vm8, %v5118_v18, %v5120_v7 }
0x1d43   :  { %2147 = vrot.lane.b32.xlu0 %v2140_v19, %s5337_s27  ;;  %v2145_v24 = vmul.f32 %v2143_v22, %v2140_v19  ;;  %v3924_v22 = vld [vmem:[%s6410_s7 + $0x30] sm:$0xff] }
0x1db5   :  { %v2148_v21 = vpop.permute.xlu0 %2147 }
0x1db6   :  { %v2150_v23 = vmul.f32 %v2148_v21, %v2140_v19  ;;  %v3922_v21 = vld [vmem:[%s6410_s7 + $0x20] sm:$0xff] }
0x1db8   :  { %2152 = vrot.lane.b32.xlu0 %v2150_v23, %s5333_s0  ;;  %v3923_v23 = vld [vmem:[%s6410_s7 + $0x28] sm:$0xff] }
0x1e2a   :  { %v2153_v29 = vpop.permute.xlu0 %2152 }
0x1e2b   :  { %v5991_v5 = vadd.f32 %v2153_v29, %v2145_v24  ;;  %v6085_v24 = vpack.c.bf16 %v3923_v23, %v3922_v21  ;;  %v3925_v29 = vld [vmem:[%s6410_s7 + $0x38] sm:$0xff] }
0x1e2c   :  { %v6091_v25 = vpack.c.bf16 %v3925_v29, %v3924_v22  ;;  %v6165_v22 = vld [vmem:[#allocation2 + $0x18] sm:$0xf] }
0x1e2d   :  { %5121 = vtanh.f32 %v5991_v5  ;;  %4914 = vmatpush3.bf16.msra.mxu0 %v6085_v24 }
0x1e2e   :  { %4915 = vmatprep.subr.bf16.mxu0 %v5334_v28 }
0x1e31   :  { %4917 = vmatpush3.bf16.msra.mxu0 %v6091_v25 }
0x1e32   :  { %4918 = vmatprep.subr.bf16.mxu0 %v5334_v28 }
0x1e37   :  { %v5122_v36 = vpop.eup %5121 }
0x1e38   :  { %2158 = vrot.lane.b32.xlu1 %v5122_v36, %s5337_s27 }
0x1e3c   :  { %2254 = vrot.lane.b32.xlu1 %v2250_v39, %s5333_s0 }
0x1eaa   :  { %v2159_v41 = vpop.permute.xlu1 %2158 }
0x1eab   :  { %v2161_v11 = vmul.f32 %v2159_v41, %v2140_v19 }
0x1ead   :  { %2163 = vrot.lane.b32.xlu0 %v2161_v11, %s5333_s0 }
0x1eae   :  { %v2255_v63 = vpop.permute.xlu1 %2254 }
0x1eb1   :  { %1959 = vrot.lane.b32.xlu0 %v5943_v45, %s5338_s26  ;;  %v2262_v45 = vld [vmem:[#allocation10 + $0x58] sm:$0xff] }
0x1eb2   :  { %v6029_v50 = vpack.c.bf16 %v2262_v45, %v2261_v44 }
0x1f1f   :  { %v2164_v42 = vpop.permute.xlu0 %2163 }
0x1f20   :  { %2166 = vst.msk [vmem:[#allocation13] sm:$0xf] %vm106_vm1, %v2164_v42  ;;  %4500 = vmatmul.mubr.msk.f32.vlgmr.msra.gmra.mrb[24].mxu1 %vm235_vm2, %v2164_v42 }
0x1f21   :  { %4518 = vmatprep.mubr.msk.f32.mxu1 %vm5335_vm3, %v5336_v38  ;;  %4902 = vmatpush3.bf16.msra.mxu1 %v6025_v49 }
0x1f22   :  { %4903 = vmatprep.subr.bf16.mxu1 %v5334_v28 }
0x1f23   :  { %v1960_v43 = vpop.permute.xlu0 %1959 }
0x1f24   :  { %1962 = vst.msk [vmem:[#allocation14 + $0x4] sm:$0xf] %vm106_vm1, %v1960_v43 }
0x1f25   :  { %4905 = vmatpush3.bf16.msra.mxu1 %v6029_v50 }
0x1f26   :  { %4906 = vmatprep.subr.bf16.mxu1 %v5334_v28 }
0x1f27   :  { %v2459_v35 = vld [vmem:[#allocation13] sm:$0xf] }
0x1f29   :  { %4908 = vmatpush3.bf16.msra.mxu1 %v6033_v54 }
0x1f2a   :  { %4909 = vmatprep.subr.bf16.mxu1 %v5334_v28 }
0x1f2b   :  { %v2251_v13 = vld [vmem:[#allocation14 + $0x4] sm:$0xf] }
0x1f2c   :  { %2349 = vrot.lane.b32.xlu0 %v2251_v13, %s5333_s0  ;;  %v6123_v13 = vld [vmem:[#allocation11 + $0x1] ss:$0 sm:$0xff] }
0x1f2d   :  { %4911 = vmatpush3.bf16.msra.mxu1 %v6036_v57 }
0x1f2e   :  { %4930 = vmatprep.subr.bf16.mxu1 %v5334_v28 }
0x1f9e   :  { %v2350_v20 = vpop.permute.xlu0 %2349 }
0x1ff3   :  { %v2244_v59 = vpop.f32.mrb[24].mxu1 }
0x1ff4   :  { %v2245_v31 = vadd.f32 %v6041_v27, %v2244_v59  ;;  %v4501_v37 = vpop.f32.mrb[25].mxu1 }
0x1ff6   :  { %v6045_v60 = vadd.f32 %v2245_v31, %v5931_v30 }
0x1ff8   :  { %v2249_v61 = vmax.f32 %v6045_v60, 0.0 }
0x1ffa   :  { %2252 = vst.msk [vmem:[#allocation3] sm:$0xf] %vm106_vm1, %v2249_v61 }
0x1ffb   :  { %2257 = vst.msk [vmem:[#allocation3] sm:$0xf] %vm380_vm4, %v2255_v63 }
0x2002   :  { %v2258_v2 = vld [vmem:[#allocation3] sm:$0xf] }
0x2003   :  { %4519 = vmatmul.mubr.msk.f32.vlgmr.msra.gmra.mrb[26].mxu1 %vm391_vm5, %v2258_v2  ;;  %2461 = vst.msk [vmem:[#allocation3] sm:$0xf] %vm106_vm1, %v6052_v0 }
0x2004   :  { %4932 = vmatpush3.bf16.msra.mxu1 %v6003_v40  ;;  %4559 = vmatprep.mubr.msk.f32.mxu1 %vm5335_vm3, %v5336_v38 }
0x2005   :  { %4933 = vmatprep.subr.bf16.mxu1 %v5334_v28 }
0x2008   :  { %4935 = vmatpush3.bf16.msra.mxu1 %v6009_v33 }
0x2009   :  { %4936 = vmatprep.subr.bf16.mxu1 %v5334_v28 }
0x20d6   :  { %v2336_v30 = vpop.f32.mrb[26].mxu1 }
0x20d7   :  { %v2337_v3 = vadd.f32 %v6066_v10, %v2336_v30  ;;  %v4520_v4 = vpop.f32.mrb[27].mxu1 }
0x20d9   :  { %v3921_v6 = vmul.f32 -1.442695, %v2337_v3 }
0x20db   :  { %5123 = vpow2.f32 %v3921_v6 }
0x20dc   :  { %5125 = vtanh.f32 %v2337_v3 }
0x20e5   :  { %v5124_v47 = vpop.eup %5123 }
0x20e6   :  { %v2344_v9 = vadd.f32 1.0, %v5124_v47  ;;  %v5126_v12 = vpop.eup %5125 }
0x20e8   :  { %5127 = vrcp.f32 %v2344_v9 }
0x20f2   :  { %v5128_v14 = vpop.eup %5127 }
0x20f3   :  { %v2347_v15 = vsel %vm5572_vm8, %v5126_v12, %v5128_v14 }
0x20f4   :  { %2354 = vrot.lane.b32.xlu1 %v2347_v15, %s5337_s27  ;;  %v2352_v18 = vmul.f32 %v2350_v20, %v2347_v15 }
0x2166   :  { %v2355_v16 = vpop.permute.xlu1 %2354 }
0x2167   :  { %v2357_v17 = vmul.f32 %v2355_v16, %v2347_v15 }
0x2169   :  { %2359 = vrot.lane.b32.xlu1 %v2357_v17, %s5333_s0 }
0x21db   :  { %v2360_v7 = vpop.permute.xlu1 %2359 }
0x21dc   :  { %v6073_v19 = vadd.f32 %v2360_v7, %v2352_v18 }
0x21de   :  { %5129 = vtanh.f32 %v6073_v19 }
0x21e8   :  { %v5130_v32 = vpop.eup %5129 }
0x21e9   :  { %2365 = vrot.lane.b32.xlu0 %v5130_v32, %s5337_s27 }
0x21ed   :  { %2463 = vrot.lane.b32.xlu0 %v2459_v35, %s5333_s0 }
0x225b   :  { %v2366_v26 = vpop.permute.xlu0 %2365 }
0x225c   :  { %v2368_v36 = vmul.f32 %v2366_v26, %v2347_v15 }
0x225e   :  { %2370 = vrot.lane.b32.xlu1 %v2368_v36, %s5333_s0 }
0x225f   :  { %v2464_v39 = vpop.permute.xlu0 %2463 }
0x2260   :  { %2466 = vst.msk [vmem:[#allocation3] sm:$0xf] %vm380_vm4, %v2464_v39 }
0x2262   :  { %2168 = vrot.lane.b32.xlu1 %v5991_v5, %s5338_s26 }
0x2267   :  { %v2467_v42 = vld [vmem:[#allocation3] sm:$0xf] }
0x22d0   :  { %v2371_v41 = vpop.permute.xlu1 %2370 }
0x22d1   :  { %2373 = vst.msk [vmem:[#allocation13 + $0x4] sm:$0xf] %vm106_vm1, %v2371_v41  ;;  %4530 = vmatmul.mubr.msk.f32.vlgmr.msra.gmra.mrb[18].mxu0 %vm235_vm2, %v2371_v41 }
0x22d2   :  { %4920 = vmatpush3.bf16.msra.mxu0 %v5952_v58  ;;  %4548 = vmatprep.mubr.msk.f32.mxu0 %vm5335_vm3, %v5336_v38 }
0x22d3   :  { %4921 = vmatprep.subr.bf16.mxu0 %v5334_v28 }
0x22d4   :  { %v2169_v11 = vpop.permute.xlu1 %2168 }
0x22d5   :  { %2171 = vst.msk [vmem:[#allocation14] sm:$0xf] %vm106_vm1, %v2169_v11 }
0x22d6   :  { %4923 = vmatpush3.bf16.msra.mxu0 %v5957_v34 }
0x22d7   :  { %4924 = vmatprep.subr.bf16.mxu0 %v5334_v28 }
0x22d8   :  { %v2666_v9 = vld [vmem:[#allocation13 + $0x4] sm:$0xf] }
0x22da   :  { %4926 = vmatpush3.bf16.msra.mxu0 %v5964_v8 }
0x22db   :  { %4927 = vmatprep.subr.bf16.mxu0 %v5334_v28 }
0x22dc   :  { %v2460_v5 = vld [vmem:[#allocation14] sm:$0xf] }
0x22dd   :  { %2558 = vrot.lane.b32.xlu1 %v2460_v5, %s5333_s0 }
0x22de   :  { %4929 = vmatpush3.bf16.msra.mxu0 %v5968_v1 }
0x22df   :  { %4948 = vmatprep.subr.bf16.mxu0 %v5334_v28 }
0x22e1   :  { %4549 = vmatmul.mubr.msk.f32.vlgmr.msra.gmra.mrb[20].mxu0 %vm391_vm5, %v2467_v42 }
0x22e2   :  { %4950 = vmatpush3.bf16.msra.mxu0 %v6085_v24  ;;  %4589 = vmatprep.mubr.msk.f32.mxu0 %vm5335_vm3, %v5336_v38 }
0x22e3   :  { %4951 = vmatprep.subr.bf16.mxu0 %v5334_v28 }
0x22e6   :  { %4953 = vmatpush3.bf16.msra.mxu0 %v6091_v25 }
0x22e7   :  { %4954 = vmatprep.subr.bf16.mxu0 %v5334_v28 }
0x234f   :  { %v2559_v30 = vpop.permute.xlu1 %2558 }
0x23a4   :  { %v2451_v43 = vpop.f32.mrb[18].mxu0 }
0x23a5   :  { %v2452_v46 = vadd.f32 %v6123_v13, %v2451_v43  ;;  %v4531_v48 = vpop.f32.mrb[19].mxu0 }
0x23a7   :  { %v2455_v44 = vadd.f32 %v2452_v46, %v2249_v61 }
0x23a9   :  { %v2456_v45 = vmax.f32 %v2455_v44, 0.0 }
0x23ab   :  { %2457 = vst.msk [vmem:[#allocation2 + $0x10] sm:$0xf] %vm106_vm1, %v2456_v45 }
0x23b4   :  { %v2545_v51 = vpop.f32.mrb[20].mxu0 }
0x23b5   :  { %v2546_v52 = vadd.f32 %v5984_v53, %v2545_v51  ;;  %v4550_v55 = vpop.f32.mrb[21].mxu0 }
0x23b7   :  { %v3928_v56 = vmul.f32 -1.442695, %v2546_v52 }
0x23b9   :  { %5131 = vpow2.f32 %v3928_v56 }
0x23ba   :  { %5133 = vtanh.f32 %v2546_v52 }
0x23c3   :  { %v5132_v59 = vpop.eup %5131 }
0x23c4   :  { %v2553_v31 = vadd.f32 1.0, %v5132_v59  ;;  %v5134_v37 = vpop.eup %5133 }
0x23c6   :  { %5135 = vrcp.f32 %v2553_v31 }
0x23d0   :  { %v5136_v63 = vpop.eup %5135 }
0x23d1   :  { %v2556_v2 = vsel %vm5572_vm8, %v5134_v37, %v5136_v63 }
0x23d2   :  { %2563 = vrot.lane.b32.xlu0 %v2556_v2, %s5337_s27  ;;  %v2561_v3 = vmul.f32 %v2559_v30, %v2556_v2 }
0x2444   :  { %v2564_v60 = vpop.permute.xlu0 %2563 }
0x2445   :  { %v2566_v61 = vmul.f32 %v2564_v60, %v2556_v2 }
0x2447   :  { %2568 = vrot.lane.b32.xlu0 %v2566_v61, %s5333_s0 }
0x24b9   :  { %v2569_v4 = vpop.permute.xlu0 %2568 }
0x24ba   :  { %v6134_v6 = vadd.f32 %v2569_v4, %v2561_v3 }
0x24bc   :  { %5137 = vtanh.f32 %v6134_v6 }
0x24c6   :  { %v5138_v47 = vpop.eup %5137 }
0x24c7   :  { %2574 = vrot.lane.b32.xlu1 %v5138_v47, %s5337_s27 }
0x24cb   :  { %2670 = vrot.lane.b32.xlu1 %v2666_v9, %s5333_s0 }
0x2539   :  { %v2575_v12 = vpop.permute.xlu1 %2574 }
0x253a   :  { %v2577_v14 = vmul.f32 %v2575_v12, %v2556_v2 }
0x253c   :  { %2579 = vrot.lane.b32.xlu0 %v2577_v14, %s5333_s0 }
0x253d   :  { %v2671_v23 = vpop.permute.xlu1 %2670 }
0x2540   :  { %2375 = vrot.lane.b32.xlu0 %v6073_v19, %s5338_s26 }
0x25ae   :  { %v2580_v15 = vpop.permute.xlu0 %2579 }
0x25af   :  { %2582 = vst.msk [vmem:[#allocation13] sm:$0xf] %vm106_vm1, %v2580_v15  ;;  %4560 = vmatmul.mubr.msk.f32.vlgmr.msra.gmra.mrb[28].mxu1 %vm235_vm2, %v2580_v15 }
0x25b0   :  { %4938 = vmatpush3.bf16.msra.mxu1 %v6025_v49  ;;  %4578 = vmatprep.mubr.msk.f32.mxu1 %vm5335_vm3, %v5336_v38 }
0x25b1   :  { %4939 = vmatprep.subr.bf16.mxu1 %v5334_v28 }
0x25b2   :  { %v2376_v16 = vpop.permute.xlu0 %2375 }
0x25b3   :  { %2378 = vst.msk [vmem:[#allocation14 + $0x4] sm:$0xf] %vm106_vm1, %v2376_v16 }
0x25b4   :  { %4941 = vmatpush3.bf16.msra.mxu1 %v6029_v50 }
0x25b5   :  { %4942 = vmatprep.subr.bf16.mxu1 %v5334_v28 }
0x25b6   :  { %v2875_v52 = vld [vmem:[#allocation13] sm:$0xf] }
0x25b8   :  { %4944 = vmatpush3.bf16.msra.mxu1 %v6033_v54 }
0x25b9   :  { %4945 = vmatprep.subr.bf16.mxu1 %v5334_v28 }
0x25ba   :  { %v2667_v17 = vld [vmem:[#allocation14 + $0x4] sm:$0xf] }
0x25bb   :  { %2765 = vrot.lane.b32.xlu0 %v2667_v17, %s5333_s0 }
0x25bc   :  { %4947 = vmatpush3.bf16.msra.mxu1 %v6036_v57 }
0x25bd   :  { %4966 = vmatprep.subr.bf16.mxu1 %v5334_v28 }
0x262d   :  { %v2766_v46 = vpop.permute.xlu0 %2765 }
0x2682   :  { %v2660_v20 = vpop.f32.mrb[28].mxu1 }
0x2683   :  { %v2661_v18 = vadd.f32 %v6041_v27, %v2660_v20  ;;  %v4561_v7 = vpop.f32.mrb[29].mxu1 }
0x2685   :  { %v6158_v19 = vadd.f32 %v2661_v18, %v6052_v0 }
0x2687   :  { %v2665_v21 = vmax.f32 %v6158_v19, 0.0 }
0x2689   :  { %2668 = vst.msk [vmem:[#allocation3] sm:$0xf] %vm106_vm1, %v2665_v21 }
0x268a   :  { %2673 = vst.msk [vmem:[#allocation3] sm:$0xf] %vm380_vm4, %v2671_v23 }
0x2691   :  { %v2674_v29 = vld [vmem:[#allocation3] sm:$0xf] }
0x2692   :  { %4579 = vmatmul.mubr.msk.f32.vlgmr.msra.gmra.mrb[30].mxu1 %vm391_vm5, %v2674_v29  ;;  %2877 = vst.msk [vmem:[#allocation3] sm:$0xf] %vm106_vm1, %v6165_v22 }
0x2693   :  { %4968 = vmatpush3.bf16.msra.mxu1 %v6003_v40  ;;  %4619 = vmatprep.mubr.msk.f32.mxu1 %vm5335_vm3, %v5336_v38 }
0x2694   :  { %4969 = vmatprep.subr.bf16.mxu1 %v5334_v28 }
0x2697   :  { %4971 = vmatpush3.bf16.msra.mxu1 %v6009_v33 }
0x2698   :  { %4972 = vmatprep.subr.bf16.mxu1 %v5334_v28 }
0x2765   :  { %v2752_v0 = vpop.f32.mrb[30].mxu1 }
0x2766   :  { %v2753_v32 = vadd.f32 %v6066_v10, %v2752_v0  ;;  %v4580_v35 = vpop.f32.mrb[31].mxu1 }
0x2768   :  { %v3931_v26 = vmul.f32 -1.442695, %v2753_v32 }
0x276a   :  { %5139 = vpow2.f32 %v3931_v26 }
0x276b   :  { %5141 = vtanh.f32 %v2753_v32 }
0x2774   :  { %v5140_v36 = vpop.eup %5139 }
0x2775   :  { %v2760_v39 = vadd.f32 1.0, %v5140_v36  ;;  %v5142_v41 = vpop.eup %5141 }
0x2777   :  { %5143 = vrcp.f32 %v2760_v39 }
0x2781   :  { %v5144_v11 = vpop.eup %5143 }
0x2782   :  { %v2763_v5 = vsel %vm5572_vm8, %v5142_v41, %v5144_v11 }
0x2783   :  { %2770 = vrot.lane.b32.xlu1 %v2763_v5, %s5337_s27  ;;  %v2768_v48 = vmul.f32 %v2766_v46, %v2763_v5 }
0x27f5   :  { %v2771_v42 = vpop.permute.xlu1 %2770 }
0x27f6   :  { %v2773_v43 = vmul.f32 %v2771_v42, %v2763_v5 }
0x27f8   :  { %2775 = vrot.lane.b32.xlu1 %v2773_v43, %s5333_s0 }
0x286a   :  { %v2776_v44 = vpop.permute.xlu1 %2775 }
0x286b   :  { %v6181_v45 = vadd.f32 %v2776_v44, %v2768_v48  ;;  %v6251_v44 = vld [vmem:[#allocation2 + $0x1c] sm:$0xf] }
0x286d   :  { %5145 = vtanh.f32 %v6181_v45 }
0x2877   :  { %v5146_v51 = vpop.eup %5145 }
0x2878   :  { %2781 = vrot.lane.b32.xlu0 %v5146_v51, %s5337_s27 }
0x287c   :  { %2879 = vrot.lane.b32.xlu0 %v2875_v52, %s5333_s0 }
0x28ea   :  { %v2782_v55 = vpop.permute.xlu0 %2781 }
0x28eb   :  { %v2784_v56 = vmul.f32 %v2782_v55, %v2763_v5 }
0x28ed   :  { %2786 = vrot.lane.b32.xlu1 %v2784_v56, %s5333_s0 }
0x28ee   :  { %v2880_v59 = vpop.permute.xlu0 %2879 }
0x28ef   :  { %2882 = vst.msk [vmem:[#allocation3] sm:$0xf] %vm380_vm4, %v2880_v59 }
0x28f1   :  { %2584 = vrot.lane.b32.xlu1 %v6134_v6, %s5338_s26 }
0x28f6   :  { %v2883_v2 = vld [vmem:[#allocation3] sm:$0xf] }
0x295f   :  { %v2787_v31 = vpop.permute.xlu1 %2786 }
0x2960   :  { %2789 = vst.msk [vmem:[#allocation13 + $0x4] sm:$0xf] %vm106_vm1, %v2787_v31  ;;  %4590 = vmatmul.mubr.msk.f32.vlgmr.msra.gmra.mrb[22].mxu0 %vm235_vm2, %v2787_v31 }
0x2961   :  { %4956 = vmatpush3.bf16.msra.mxu0 %v5952_v58  ;;  %4608 = vmatprep.mubr.msk.f32.mxu0 %vm5335_vm3, %v5336_v38 }
0x2962   :  { %4957 = vmatprep.subr.bf16.mxu0 %v5334_v28 }
0x2963   :  { %v2585_v37 = vpop.permute.xlu1 %2584 }
0x2964   :  { %2587 = vst.msk [vmem:[#allocation14] sm:$0xf] %vm106_vm1, %v2585_v37 }
0x2965   :  { %4959 = vmatpush3.bf16.msra.mxu0 %v5957_v34 }
0x2966   :  { %4960 = vmatprep.subr.bf16.mxu0 %v5334_v28 }
0x2967   :  { %v3082_v32 = vld [vmem:[#allocation13 + $0x4] sm:$0xf] }
0x2969   :  { %4962 = vmatpush3.bf16.msra.mxu0 %v5964_v8 }
0x296a   :  { %4963 = vmatprep.subr.bf16.mxu0 %v5334_v28 }
0x296b   :  { %v2876_v63 = vld [vmem:[#allocation14] sm:$0xf] }
0x296c   :  { %2974 = vrot.lane.b32.xlu1 %v2876_v63, %s5333_s0 }
0x296d   :  { %4965 = vmatpush3.bf16.msra.mxu0 %v5968_v1 }
0x296e   :  { %4984 = vmatprep.subr.bf16.mxu0 %v5334_v28 }
0x2970   :  { %4609 = vmatmul.mubr.msk.f32.vlgmr.msra.gmra.mrb[24].mxu0 %vm391_vm5, %v2883_v2 }
0x2971   :  { %4986 = vmatpush3.bf16.msra.mxu0 %v6085_v24  ;;  %4649 = vmatprep.mubr.msk.f32.mxu0 %vm5335_vm3, %v5336_v38 }
0x2972   :  { %4987 = vmatprep.subr.bf16.mxu0 %v5334_v28 }
0x2975   :  { %4989 = vmatpush3.bf16.msra.mxu0 %v6091_v25 }
0x2976   :  { %4990 = vmatprep.subr.bf16.mxu0 %v5334_v28 }
0x29de   :  { %v2975_v19 = vpop.permute.xlu1 %2974 }
0x2a33   :  { %v2867_v60 = vpop.f32.mrb[22].mxu0 }
0x2a34   :  { %v2868_v61 = vadd.f32 %v6123_v13, %v2867_v60  ;;  %v4591_v30 = vpop.f32.mrb[23].mxu0 }
0x2a36   :  { %v2871_v3 = vadd.f32 %v2868_v61, %v2665_v21 }
0x2a38   :  { %v2872_v4 = vmax.f32 %v2871_v3, 0.0 }
0x2a3a   :  { %2873 = vst.msk [vmem:[#allocation2 + $0x14] sm:$0xf] %vm106_vm1, %v2872_v4 }
0x2a43   :  { %v2961_v6 = vpop.f32.mrb[24].mxu0 }
0x2a44   :  { %v2962_v47 = vadd.f32 %v5984_v53, %v2961_v6  ;;  %v4610_v9 = vpop.f32.mrb[25].mxu0 }
0x2a46   :  { %v3938_v12 = vmul.f32 -1.442695, %v2962_v47 }
0x2a48   :  { %5147 = vpow2.f32 %v3938_v12 }
0x2a49   :  { %5149 = vtanh.f32 %v2962_v47 }
0x2a52   :  { %v5148_v14 = vpop.eup %5147 }
0x2a53   :  { %v2969_v15 = vadd.f32 1.0, %v5148_v14  ;;  %v5150_v16 = vpop.eup %5149 }
0x2a55   :  { %5151 = vrcp.f32 %v2969_v15 }
0x2a5f   :  { %v5152_v17 = vpop.eup %5151 }
0x2a60   :  { %v2972_v20 = vsel %vm5572_vm8, %v5150_v16, %v5152_v17 }
0x2a61   :  { %2979 = vrot.lane.b32.xlu0 %v2972_v20, %s5337_s27  ;;  %v2977_v21 = vmul.f32 %v2975_v19, %v2972_v20 }
0x2ad3   :  { %v2980_v18 = vpop.permute.xlu0 %2979 }
0x2ad4   :  { %v2982_v7 = vmul.f32 %v2980_v18, %v2972_v20 }
0x2ad6   :  { %2984 = vrot.lane.b32.xlu0 %v2982_v7, %s5333_s0 }
0x2b48   :  { %v2985_v23 = vpop.permute.xlu0 %2984 }
0x2b49   :  { %v6220_v29 = vadd.f32 %v2985_v23, %v2977_v21 }
0x2b4b   :  { %5153 = vtanh.f32 %v6220_v29 }
0x2b55   :  { %v5154_v0 = vpop.eup %5153 }
0x2b56   :  { %2990 = vrot.lane.b32.xlu1 %v5154_v0, %s5337_s27 }
0x2b5a   :  { %3086 = vrot.lane.b32.xlu1 %v3082_v32, %s5333_s0 }
0x2bc8   :  { %v2991_v35 = vpop.permute.xlu1 %2990 }
0x2bc9   :  { %v2993_v26 = vmul.f32 %v2991_v35, %v2972_v20 }
0x2bcb   :  { %2995 = vrot.lane.b32.xlu0 %v2993_v26, %s5333_s0 }
0x2bcc   :  { %v3087_v48 = vpop.permute.xlu1 %3086 }
0x2bcf   :  { %2791 = vrot.lane.b32.xlu0 %v6181_v45, %s5338_s26 }
0x2c3d   :  { %v2996_v36 = vpop.permute.xlu0 %2995 }
0x2c3e   :  { %2998 = vst.msk [vmem:[#allocation13] sm:$0xf] %vm106_vm1, %v2996_v36  ;;  %4620 = vmatmul.mubr.msk.f32.vlgmr.msra.gmra.mrb[32].mxu1 %vm235_vm2, %v2996_v36 }
0x2c3f   :  { %4974 = vmatpush3.bf16.msra.mxu1 %v6025_v49  ;;  %4638 = vmatprep.mubr.msk.f32.mxu1 %vm5335_vm3, %v5336_v38 }
0x2c40   :  { %4975 = vmatprep.subr.bf16.mxu1 %v5334_v28 }
0x2c41   :  { %v2792_v39 = vpop.permute.xlu0 %2791 }
0x2c42   :  { %2794 = vst.msk [vmem:[#allocation14 + $0x4] sm:$0xf] %vm106_vm1, %v2792_v39 }
0x2c43   :  { %4977 = vmatpush3.bf16.msra.mxu1 %v6029_v50 }
0x2c44   :  { %4978 = vmatprep.subr.bf16.mxu1 %v5334_v28 }
0x2c45   :  { %v3291_v4 = vld [vmem:[#allocation13] sm:$0xf] }
0x2c47   :  { %4980 = vmatpush3.bf16.msra.mxu1 %v6033_v54 }
0x2c48   :  { %4981 = vmatprep.subr.bf16.mxu1 %v5334_v28 }
0x2c49   :  { %v3083_v41 = vld [vmem:[#allocation14 + $0x4] sm:$0xf] }
0x2c4a   :  { %3181 = vrot.lane.b32.xlu0 %v3083_v41, %s5333_s0 }
0x2c4b   :  { %4983 = vmatpush3.bf16.msra.mxu1 %v6036_v57 }
0x2c4c   :  { %5002 = vmatprep.subr.bf16.mxu1 %v5334_v28 }
0x2cbc   :  { %v3182_v2 = vpop.permute.xlu0 %3181 }
0x2d11   :  { %v3076_v11 = vpop.f32.mrb[32].mxu1 }
0x2d12   :  { %v3077_v5 = vadd.f32 %v6041_v27, %v3076_v11  ;;  %v4621_v42 = vpop.f32.mrb[33].mxu1 }
0x2d14   :  { %v6244_v43 = vadd.f32 %v3077_v5, %v6165_v22 }
0x2d16   :  { %v3081_v46 = vmax.f32 %v6244_v43, 0.0 }
0x2d18   :  { %3084 = vst.msk [vmem:[#allocation3] sm:$0xf] %vm106_vm1, %v3081_v46 }
0x2d19   :  { %3089 = vst.msk [vmem:[#allocation3] sm:$0xf] %vm380_vm4, %v3087_v48 }
0x2d20   :  { %v3090_v45 = vld [vmem:[#allocation3] sm:$0xf] }
0x2d21   :  { %4639 = vmatmul.mubr.msk.f32.vlgmr.msra.gmra.mrb[34].mxu1 %vm391_vm5, %v3090_v45  ;;  %3293 = vst.msk [vmem:[#allocation3] sm:$0xf] %vm106_vm1, %v6251_v44 }
0x2d22   :  { %5004 = vmatpush3.bf16.msra.mxu1 %v6003_v40  ;;  %4679 = vmatprep.mubr.msk.f32.mxu1 %vm5335_vm3, %v5336_v38 }
0x2d23   :  { %5005 = vmatprep.subr.bf16.mxu1 %v5334_v28 }
0x2d26   :  { %5007 = vmatpush3.bf16.msra.mxu1 %v6009_v33 }
0x2d27   :  { %5008 = vmatprep.subr.bf16.mxu1 %v5334_v28 }
0x2df4   :  { %v3168_v22 = vpop.f32.mrb[34].mxu1 }
0x2df5   :  { %v3169_v51 = vadd.f32 %v6066_v10, %v3168_v22  ;;  %v4640_v52 = vpop.f32.mrb[35].mxu1 }
0x2df7   :  { %v3941_v55 = vmul.f32 -1.442695, %v3169_v51 }
0x2df9   :  { %5155 = vpow2.f32 %v3941_v55 }
0x2dfa   :  { %5157 = vtanh.f32 %v3169_v51 }
0x2e03   :  { %v5156_v56 = vpop.eup %5155 }
0x2e04   :  { %v3176_v59 = vadd.f32 1.0, %v5156_v56  ;;  %v5158_v40 = vpop.eup %5157 }
0x2e06   :  { %5159 = vrcp.f32 %v3176_v59 }
0x2e10   :  { %v5160_v31 = vpop.eup %5159 }
0x2e11   :  { %v3179_v37 = vsel %vm5572_vm8, %v5158_v40, %v5160_v31 }
0x2e12   :  { %3186 = vrot.lane.b32.xlu1 %v3179_v37, %s5337_s27  ;;  %v3184_v60 = vmul.f32 %v3182_v2, %v3179_v37  ;;  %v3710_v2 = vld [vmem:[%s6412_s9] sm:$0xff] }
0x2e84   :  { %v3187_v33 = vpop.permute.xlu1 %3186 }
0x2e85   :  { %v3189_v63 = vmul.f32 %v3187_v33, %v3179_v37 }
0x2e87   :  { %3191 = vrot.lane.b32.xlu1 %v3189_v63, %s5333_s0 }
0x2ef9   :  { %v3192_v61 = vpop.permute.xlu1 %3191 }
0x2efa   :  { %v6267_v30 = vadd.f32 %v3192_v61, %v3184_v60  ;;  %v5026_v60 = vpack.c.bf16 %v3711_v62, %v3710_v2 }
0x2efc   :  { %5161 = vtanh.f32 %v6267_v30 }
0x2f06   :  { %v5162_v3 = vpop.eup %5161 }
0x2f07   :  { %3197 = vrot.lane.b32.xlu0 %v5162_v3, %s5337_s27 }
0x2f0b   :  { %3295 = vrot.lane.b32.xlu0 %v3291_v4, %s5333_s0 }
0x2f79   :  { %v3198_v6 = vpop.permute.xlu0 %3197 }
0x2f7a   :  { %v3200_v47 = vmul.f32 %v3198_v6, %v3179_v37  ;;  %v3712_v6 = vld [vmem:[%s6412_s9 + $0x10] sm:$0xff] }
0x2f7c   :  { %3202 = vrot.lane.b32.xlu1 %v3200_v47, %s5333_s0  ;;  %v3713_v47 = vld [vmem:[%s6412_s9 + $0x18] sm:$0xff] }
0x2f7d   :  { %v3296_v9 = vpop.permute.xlu0 %3295 }
0x2f7e   :  { %3298 = vst.msk [vmem:[#allocation3] sm:$0xf] %vm380_vm4, %v3296_v9  ;;  %v5030_v9 = vpack.c.bf16 %v3713_v47, %v3712_v6 }
0x2f80   :  { %3000 = vrot.lane.b32.xlu1 %v6220_v29, %s5338_s26 }
0x2fee   :  { %v3203_v12 = vpop.permute.xlu1 %3202 }
0x2fef   :  { %3205 = vst.msk [vmem:[#allocation13 + $0x4] sm:$0xf] %vm106_vm1, %v3203_v12  ;;  %4650 = vmatmul.mubr.msk.f32.vlgmr.msra.gmra.mrb[26].mxu0 %vm235_vm2, %v3203_v12 }
0x2ff0   :  { %4992 = vmatpush3.bf16.msra.mxu0 %v5952_v58  ;;  %4668 = vmatprep.mubr.msk.f32.mxu0 %vm5335_vm3, %v5336_v38  ;;  %v3299_v58 = vld [vmem:[#allocation3] sm:$0xf] }
0x2ff1   :  { %4993 = vmatprep.subr.bf16.mxu0 %v5334_v28 }
0x2ff2   :  { %v3001_v14 = vpop.permute.xlu1 %3000 }
0x2ff3   :  { %3003 = vst.msk [vmem:[#allocation14] sm:$0xf] %vm106_vm1, %v3001_v14  ;;  %v3706_v14 = vld [vmem:[#allocation2] sm:$0xff] }
0x2ff4   :  { %4995 = vmatpush3.bf16.msra.mxu0 %v5957_v34 }
0x2ff5   :  { %4996 = vmatprep.subr.bf16.mxu0 %v5334_v28 }
0x2ff6   :  { %v3498_v41 = vld [vmem:[#allocation13 + $0x4] sm:$0xf] }
0x2ff8   :  { %4998 = vmatpush3.bf16.msra.mxu0 %v5964_v8 }
0x2ff9   :  { %4999 = vmatprep.subr.bf16.mxu0 %v5334_v28 }
0x2ffa   :  { %v3292_v15 = vld [vmem:[#allocation14] sm:$0xf] }
0x2ffb   :  { %3390 = vrot.lane.b32.xlu1 %v3292_v15, %s5333_s0 }
0x2ffc   :  { %5001 = vmatpush3.bf16.msra.mxu0 %v5968_v1 }
0x2ffd   :  { %5020 = vmatprep.subr.bf16.mxu0 %v5334_v28 }
0x2fff   :  { %4669 = vmatmul.mubr.msk.f32.vlgmr.msra.gmra.mrb[28].mxu0 %vm391_vm5, %v3299_v58  ;;  %v3707_v58 = vld [vmem:[#allocation2 + $0x8] sm:$0xff] }
0x3000   :  { %5022 = vmatpush3.bf16.msra.mxu0 %v6085_v24  ;;  %4709 = vmatprep.mubr.msk.f32.mxu0 %vm5335_vm3, %v5336_v38 }
0x3001   :  { %5023 = vmatprep.subr.bf16.mxu0 %v5334_v28 }
0x3004   :  { %5025 = vmatpush3.bf16.msra.mxu0 %v6091_v25 }
0x3005   :  { %5027 = vmatprep.subr.bf16.mxu0 %v5026_v60 }
0x306d   :  { %v3391_v35 = vpop.permute.xlu1 %3390 }
0x30c2   :  { %v3283_v34 = vpop.f32.mrb[26].mxu0 }
0x30c3   :  { %v3284_v8 = vadd.f32 %v6123_v13, %v3283_v34  ;;  %v4651_v16 = vpop.f32.mrb[27].mxu0  ;;  %v3708_v34 = vld [vmem:[#allocation2 + $0x10] sm:$0xff] }
0x30c5   :  { %v3287_v1 = vadd.f32 %v3284_v8, %v3081_v46 }
0x30c7   :  { %v3288_v17 = vmax.f32 %v3287_v1, 0.0 }
0x30c9   :  { %3289 = vst.msk [vmem:[#allocation2 + $0x18] sm:$0xf] %vm106_vm1, %v3288_v17 }
0x30d2   :  { %v3377_v20 = vpop.f32.mrb[28].mxu0 }
0x30d3   :  { %v3378_v24 = vadd.f32 %v5984_v53, %v3377_v20  ;;  %v4670_v18 = vpop.f32.mrb[29].mxu0 }
0x30d5   :  { %v3948_v7 = vmul.f32 -1.442695, %v3378_v24 }
0x30d7   :  { %5163 = vpow2.f32 %v3948_v7 }
0x30d8   :  { %5165 = vtanh.f32 %v3378_v24  ;;  %v3957_v24 = vld [vmem:[#allocation4] ss:$0 sm:$0xff] }
0x30e1   :  { %v5164_v19 = vpop.eup %5163 }
0x30e2   :  { %v3385_v21 = vadd.f32 1.0, %v5164_v19  ;;  %v5166_v25 = vpop.eup %5165 }
0x30e4   :  { %5167 = vrcp.f32 %v3385_v21 }
0x30ee   :  { %v5168_v23 = vpop.eup %5167 }
0x30ef   :  { %v3388_v29 = vsel %vm5572_vm8, %v5166_v25, %v5168_v23 }
0x30f0   :  { %3395 = vrot.lane.b32.xlu0 %v3388_v29, %s5337_s27  ;;  %v3393_v53 = vmul.f32 %v3391_v35, %v3388_v29 }
0x3162   :  { %v3396_v0 = vpop.permute.xlu0 %3395 }
0x3163   :  { %v3398_v32 = vmul.f32 %v3396_v0, %v3388_v29 }
0x3165   :  { %3400 = vrot.lane.b32.xlu0 %v3398_v32, %s5333_s0 }
0x31d7   :  { %v3401_v26 = vpop.permute.xlu0 %3400 }
0x31d8   :  { %v3403_v36 = vadd.f32 %v3401_v26, %v3393_v53 }
0x31da   :  { %5169 = vtanh.f32 %v3403_v36 }
0x31e4   :  { %v5170_v39 = vpop.eup %5169 }
0x31e5   :  { %3406 = vrot.lane.b32.xlu1 %v5170_v39, %s5337_s27 }
0x31e9   :  { %3502 = vrot.lane.b32.xlu1 %v3498_v41, %s5333_s0 }
0x3257   :  { %v3407_v11 = vpop.permute.xlu1 %3406 }
0x3258   :  { %v3409_v5 = vmul.f32 %v3407_v11, %v3388_v29 }
0x325a   :  { %3411 = vrot.lane.b32.xlu0 %v3409_v5, %s5333_s0 }
0x325b   :  { %v3503_v51 = vpop.permute.xlu1 %3502 }
0x325e   :  { %3207 = vrot.lane.b32.xlu0 %v6267_v30, %s5338_s26 }
0x32cc   :  { %v3412_v42 = vpop.permute.xlu0 %3411 }
0x32cd   :  { %3414 = vst.msk [vmem:[#allocation13] sm:$0xf] %vm106_vm1, %v3412_v42  ;;  %4680 = vmatmul.mubr.msk.f32.vlgmr.msra.gmra.mrb[36].mxu1 %vm235_vm2, %v3412_v42 }
0x32ce   :  { %5010 = vmatpush3.bf16.msra.mxu1 %v6025_v49  ;;  %4698 = vmatprep.mubr.msk.f32.mxu1 %vm5335_vm3, %v5336_v38 }
0x32cf   :  { %5011 = vmatprep.subr.bf16.mxu1 %v5334_v28 }
0x32d0   :  { %v3208_v43 = vpop.permute.xlu0 %3207 }
0x32d1   :  { %3210 = vst.msk [vmem:[#allocation14 + $0x4] sm:$0xf] %vm106_vm1, %v3208_v43 }
0x32d2   :  { %5013 = vmatpush3.bf16.msra.mxu1 %v6029_v50 }
0x32d3   :  { %5014 = vmatprep.subr.bf16.mxu1 %v5334_v28 }
0x32d6   :  { %5016 = vmatpush3.bf16.msra.mxu1 %v6033_v54 }
0x32d7   :  { %5017 = vmatprep.subr.bf16.mxu1 %v5334_v28 }
0x32d8   :  { %v3499_v46 = vld [vmem:[#allocation14 + $0x4] sm:$0xf] }
0x32d9   :  { %3597 = vrot.lane.b32.xlu0 %v3499_v46, %s5333_s0 }
0x32da   :  { %5019 = vmatpush3.bf16.msra.mxu1 %v6036_v57 }
0x334b   :  { %v3598_v37 = vpop.permute.xlu0 %3597 }
0x33a0   :  { %v3492_v49 = vpop.f32.mrb[36].mxu1 }
0x33a1   :  { %v3493_v38 = vadd.f32 %v6041_v27, %v3492_v49  ;;  %v4681_v48 = vpop.f32.mrb[37].mxu1 }
0x33a3   :  { %v3496_v45 = vadd.f32 %v3493_v38, %v6251_v44 }
0x33a5   :  { %v3497_v22 = vmax.f32 %v3496_v45, 0.0 }
0x33a7   :  { %3500 = vst.msk [vmem:[#allocation3] sm:$0xf] %vm106_vm1, %v3497_v22 }
0x33a8   :  { %3505 = vst.msk [vmem:[#allocation3] sm:$0xf] %vm380_vm4, %v3503_v51 }
0x33af   :  { %v3506_v50 = vld [vmem:[#allocation3] sm:$0xf] }
0x33b0   :  { %4699 = vmatmul.mubr.msk.f32.vlgmr.msra.gmra.mrb[38].mxu1 %vm391_vm5, %v3506_v50 }
0x3483   :  { %v3584_v28 = vpop.f32.mrb[38].mxu1 }
0x3484   :  { %v3585_v54 = vadd.f32 %v6066_v10, %v3584_v28  ;;  %v4700_v52 = vpop.f32.mrb[39].mxu1 }
0x3486   :  { %v3951_v57 = vmul.f32 -1.442695, %v3585_v54 }
0x3488   :  { %5171 = vpow2.f32 %v3951_v57 }
0x3489   :  { %5173 = vtanh.f32 %v3585_v54 }
0x3492   :  { %v5172_v55 = vpop.eup %5171 }
0x3493   :  { %v3592_v27 = vadd.f32 1.0, %v5172_v55  ;;  %v5174_v44 = vpop.eup %5173 }
0x3495   :  { %5175 = vrcp.f32 %v3592_v27 }
0x349f   :  { %v5176_v56 = vpop.eup %5175 }
0x34a0   :  { %v3595_v59 = vsel %vm5572_vm8, %v5174_v44, %v5176_v56 }
0x34a1   :  { %3602 = vrot.lane.b32.xlu1 %v3595_v59, %s5337_s27  ;;  %v3600_v10 = vmul.f32 %v3598_v37, %v3595_v59 }
0x3513   :  { %v3603_v40 = vpop.permute.xlu1 %3602 }
0x3514   :  { %v3605_v31 = vmul.f32 %v3603_v40, %v3595_v59 }
0x3516   :  { %3607 = vrot.lane.b32.xlu1 %v3605_v31, %s5333_s0 }
0x3588   :  { %v3608_v33 = vpop.permute.xlu1 %3607 }
0x3589   :  { %v3610_v63 = vadd.f32 %v3608_v33, %v3600_v10 }
0x358b   :  { %5177 = vtanh.f32 %v3610_v63 }
0x3595   :  { %v5178_v61 = vpop.eup %5177 }
0x3596   :  { %3613 = vrot.lane.b32.xlu0 %v5178_v61, %s5337_s27 }
0x359a   :  { %3416 = vrot.lane.b32.xlu0 %v3403_v36, %s5338_s26 }
0x3608   :  { %v3614_v30 = vpop.permute.xlu0 %3613 }
0x3609   :  { %v3616_v3 = vmul.f32 %v3614_v30, %v3595_v59 }
0x360b   :  { %3618 = vrot.lane.b32.xlu1 %v3616_v3, %s5333_s0 }
0x360c   :  { %v3417_v4 = vpop.permute.xlu0 %3416 }
0x360d   :  { %3419 = vst.msk [vmem:[#allocation14] sm:$0xf] %vm106_vm1, %v3417_v4 }
0x360f   :  { %3623 = vrot.lane.b32.xlu1 %v3610_v63, %s5338_s26 }
0x367d   :  { %v3619_v12 = vpop.permute.xlu1 %3618 }
0x367e   :  { %3621 = vst.msk [vmem:[#allocation13 + $0x4] sm:$0xf] %vm106_vm1, %v3619_v12  ;;  %4710 = vmatmul.mubr.msk.f32.vlgmr.msra.gmra.mrb[30].mxu0 %vm235_vm2, %v3619_v12 }
0x367f   :  { %5029 = vmatpush3.bf16.msra.mxu0 %v5026_v60  ;;  %4720 = vmatprep.mubr.msk.f32.mxu0 %vm235_vm2, %v3706_v14 }
0x3680   :  { %5031 = vmatprep.subr.bf16.mxu0 %v5030_v9 }
0x3681   :  { %v3624_v15 = vpop.permute.xlu1 %3623 }
0x3682   :  { %3626 = vst.msk [vmem:[#allocation14 + $0x4] sm:$0xf] %vm106_vm1, %v3624_v15 }
0x3683   :  { %5033 = vmatpush3.bf16.msra.mxu0 %v5030_v9 }
0x3686   :  { %4721 = vmatmul.mubr.msk.f32.vlgmr.msra.gmra.mrb[32].mxu0 %vm235_vm2, %v3707_v58 }
0x3687   :  { %4723 = vmatprep.mubr.msk.f32.mxu0 %vm235_vm2, %v3708_v34 }
0x3751   :  { %v3699_v8 = vpop.f32.mrb[30].mxu0 }
0x3752   :  { %v3700_v16 = vadd.f32 %v6123_v13, %v3699_v8  ;;  %v4711_v1 = vpop.f32.mrb[31].mxu0 }
0x3754   :  { %v3703_v17 = vadd.f32 %v3700_v16, %v3497_v22 }
0x3756   :  { %v3704_v20 = vmax.f32 %v3703_v17, 0.0 }
0x3758   :  { %3705 = vst.msk [vmem:[#allocation2 + $0x1c] sm:$0xf] %vm106_vm1, %v3704_v20 }
0x3759   :  { %v4722_v18 = vpop.f32.mrb[32].mxu0 }
0x375a   :  { %v3805_v7 = vadd.f32 %v4722_v18, %v3957_v24  ;;  %v3799_v19 = vpop.f32.mrb[33].mxu0 }
0x375b   :  { %v3800_v21 = vadd.f32 %v3957_v24, %v3799_v19 }
0x375c   :  { %3820 = vst.msk [vmem:[%s6416_s13 + $0x8] sm:$0xff] %vm3818_vm9, %v3805_v7 }
0x375d   :  { %3819 = vst.msk [vmem:[%s6416_s13] sm:$0xff] %vm3818_vm9, %v3800_v21 }
0x375f   :  { %v3709_v13 = vld [vmem:[#allocation2 + $0x18] sm:$0xff] }
0x3760   :  { %4724 = vmatmul.mubr.msk.f32.gmra.mrb[34].mxu0 %vm235_vm2, %v3709_v13 }
0x3761   :  { %5282 = shalt.err (!%p5279_p8)
}
0x3762   :  { %s5283_s6 = scalar_lea.hbm %s6417_s14, 128 }
0x3763   :  { %p5284_p9 = scmp.ne.s32.totalorder %s6417_s14, %s5283_s6  ;;  %p5287_p10 = scmp.lt.u32.totalorder %s5283_s6, %s6417_s14 }
0x3765   :  { %p5289_p11 = pnand %p5287_p10, %p5284_p9 }
0x3767   :  { %5292 = shalt.err (!%p5289_p11)
}
0x3768   :  { %s5341_s4 = smov 4   ;;  %s5293_s7 = scalar_lea.vmem %s3843_s17, 128 }
0x3769   :  { %3836 = dma.vmem_to_hbm [thread:$0]  %s3831_s29, 128, %s6417_s14, [#allocation7], %s5337_s27, %s5337_s27, %s5341_s4  }
0x376a   :  { %p5294_p12 = scmp.ne.s32.totalorder %s3843_s17, %s5293_s7  ;;  %p5298_p13 = scmp.lt.s32.totalorder %s3843_s17, %s3843_s17 }
0x376b   :  { %p5299_p0 = scmp.lt.s32.totalorder %s5293_s7, %s5293_s7 }
0x376d   :  { %p5300_p1 = por %p5299_p0, %p5298_p13 }
0x376f   :  { %p5301_p2 = pnand %p5300_p1, %p5294_p12 }
0x3771   :  { %5304 = shalt.err (!%p5301_p2)
}
0x3772   :  { %s5305_s25 = scalar_lea.hbm %s6418_s15, 128 }
0x3773   :  { %p5306_p3 = scmp.ne.s32.totalorder %s6418_s15, %s5305_s25  ;;  %p5309_p4 = scmp.lt.u32.totalorder %s5305_s25, %s6418_s15 }
0x3775   :  { %p5311_p5 = pnand %p5309_p4, %p5306_p3 }
0x3777   :  { %5314 = shalt.err (!%p5311_p5)
}
0x3778   :  { %3848 = dma.vmem_to_hbm [thread:$0]  %s3843_s17, 128, %s6418_s15, [#allocation15], %s5337_s27, %s5337_s27, %s5341_s4  }
0x3833   :  { %v4725_v25 = vpop.f32.mrb[34].mxu0 }
0x3834   :  { %v3815_v23 = vadd.f32 %v4725_v25, %v3957_v24  ;;  %v3809_v29 = vpop.f32.mrb[35].mxu0 }
0x3835   :  { %v3810_v0 = vadd.f32 %v3957_v24, %v3809_v29 }
0x3836   :  { %3822 = vst.msk [vmem:[%s6416_s13 + $0x18] sm:$0xff] %vm3818_vm9, %v3815_v23 }
0x3837   :  { %3821 = vst.msk [vmem:[%s6416_s13 + $0x10] sm:$0xff] %vm3818_vm9, %v3810_v0 }
0x3838   :  { %5321 = dma.done.wait [#allocation7], 128  }
0x3839   :  { %5322 = vsyncadd [#allocation7], 4294967168 }
0x383a   :  { %5323 = dma.done.wait [#allocation15], 128  }
0x383b   :  { %5324 = vsyncadd [#allocation15], 4294967168 }
0x383c   :  { %3857 = vsyncpa [#allocation6], 1 }
0x383d   :  { %3858 = vsyncpa [#allocation9], 1 }
0x383e   :  { %3859 = vsyncpa [#allocation12], 1 }
0x383f   :  { %3860 = vsyncpa [#allocation7], 1 }
0x3840   :  { %3861 = vsyncpa [#allocation15], 1 }

</bundles_post_ra>
